<compile_context>
chip_gen: v7x
topology: tpu7x:2x2x1
jax: 0.10.0
libtpu: 0.0.40
codegen_flags: <defaults>
</compile_context>

<pallas_src>
import jax
import jax.numpy as jnp
from jax.experimental import pallas as pl
from jax.experimental.pallas import tpu as pltpu

CH = 32   # channels (fixed by the module)
K = 7     # kernel size
PAD = 3   # padding


def _pick_ht(H, target_rows):
    """Largest divisor of H that is <= target_rows (falls back to 1)."""
    best = 1
    for t in range(1, H + 1):
        if H % t == 0 and t <= target_rows:
            best = t
    return best


def repeatblock_forward(x_nchw, weight, bias, *, ht_rows=32):
    """x_nchw: (B, 32, H, W); weight: (32, 32, 7, 7) [PyTorch OIHW]; bias: (32,)."""
    B, C, H, W = x_nchw.shape
    assert C == CH

    Wp = W + 2 * PAD              # padded width (row stride of the flat image)
    Ht = _pick_ht(H, ht_rows)     # output rows per grid step
    nH = H // Ht
    Ntile = Ht * Wp               # "wide" output columns per tile (W valid + 6 junk/row)
    Lin = (Ht + K) * Wp           # flat slab per tile: Ht+6 halo rows + 1 slack row, so the
                                  # widest read (kh=6, kw=6): 6*Wp + 6 + Ntile - 1 <= Lin - 1
                                  # holds for any Wp >= 6.  Junk wide-columns are sliced off
                                  # in the wrapper (sole consumer of the wide output).

    # Pad spatially (H by (3,4) -> extra slack row, W by (3,3)), cast matmul operand
    # to bf16, flatten spatial dims.  Stays channel-major (CHW) -> no transposes.
    x_pad = jnp.pad(x_nchw, ((0, 0), (0, 0), (PAD, PAD + 1), (PAD, PAD)))
    x_flat = x_pad.astype(jnp.bfloat16).reshape(B, C, (H + K) * Wp)

    # Overlapping halo tiles: tile h covers padded rows [h*Ht, h*Ht + Ht + 7).
    x_tiles = jnp.stack(
        [x_flat[:, :, h * Ht * Wp: h * Ht * Wp + Lin] for h in range(nH)], axis=1)
    # x_tiles: (B, nH, C, Lin)

    # OIHW -> (K, Cout, K*Cin):  w_r[kh, co, kw*Cin + ci] = weight[co, ci, kh, kw]
    w_r = jnp.transpose(weight, (2, 0, 3, 1)).reshape(K, C, K * C).astype(jnp.bfloat16)
    b_r = bias.reshape(C, 1).astype(jnp.float32)

    out_dtype = x_nchw.dtype      # accumulation is always f32; output follows input dtype

    def conv_relu_kernel(x_ref, w_ref, b_ref, o_ref, patch_ref):
        # x_ref:     (C, Lin)      bf16  flat padded halo tile (row stride Wp)
        # w_ref:     (K, C, K*C)   bf16  per-kh weight slabs (VMEM-resident: constant index_map)
        # b_ref:     (C, 1)        f32
        # o_ref:     (C, Ntile)    out   "wide" conv output tile
        # patch_ref: (K*C, Ntile)  bf16  reused per-kh patch scratch
        # Accumulator initialized with the broadcast bias (hoisted once per step).
        acc = jnp.broadcast_to(b_ref[...], (C, Ntile)).astype(jnp.float32)
        for kh in range(K):
            base = kh * Wp
            # Fold the 7 kw taps into the contraction dim: one 224-deep matmul per kh.
            # Writing the shifted slices into one reused scratch keeps exactly one
            # patch live (no concat temporaries).
            for kw in range(K):
                patch_ref[kw * C:(kw + 1) * C, :] = \
                    x_ref[:, base + kw: base + kw + Ntile]
            acc = acc + jax.lax.dot_general(
                w_ref[kh], patch_ref[...],           # (C, K*C) @ (K*C, Ntile)
                dimension_numbers=(((1,), (0,)), ((), ())),
                preferred_element_type=jnp.float32)
        o_ref[...] = jnp.maximum(acc, 0.0).astype(o_ref.dtype)

    # VMEM budget: double-buffered in/out/weight blocks + patch scratch + accumulator,
    # with 2x headroom, clamped to [32 MiB, 64 MiB] (>= default scoped limits,
    # <= v7x physical VMEM).
    out_isz = jnp.dtype(out_dtype).itemsize
    est = (2 * C * Lin * 2 + 2 * C * Ntile * out_isz + 2 * K * C * K * C * 2
           + K * C * Ntile * 2 + C * Ntile * 4 + C * 4)
    vmem_limit = int(min(64 * 2**20, max(32 * 2**20, 2 * est)))

    cost = pl.CostEstimate(
        flops=2 * B * H * W * C * C * K * K,
        transcendentals=0,
        bytes_accessed=(x_nchw.size * x_nchw.dtype.itemsize
                        + B * C * H * W * out_isz + K * K * C * C * 2))

    out_tiles = pl.pallas_call(
        conv_relu_kernel,
        out_shape=jax.ShapeDtypeStruct((B, nH, C, Ntile), out_dtype),
        grid_spec=pltpu.PrefetchScalarGridSpec(
            num_scalar_prefetch=0,
            grid=(B, nH),
            in_specs=[
                pl.BlockSpec((None, None, C, Lin), lambda b, h: (b, h, 0, 0)),
                pl.BlockSpec((K, C, K * C), lambda b, h: (0, 0, 0)),
                pl.BlockSpec((C, 1), lambda b, h: (0, 0)),
            ],
            out_specs=pl.BlockSpec((None, None, C, Ntile), lambda b, h: (b, h, 0, 0)),
            scratch_shapes=[pltpu.VMEM((K * C, Ntile), jnp.bfloat16)],
        ),
        compiler_params=pltpu.CompilerParams(
            dimension_semantics=("parallel", "parallel"),
            vmem_limit_bytes=vmem_limit),
        cost_estimate=cost,
    )(x_tiles, w_r, b_r)

    # (B, nH, C, Ht*Wp) -> (B, C, H, W): fold tiles back and drop the 6 throwaway
    # columns per row (single fused XLA transpose+slice; the wrapper is the only
    # consumer of the wide output, so junk columns never escape).
    out = out_tiles.reshape(B, nH, C, Ht, Wp)
    out = jnp.transpose(out, (0, 2, 1, 3, 4)).reshape(B, C, H, Wp)
    return out[:, :, :, :W]


def reference_forward(x_nchw, weight, bias):
    y = jax.lax.conv_general_dilated(
        x_nchw, weight,
        window_strides=(1, 1),
        padding=((PAD, PAD), (PAD, PAD)),
        dimension_numbers=("NCHW", "OIHW", "NCHW"),
    )
    return jnp.maximum(y + bias[None, :, None, None], 0.0)


if __name__ == "__main__":
    key = jax.random.PRNGKey(0)
    kx1, kx2, kw_, kb = jax.random.split(key, 4)

    # Deterministic synthetic parameters (shapes from Conv2d(32, 32, 7, 7, bias=True)).
    fan_in = CH * K * K
    bound = 1.0 / (fan_in ** 0.5)
    weight = jax.random.uniform(kw_, (CH, CH, K, K), jnp.float32, -bound, bound)
    bias = jax.random.uniform(kb, (CH,), jnp.float32, -bound, bound)

    # Case 1: (2, 32, 16, 16) — single H tile per image.
    x1 = jax.random.normal(kx1, (2, CH, 16, 16), dtype=jnp.float32)
    out1 = jax.block_until_ready(repeatblock_forward(x1, weight, bias))
    ref1 = jax.block_until_ready(reference_forward(x1, weight, bias))
    assert out1.shape == ref1.shape
    # bf16 matmul operands (f32 accumulation) -> slightly loose tolerance.
    assert jnp.allclose(out1, ref1, atol=2e-2, rtol=2e-2), "case1 mismatch vs reference"

    # Case 2: same inputs, forced H-tiling (Ht=8 -> 2 halo tiles per image).
    out2 = jax.block_until_ready(repeatblock_forward(x1, weight, bias, ht_rows=8))
    assert jnp.allclose(out2, ref1, atol=2e-2, rtol=2e-2), "case2 (H-tiled) mismatch"

    # Case 3: non-square, non-multiple-of-8/128 spatial shape.
    x3 = jax.random.normal(kx2, (1, CH, 13, 21), dtype=jnp.float32)
    out3 = jax.block_until_ready(repeatblock_forward(x3, weight, bias))
    ref3 = jax.block_until_ready(reference_forward(x3, weight, bias))
    assert jnp.allclose(out3, ref3, atol=2e-2, rtol=2e-2), "case3 mismatch vs reference"

    print("KERNEL_OK")
</pallas_src>

<mosaic_0001>
module attributes {stable_mosaic.version = 11 : i64} {
  func.func @conv_relu_kernel(%arg0: i32, %arg1: i32, %arg2: memref<1x1x32x506xbf16, #tpu.memory_space<vmem>>, %arg3: memref<7x32x224xbf16, #tpu.memory_space<vmem>>, %arg4: memref<32x1xf32, #tpu.memory_space<vmem>>, %arg5: memref<1x1x32x352xf32, #tpu.memory_space<vmem>>, %arg6: memref<224x352xbf16, #tpu.memory_space<vmem>>) attributes {dimension_semantics = [#tpu.dimension_semantics<parallel>, #tpu.dimension_semantics<parallel>], iteration_bounds = array<i64: 2, 1>, scalar_prefetch = 0 : i64, scratch_operands = 1 : i64, tpu.core_type = #tpu.core_type<tc>, window_params = [{transform_indices = @transform_0, window_bounds = array<i64: 1, 1, 32, 506>}, {pipeline_mode = #tpu.pipeline_mode<synchronous>, transform_indices = @transform_1, window_bounds = array<i64: 7, 32, 224>}, {pipeline_mode = #tpu.pipeline_mode<synchronous>, transform_indices = @transform_2, window_bounds = array<i64: 32, 1>}, {transform_indices = @transform_3, window_bounds = array<i64: 1, 1, 32, 352>}]} {
    %c0 = arith.constant 0 : index
    %c0_0 = arith.constant 0 : index
    %0 = vector.load %arg4[%c0, %c0_0] : memref<32x1xf32, #tpu.memory_space<vmem>>, vector<32x1xf32>
    %1 = vector.shape_cast %0 : vector<32x1xf32> to vector<32x1xf32>
    %2 = vector.broadcast %1 : vector<32x1xf32> to vector<32x352xf32>
    %c0_1 = arith.constant 0 : index
    %c0_2 = arith.constant 0 : index
    %c0_3 = arith.constant 0 : index
    %c0_4 = arith.constant 0 : index
    %3 = vector.load %arg2[%c0_1, %c0_2, %c0_3, %c0_4] : memref<1x1x32x506xbf16, #tpu.memory_space<vmem>>, vector<1x1x32x352xbf16>
    %4 = vector.shape_cast %3 : vector<1x1x32x352xbf16> to vector<32x352xbf16>
    %c0_5 = arith.constant 0 : index
    %c0_6 = arith.constant 0 : index
    %5 = vector.load %arg6[%c0_5, %c0_6] : memref<224x352xbf16, #tpu.memory_space<vmem>>, vector<32x352xbf16>
    tpu.vector_store %arg6[%c0_5, %c0_6], %4 {strides = array<i32>} : memref<224x352xbf16, #tpu.memory_space<vmem>>, vector<32x352xbf16>,
    %c0_7 = arith.constant 0 : index
    %c0_8 = arith.constant 0 : index
    %c0_9 = arith.constant 0 : index
    %c1 = arith.constant 1 : index
    %6 = vector.load %arg2[%c0_7, %c0_8, %c0_9, %c1] : memref<1x1x32x506xbf16, #tpu.memory_space<vmem>>, vector<1x1x32x352xbf16>
    %7 = vector.shape_cast %6 : vector<1x1x32x352xbf16> to vector<32x352xbf16>
    %c32 = arith.constant 32 : index
    %c0_10 = arith.constant 0 : index
    %8 = vector.load %arg6[%c32, %c0_10] : memref<224x352xbf16, #tpu.memory_space<vmem>>, vector<32x352xbf16>
    tpu.vector_store %arg6[%c32, %c0_10], %7 {strides = array<i32>} : memref<224x352xbf16, #tpu.memory_space<vmem>>, vector<32x352xbf16>,
    %c0_11 = arith.constant 0 : index
    %c0_12 = arith.constant 0 : index
    %c0_13 = arith.constant 0 : index
    %c2 = arith.constant 2 : index
    %9 = vector.load %arg2[%c0_11, %c0_12, %c0_13, %c2] : memref<1x1x32x506xbf16, #tpu.memory_space<vmem>>, vector<1x1x32x352xbf16>
    %10 = vector.shape_cast %9 : vector<1x1x32x352xbf16> to vector<32x352xbf16>
    %c64 = arith.constant 64 : index
    %c0_14 = arith.constant 0 : index
    %11 = vector.load %arg6[%c64, %c0_14] : memref<224x352xbf16, #tpu.memory_space<vmem>>, vector<32x352xbf16>
    tpu.vector_store %arg6[%c64, %c0_14], %10 {strides = array<i32>} : memref<224x352xbf16, #tpu.memory_space<vmem>>, vector<32x352xbf16>,
    %c0_15 = arith.constant 0 : index
    %c0_16 = arith.constant 0 : index
    %c0_17 = arith.constant 0 : index
    %c3 = arith.constant 3 : index
    %12 = vector.load %arg2[%c0_15, %c0_16, %c0_17, %c3] : memref<1x1x32x506xbf16, #tpu.memory_space<vmem>>, vector<1x1x32x352xbf16>
    %13 = vector.shape_cast %12 : vector<1x1x32x352xbf16> to vector<32x352xbf16>
    %c96 = arith.constant 96 : index
    %c0_18 = arith.constant 0 : index
    %14 = vector.load %arg6[%c96, %c0_18] : memref<224x352xbf16, #tpu.memory_space<vmem>>, vector<32x352xbf16>
    tpu.vector_store %arg6[%c96, %c0_18], %13 {strides = array<i32>} : memref<224x352xbf16, #tpu.memory_space<vmem>>, vector<32x352xbf16>,
    %c0_19 = arith.constant 0 : index
    %c0_20 = arith.constant 0 : index
    %c0_21 = arith.constant 0 : index
    %c4 = arith.constant 4 : index
    %15 = vector.load %arg2[%c0_19, %c0_20, %c0_21, %c4] : memref<1x1x32x506xbf16, #tpu.memory_space<vmem>>, vector<1x1x32x352xbf16>
    %16 = vector.shape_cast %15 : vector<1x1x32x352xbf16> to vector<32x352xbf16>
    %c128 = arith.constant 128 : index
    %c0_22 = arith.constant 0 : index
    %17 = vector.load %arg6[%c128, %c0_22] : memref<224x352xbf16, #tpu.memory_space<vmem>>, vector<32x352xbf16>
    tpu.vector_store %arg6[%c128, %c0_22], %16 {strides = array<i32>} : memref<224x352xbf16, #tpu.memory_space<vmem>>, vector<32x352xbf16>,
    %c0_23 = arith.constant 0 : index
    %c0_24 = arith.constant 0 : index
    %c0_25 = arith.constant 0 : index
    %c5 = arith.constant 5 : index
    %18 = vector.load %arg2[%c0_23, %c0_24, %c0_25, %c5] : memref<1x1x32x506xbf16, #tpu.memory_space<vmem>>, vector<1x1x32x352xbf16>
    %19 = vector.shape_cast %18 : vector<1x1x32x352xbf16> to vector<32x352xbf16>
    %c160 = arith.constant 160 : index
    %c0_26 = arith.constant 0 : index
    %20 = vector.load %arg6[%c160, %c0_26] : memref<224x352xbf16, #tpu.memory_space<vmem>>, vector<32x352xbf16>
    tpu.vector_store %arg6[%c160, %c0_26], %19 {strides = array<i32>} : memref<224x352xbf16, #tpu.memory_space<vmem>>, vector<32x352xbf16>,
    %c0_27 = arith.constant 0 : index
    %c0_28 = arith.constant 0 : index
    %c0_29 = arith.constant 0 : index
    %c6 = arith.constant 6 : index
    %21 = vector.load %arg2[%c0_27, %c0_28, %c0_29, %c6] : memref<1x1x32x506xbf16, #tpu.memory_space<vmem>>, vector<1x1x32x352xbf16>
    %22 = vector.shape_cast %21 : vector<1x1x32x352xbf16> to vector<32x352xbf16>
    %c192 = arith.constant 192 : index
    %c0_30 = arith.constant 0 : index
    %23 = vector.load %arg6[%c192, %c0_30] : memref<224x352xbf16, #tpu.memory_space<vmem>>, vector<32x352xbf16>
    tpu.vector_store %arg6[%c192, %c0_30], %22 {strides = array<i32>} : memref<224x352xbf16, #tpu.memory_space<vmem>>, vector<32x352xbf16>,
    %c0_31 = arith.constant 0 : index
    %c0_32 = arith.constant 0 : index
    %c0_33 = arith.constant 0 : index
    %24 = vector.load %arg3[%c0_31, %c0_32, %c0_33] : memref<7x32x224xbf16, #tpu.memory_space<vmem>>, vector<1x32x224xbf16>
    %25 = vector.shape_cast %24 : vector<1x32x224xbf16> to vector<32x224xbf16>
    %c0_34 = arith.constant 0 : index
    %c0_35 = arith.constant 0 : index
    %26 = vector.load %arg6[%c0_34, %c0_35] : memref<224x352xbf16, #tpu.memory_space<vmem>>, vector<224x352xbf16>
    %cst = arith.constant dense<0.000000e+00> : vector<32x352xf32>
    %27 = tpu.matmul %25, %26, %cst {dimension_numbers = #tpu.dot_dimension_numbers<[1], [0], [0], [1], [0, 0, 1, 1], [], []>} : vector<32x224xbf16>, vector<224x352xbf16>, vector<32x352xf32> -> vector<32x352xf32>
    %28 = arith.addf %2, %27 : vector<32x352xf32>
    %c0_36 = arith.constant 0 : index
    %c0_37 = arith.constant 0 : index
    %c0_38 = arith.constant 0 : index
    %c22 = arith.constant 22 : index
    %29 = vector.load %arg2[%c0_36, %c0_37, %c0_38, %c22] : memref<1x1x32x506xbf16, #tpu.memory_space<vmem>>, vector<1x1x32x352xbf16>
    %30 = vector.shape_cast %29 : vector<1x1x32x352xbf16> to vector<32x352xbf16>
    %c0_39 = arith.constant 0 : index
    %c0_40 = arith.constant 0 : index
    %31 = vector.load %arg6[%c0_39, %c0_40] : memref<224x352xbf16, #tpu.memory_space<vmem>>, vector<32x352xbf16>
    tpu.vector_store %arg6[%c0_39, %c0_40], %30 {strides = array<i32>} : memref<224x352xbf16, #tpu.memory_space<vmem>>, vector<32x352xbf16>,
    %c0_41 = arith.constant 0 : index
    %c0_42 = arith.constant 0 : index
    %c0_43 = arith.constant 0 : index
    %c23 = arith.constant 23 : index
    %32 = vector.load %arg2[%c0_41, %c0_42, %c0_43, %c23] : memref<1x1x32x506xbf16, #tpu.memory_space<vmem>>, vector<1x1x32x352xbf16>
    %33 = vector.shape_cast %32 : vector<1x1x32x352xbf16> to vector<32x352xbf16>
    %c32_44 = arith.constant 32 : index
    %c0_45 = arith.constant 0 : index
    %34 = vector.load %arg6[%c32_44, %c0_45] : memref<224x352xbf16, #tpu.memory_space<vmem>>, vector<32x352xbf16>
    tpu.vector_store %arg6[%c32_44, %c0_45], %33 {strides = array<i32>} : memref<224x352xbf16, #tpu.memory_space<vmem>>, vector<32x352xbf16>,
    %c0_46 = arith.constant 0 : index
    %c0_47 = arith.constant 0 : index
    %c0_48 = arith.constant 0 : index
    %c24 = arith.constant 24 : index
    %35 = vector.load %arg2[%c0_46, %c0_47, %c0_48, %c24] : memref<1x1x32x506xbf16, #tpu.memory_space<vmem>>, vector<1x1x32x352xbf16>
    %36 = vector.shape_cast %35 : vector<1x1x32x352xbf16> to vector<32x352xbf16>
    %c64_49 = arith.constant 64 : index
    %c0_50 = arith.constant 0 : index
    %37 = vector.load %arg6[%c64_49, %c0_50] : memref<224x352xbf16, #tpu.memory_space<vmem>>, vector<32x352xbf16>
    tpu.vector_store %arg6[%c64_49, %c0_50], %36 {strides = array<i32>} : memref<224x352xbf16, #tpu.memory_space<vmem>>, vector<32x352xbf16>,
    %c0_51 = arith.constant 0 : index
    %c0_52 = arith.constant 0 : index
    %c0_53 = arith.constant 0 : index
    %c25 = arith.constant 25 : index
    %38 = vector.load %arg2[%c0_51, %c0_52, %c0_53, %c25] : memref<1x1x32x506xbf16, #tpu.memory_space<vmem>>, vector<1x1x32x352xbf16>
    %39 = vector.shape_cast %38 : vector<1x1x32x352xbf16> to vector<32x352xbf16>
    %c96_54 = arith.constant 96 : index
    %c0_55 = arith.constant 0 : index
    %40 = vector.load %arg6[%c96_54, %c0_55] : memref<224x352xbf16, #tpu.memory_space<vmem>>, vector<32x352xbf16>
    tpu.vector_store %arg6[%c96_54, %c0_55], %39 {strides = array<i32>} : memref<224x352xbf16, #tpu.memory_space<vmem>>, vector<32x352xbf16>,
    %c0_56 = arith.constant 0 : index
    %c0_57 = arith.constant 0 : index
    %c0_58 = arith.constant 0 : index
    %c26 = arith.constant 26 : index
    %41 = vector.load %arg2[%c0_56, %c0_57, %c0_58, %c26] : memref<1x1x32x506xbf16, #tpu.memory_space<vmem>>, vector<1x1x32x352xbf16>
    %42 = vector.shape_cast %41 : vector<1x1x32x352xbf16> to vector<32x352xbf16>
    %c128_59 = arith.constant 128 : index
    %c0_60 = arith.constant 0 : index
    %43 = vector.load %arg6[%c128_59, %c0_60] : memref<224x352xbf16, #tpu.memory_space<vmem>>, vector<32x352xbf16>
    tpu.vector_store %arg6[%c128_59, %c0_60], %42 {strides = array<i32>} : memref<224x352xbf16, #tpu.memory_space<vmem>>, vector<32x352xbf16>,
    %c0_61 = arith.constant 0 : index
    %c0_62 = arith.constant 0 : index
    %c0_63 = arith.constant 0 : index
    %c27 = arith.constant 27 : index
    %44 = vector.load %arg2[%c0_61, %c0_62, %c0_63, %c27] : memref<1x1x32x506xbf16, #tpu.memory_space<vmem>>, vector<1x1x32x352xbf16>
    %45 = vector.shape_cast %44 : vector<1x1x32x352xbf16> to vector<32x352xbf16>
    %c160_64 = arith.constant 160 : index
    %c0_65 = arith.constant 0 : index
    %46 = vector.load %arg6[%c160_64, %c0_65] : memref<224x352xbf16, #tpu.memory_space<vmem>>, vector<32x352xbf16>
    tpu.vector_store %arg6[%c160_64, %c0_65], %45 {strides = array<i32>} : memref<224x352xbf16, #tpu.memory_space<vmem>>, vector<32x352xbf16>,
    %c0_66 = arith.constant 0 : index
    %c0_67 = arith.constant 0 : index
    %c0_68 = arith.constant 0 : index
    %c28 = arith.constant 28 : index
    %47 = vector.load %arg2[%c0_66, %c0_67, %c0_68, %c28] : memref<1x1x32x506xbf16, #tpu.memory_space<vmem>>, vector<1x1x32x352xbf16>
    %48 = vector.shape_cast %47 : vector<1x1x32x352xbf16> to vector<32x352xbf16>
    %c192_69 = arith.constant 192 : index
    %c0_70 = arith.constant 0 : index
    %49 = vector.load %arg6[%c192_69, %c0_70] : memref<224x352xbf16, #tpu.memory_space<vmem>>, vector<32x352xbf16>
    tpu.vector_store %arg6[%c192_69, %c0_70], %48 {strides = array<i32>} : memref<224x352xbf16, #tpu.memory_space<vmem>>, vector<32x352xbf16>,
    %c1_71 = arith.constant 1 : index
    %c0_72 = arith.constant 0 : index
    %c0_73 = arith.constant 0 : index
    %50 = vector.load %arg3[%c1_71, %c0_72, %c0_73] : memref<7x32x224xbf16, #tpu.memory_space<vmem>>, vector<1x32x224xbf16>
    %51 = vector.shape_cast %50 : vector<1x32x224xbf16> to vector<32x224xbf16>
    %c0_74 = arith.constant 0 : index
    %c0_75 = arith.constant 0 : index
    %52 = vector.load %arg6[%c0_74, %c0_75] : memref<224x352xbf16, #tpu.memory_space<vmem>>, vector<224x352xbf16>
    %cst_76 = arith.constant dense<0.000000e+00> : vector<32x352xf32>
    %53 = tpu.matmul %51, %52, %cst_76 {dimension_numbers = #tpu.dot_dimension_numbers<[1], [0], [0], [1], [0, 0, 1, 1], [], []>} : vector<32x224xbf16>, vector<224x352xbf16>, vector<32x352xf32> -> vector<32x352xf32>
    %54 = arith.addf %28, %53 : vector<32x352xf32>
    %c0_77 = arith.constant 0 : index
    %c0_78 = arith.constant 0 : index
    %c0_79 = arith.constant 0 : index
    %c44 = arith.constant 44 : index
    %55 = vector.load %arg2[%c0_77, %c0_78, %c0_79, %c44] : memref<1x1x32x506xbf16, #tpu.memory_space<vmem>>, vector<1x1x32x352xbf16>
    %56 = vector.shape_cast %55 : vector<1x1x32x352xbf16> to vector<32x352xbf16>
    %c0_80 = arith.constant 0 : index
    %c0_81 = arith.constant 0 : index
    %57 = vector.load %arg6[%c0_80, %c0_81] : memref<224x352xbf16, #tpu.memory_space<vmem>>, vector<32x352xbf16>
    tpu.vector_store %arg6[%c0_80, %c0_81], %56 {strides = array<i32>} : memref<224x352xbf16, #tpu.memory_space<vmem>>, vector<32x352xbf16>,
    %c0_82 = arith.constant 0 : index
    %c0_83 = arith.constant 0 : index
    %c0_84 = arith.constant 0 : index
    %c45 = arith.constant 45 : index
    %58 = vector.load %arg2[%c0_82, %c0_83, %c0_84, %c45] : memref<1x1x32x506xbf16, #tpu.memory_space<vmem>>, vector<1x1x32x352xbf16>
    %59 = vector.shape_cast %58 : vector<1x1x32x352xbf16> to vector<32x352xbf16>
    %c32_85 = arith.constant 32 : index
    %c0_86 = arith.constant 0 : index
    %60 = vector.load %arg6[%c32_85, %c0_86] : memref<224x352xbf16, #tpu.memory_space<vmem>>, vector<32x352xbf16>
    tpu.vector_store %arg6[%c32_85, %c0_86], %59 {strides = array<i32>} : memref<224x352xbf16, #tpu.memory_space<vmem>>, vector<32x352xbf16>,
    %c0_87 = arith.constant 0 : index
    %c0_88 = arith.constant 0 : index
    %c0_89 = arith.constant 0 : index
    %c46 = arith.constant 46 : index
    %61 = vector.load %arg2[%c0_87, %c0_88, %c0_89, %c46] : memref<1x1x32x506xbf16, #tpu.memory_space<vmem>>, vector<1x1x32x352xbf16>
    %62 = vector.shape_cast %61 : vector<1x1x32x352xbf16> to vector<32x352xbf16>
    %c64_90 = arith.constant 64 : index
    %c0_91 = arith.constant 0 : index
    %63 = vector.load %arg6[%c64_90, %c0_91] : memref<224x352xbf16, #tpu.memory_space<vmem>>, vector<32x352xbf16>
    tpu.vector_store %arg6[%c64_90, %c0_91], %62 {strides = array<i32>} : memref<224x352xbf16, #tpu.memory_space<vmem>>, vector<32x352xbf16>,
    %c0_92 = arith.constant 0 : index
    %c0_93 = arith.constant 0 : index
    %c0_94 = arith.constant 0 : index
    %c47 = arith.constant 47 : index
    %64 = vector.load %arg2[%c0_92, %c0_93, %c0_94, %c47] : memref<1x1x32x506xbf16, #tpu.memory_space<vmem>>, vector<1x1x32x352xbf16>
    %65 = vector.shape_cast %64 : vector<1x1x32x352xbf16> to vector<32x352xbf16>
    %c96_95 = arith.constant 96 : index
    %c0_96 = arith.constant 0 : index
    %66 = vector.load %arg6[%c96_95, %c0_96] : memref<224x352xbf16, #tpu.memory_space<vmem>>, vector<32x352xbf16>
    tpu.vector_store %arg6[%c96_95, %c0_96], %65 {strides = array<i32>} : memref<224x352xbf16, #tpu.memory_space<vmem>>, vector<32x352xbf16>,
    %c0_97 = arith.constant 0 : index
    %c0_98 = arith.constant 0 : index
    %c0_99 = arith.constant 0 : index
    %c48 = arith.constant 48 : index
    %67 = vector.load %arg2[%c0_97, %c0_98, %c0_99, %c48] : memref<1x1x32x506xbf16, #tpu.memory_space<vmem>>, vector<1x1x32x352xbf16>
    %68 = vector.shape_cast %67 : vector<1x1x32x352xbf16> to vector<32x352xbf16>
    %c128_100 = arith.constant 128 : index
    %c0_101 = arith.constant 0 : index
    %69 = vector.load %arg6[%c128_100, %c0_101] : memref<224x352xbf16, #tpu.memory_space<vmem>>, vector<32x352xbf16>
    tpu.vector_store %arg6[%c128_100, %c0_101], %68 {strides = array<i32>} : memref<224x352xbf16, #tpu.memory_space<vmem>>, vector<32x352xbf16>,
    %c0_102 = arith.constant 0 : index
    %c0_103 = arith.constant 0 : index
    %c0_104 = arith.constant 0 : index
    %c49 = arith.constant 49 : index
    %70 = vector.load %arg2[%c0_102, %c0_103, %c0_104, %c49] : memref<1x1x32x506xbf16, #tpu.memory_space<vmem>>, vector<1x1x32x352xbf16>
    %71 = vector.shape_cast %70 : vector<1x1x32x352xbf16> to vector<32x352xbf16>
    %c160_105 = arith.constant 160 : index
    %c0_106 = arith.constant 0 : index
    %72 = vector.load %arg6[%c160_105, %c0_106] : memref<224x352xbf16, #tpu.memory_space<vmem>>, vector<32x352xbf16>
    tpu.vector_store %arg6[%c160_105, %c0_106], %71 {strides = array<i32>} : memref<224x352xbf16, #tpu.memory_space<vmem>>, vector<32x352xbf16>,
    %c0_107 = arith.constant 0 : index
    %c0_108 = arith.constant 0 : index
    %c0_109 = arith.constant 0 : index
    %c50 = arith.constant 50 : index
    %73 = vector.load %arg2[%c0_107, %c0_108, %c0_109, %c50] : memref<1x1x32x506xbf16, #tpu.memory_space<vmem>>, vector<1x1x32x352xbf16>
    %74 = vector.shape_cast %73 : vector<1x1x32x352xbf16> to vector<32x352xbf16>
    %c192_110 = arith.constant 192 : index
    %c0_111 = arith.constant 0 : index
    %75 = vector.load %arg6[%c192_110, %c0_111] : memref<224x352xbf16, #tpu.memory_space<vmem>>, vector<32x352xbf16>
    tpu.vector_store %arg6[%c192_110, %c0_111], %74 {strides = array<i32>} : memref<224x352xbf16, #tpu.memory_space<vmem>>, vector<32x352xbf16>,
    %c2_112 = arith.constant 2 : index
    %c0_113 = arith.constant 0 : index
    %c0_114 = arith.constant 0 : index
    %76 = vector.load %arg3[%c2_112, %c0_113, %c0_114] : memref<7x32x224xbf16, #tpu.memory_space<vmem>>, vector<1x32x224xbf16>
    %77 = vector.shape_cast %76 : vector<1x32x224xbf16> to vector<32x224xbf16>
    %c0_115 = arith.constant 0 : index
    %c0_116 = arith.constant 0 : index
    %78 = vector.load %arg6[%c0_115, %c0_116] : memref<224x352xbf16, #tpu.memory_space<vmem>>, vector<224x352xbf16>
    %cst_117 = arith.constant dense<0.000000e+00> : vector<32x352xf32>
    %79 = tpu.matmul %77, %78, %cst_117 {dimension_numbers = #tpu.dot_dimension_numbers<[1], [0], [0], [1], [0, 0, 1, 1], [], []>} : vector<32x224xbf16>, vector<224x352xbf16>, vector<32x352xf32> -> vector<32x352xf32>
    %80 = arith.addf %54, %79 : vector<32x352xf32>
    %c0_118 = arith.constant 0 : index
    %c0_119 = arith.constant 0 : index
    %c0_120 = arith.constant 0 : index
    %c66 = arith.constant 66 : index
    %81 = vector.load %arg2[%c0_118, %c0_119, %c0_120, %c66] : memref<1x1x32x506xbf16, #tpu.memory_space<vmem>>, vector<1x1x32x352xbf16>
    %82 = vector.shape_cast %81 : vector<1x1x32x352xbf16> to vector<32x352xbf16>
    %c0_121 = arith.constant 0 : index
    %c0_122 = arith.constant 0 : index
    %83 = vector.load %arg6[%c0_121, %c0_122] : memref<224x352xbf16, #tpu.memory_space<vmem>>, vector<32x352xbf16>
    tpu.vector_store %arg6[%c0_121, %c0_122], %82 {strides = array<i32>} : memref<224x352xbf16, #tpu.memory_space<vmem>>, vector<32x352xbf16>,
    %c0_123 = arith.constant 0 : index
    %c0_124 = arith.constant 0 : index
    %c0_125 = arith.constant 0 : index
    %c67 = arith.constant 67 : index
    %84 = vector.load %arg2[%c0_123, %c0_124, %c0_125, %c67] : memref<1x1x32x506xbf16, #tpu.memory_space<vmem>>, vector<1x1x32x352xbf16>
    %85 = vector.shape_cast %84 : vector<1x1x32x352xbf16> to vector<32x352xbf16>
    %c32_126 = arith.constant 32 : index
    %c0_127 = arith.constant 0 : index
    %86 = vector.load %arg6[%c32_126, %c0_127] : memref<224x352xbf16, #tpu.memory_space<vmem>>, vector<32x352xbf16>
    tpu.vector_store %arg6[%c32_126, %c0_127], %85 {strides = array<i32>} : memref<224x352xbf16, #tpu.memory_space<vmem>>, vector<32x352xbf16>,
    %c0_128 = arith.constant 0 : index
    %c0_129 = arith.constant 0 : index
    %c0_130 = arith.constant 0 : index
    %c68 = arith.constant 68 : index
    %87 = vector.load %arg2[%c0_128, %c0_129, %c0_130, %c68] : memref<1x1x32x506xbf16, #tpu.memory_space<vmem>>, vector<1x1x32x352xbf16>
    %88 = vector.shape_cast %87 : vector<1x1x32x352xbf16> to vector<32x352xbf16>
    %c64_131 = arith.constant 64 : index
    %c0_132 = arith.constant 0 : index
    %89 = vector.load %arg6[%c64_131, %c0_132] : memref<224x352xbf16, #tpu.memory_space<vmem>>, vector<32x352xbf16>
    tpu.vector_store %arg6[%c64_131, %c0_132], %88 {strides = array<i32>} : memref<224x352xbf16, #tpu.memory_space<vmem>>, vector<32x352xbf16>,
    %c0_133 = arith.constant 0 : index
    %c0_134 = arith.constant 0 : index
    %c0_135 = arith.constant 0 : index
    %c69 = arith.constant 69 : index
    %90 = vector.load %arg2[%c0_133, %c0_134, %c0_135, %c69] : memref<1x1x32x506xbf16, #tpu.memory_space<vmem>>, vector<1x1x32x352xbf16>
    %91 = vector.shape_cast %90 : vector<1x1x32x352xbf16> to vector<32x352xbf16>
    %c96_136 = arith.constant 96 : index
    %c0_137 = arith.constant 0 : index
    %92 = vector.load %arg6[%c96_136, %c0_137] : memref<224x352xbf16, #tpu.memory_space<vmem>>, vector<32x352xbf16>
    tpu.vector_store %arg6[%c96_136, %c0_137], %91 {strides = array<i32>} : memref<224x352xbf16, #tpu.memory_space<vmem>>, vector<32x352xbf16>,
    %c0_138 = arith.constant 0 : index
    %c0_139 = arith.constant 0 : index
    %c0_140 = arith.constant 0 : index
    %c70 = arith.constant 70 : index
    %93 = vector.load %arg2[%c0_138, %c0_139, %c0_140, %c70] : memref<1x1x32x506xbf16, #tpu.memory_space<vmem>>, vector<1x1x32x352xbf16>
    %94 = vector.shape_cast %93 : vector<1x1x32x352xbf16> to vector<32x352xbf16>
    %c128_141 = arith.constant 128 : index
    %c0_142 = arith.constant 0 : index
    %95 = vector.load %arg6[%c128_141, %c0_142] : memref<224x352xbf16, #tpu.memory_space<vmem>>, vector<32x352xbf16>
    tpu.vector_store %arg6[%c128_141, %c0_142], %94 {strides = array<i32>} : memref<224x352xbf16, #tpu.memory_space<vmem>>, vector<32x352xbf16>,
    %c0_143 = arith.constant 0 : index
    %c0_144 = arith.constant 0 : index
    %c0_145 = arith.constant 0 : index
    %c71 = arith.constant 71 : index
    %96 = vector.load %arg2[%c0_143, %c0_144, %c0_145, %c71] : memref<1x1x32x506xbf16, #tpu.memory_space<vmem>>, vector<1x1x32x352xbf16>
    %97 = vector.shape_cast %96 : vector<1x1x32x352xbf16> to vector<32x352xbf16>
    %c160_146 = arith.constant 160 : index
    %c0_147 = arith.constant 0 : index
    %98 = vector.load %arg6[%c160_146, %c0_147] : memref<224x352xbf16, #tpu.memory_space<vmem>>, vector<32x352xbf16>
    tpu.vector_store %arg6[%c160_146, %c0_147], %97 {strides = array<i32>} : memref<224x352xbf16, #tpu.memory_space<vmem>>, vector<32x352xbf16>,
    %c0_148 = arith.constant 0 : index
    %c0_149 = arith.constant 0 : index
    %c0_150 = arith.constant 0 : index
    %c72 = arith.constant 72 : index
    %99 = vector.load %arg2[%c0_148, %c0_149, %c0_150, %c72] : memref<1x1x32x506xbf16, #tpu.memory_space<vmem>>, vector<1x1x32x352xbf16>
    %100 = vector.shape_cast %99 : vector<1x1x32x352xbf16> to vector<32x352xbf16>
    %c192_151 = arith.constant 192 : index
    %c0_152 = arith.constant 0 : index
    %101 = vector.load %arg6[%c192_151, %c0_152] : memref<224x352xbf16, #tpu.memory_space<vmem>>, vector<32x352xbf16>
    tpu.vector_store %arg6[%c192_151, %c0_152], %100 {strides = array<i32>} : memref<224x352xbf16, #tpu.memory_space<vmem>>, vector<32x352xbf16>,
    %c3_153 = arith.constant 3 : index
    %c0_154 = arith.constant 0 : index
    %c0_155 = arith.constant 0 : index
    %102 = vector.load %arg3[%c3_153, %c0_154, %c0_155] : memref<7x32x224xbf16, #tpu.memory_space<vmem>>, vector<1x32x224xbf16>
    %103 = vector.shape_cast %102 : vector<1x32x224xbf16> to vector<32x224xbf16>
    %c0_156 = arith.constant 0 : index
    %c0_157 = arith.constant 0 : index
    %104 = vector.load %arg6[%c0_156, %c0_157] : memref<224x352xbf16, #tpu.memory_space<vmem>>, vector<224x352xbf16>
    %cst_158 = arith.constant dense<0.000000e+00> : vector<32x352xf32>
    %105 = tpu.matmul %103, %104, %cst_158 {dimension_numbers = #tpu.dot_dimension_numbers<[1], [0], [0], [1], [0, 0, 1, 1], [], []>} : vector<32x224xbf16>, vector<224x352xbf16>, vector<32x352xf32> -> vector<32x352xf32>
    %106 = arith.addf %80, %105 : vector<32x352xf32>
    %c0_159 = arith.constant 0 : index
    %c0_160 = arith.constant 0 : index
    %c0_161 = arith.constant 0 : index
    %c88 = arith.constant 88 : index
    %107 = vector.load %arg2[%c0_159, %c0_160, %c0_161, %c88] : memref<1x1x32x506xbf16, #tpu.memory_space<vmem>>, vector<1x1x32x352xbf16>
    %108 = vector.shape_cast %107 : vector<1x1x32x352xbf16> to vector<32x352xbf16>
    %c0_162 = arith.constant 0 : index
    %c0_163 = arith.constant 0 : index
    %109 = vector.load %arg6[%c0_162, %c0_163] : memref<224x352xbf16, #tpu.memory_space<vmem>>, vector<32x352xbf16>
    tpu.vector_store %arg6[%c0_162, %c0_163], %108 {strides = array<i32>} : memref<224x352xbf16, #tpu.memory_space<vmem>>, vector<32x352xbf16>,
    %c0_164 = arith.constant 0 : index
    %c0_165 = arith.constant 0 : index
    %c0_166 = arith.constant 0 : index
    %c89 = arith.constant 89 : index
    %110 = vector.load %arg2[%c0_164, %c0_165, %c0_166, %c89] : memref<1x1x32x506xbf16, #tpu.memory_space<vmem>>, vector<1x1x32x352xbf16>
    %111 = vector.shape_cast %110 : vector<1x1x32x352xbf16> to vector<32x352xbf16>
    %c32_167 = arith.constant 32 : index
    %c0_168 = arith.constant 0 : index
    %112 = vector.load %arg6[%c32_167, %c0_168] : memref<224x352xbf16, #tpu.memory_space<vmem>>, vector<32x352xbf16>
    tpu.vector_store %arg6[%c32_167, %c0_168], %111 {strides = array<i32>} : memref<224x352xbf16, #tpu.memory_space<vmem>>, vector<32x352xbf16>,
    %c0_169 = arith.constant 0 : index
    %c0_170 = arith.constant 0 : index
    %c0_171 = arith.constant 0 : index
    %c90 = arith.constant 90 : index
    %113 = vector.load %arg2[%c0_169, %c0_170, %c0_171, %c90] : memref<1x1x32x506xbf16, #tpu.memory_space<vmem>>, vector<1x1x32x352xbf16>
    %114 = vector.shape_cast %113 : vector<1x1x32x352xbf16> to vector<32x352xbf16>
    %c64_172 = arith.constant 64 : index
    %c0_173 = arith.constant 0 : index
    %115 = vector.load %arg6[%c64_172, %c0_173] : memref<224x352xbf16, #tpu.memory_space<vmem>>, vector<32x352xbf16>
    tpu.vector_store %arg6[%c64_172, %c0_173], %114 {strides = array<i32>} : memref<224x352xbf16, #tpu.memory_space<vmem>>, vector<32x352xbf16>,
    %c0_174 = arith.constant 0 : index
    %c0_175 = arith.constant 0 : index
    %c0_176 = arith.constant 0 : index
    %c91 = arith.constant 91 : index
    %116 = vector.load %arg2[%c0_174, %c0_175, %c0_176, %c91] : memref<1x1x32x506xbf16, #tpu.memory_space<vmem>>, vector<1x1x32x352xbf16>
    %117 = vector.shape_cast %116 : vector<1x1x32x352xbf16> to vector<32x352xbf16>
    %c96_177 = arith.constant 96 : index
    %c0_178 = arith.constant 0 : index
    %118 = vector.load %arg6[%c96_177, %c0_178] : memref<224x352xbf16, #tpu.memory_space<vmem>>, vector<32x352xbf16>
    tpu.vector_store %arg6[%c96_177, %c0_178], %117 {strides = array<i32>} : memref<224x352xbf16, #tpu.memory_space<vmem>>, vector<32x352xbf16>,
    %c0_179 = arith.constant 0 : index
    %c0_180 = arith.constant 0 : index
    %c0_181 = arith.constant 0 : index
    %c92 = arith.constant 92 : index
    %119 = vector.load %arg2[%c0_179, %c0_180, %c0_181, %c92] : memref<1x1x32x506xbf16, #tpu.memory_space<vmem>>, vector<1x1x32x352xbf16>
    %120 = vector.shape_cast %119 : vector<1x1x32x352xbf16> to vector<32x352xbf16>
    %c128_182 = arith.constant 128 : index
    %c0_183 = arith.constant 0 : index
    %121 = vector.load %arg6[%c128_182, %c0_183] : memref<224x352xbf16, #tpu.memory_space<vmem>>, vector<32x352xbf16>
    tpu.vector_store %arg6[%c128_182, %c0_183], %120 {strides = array<i32>} : memref<224x352xbf16, #tpu.memory_space<vmem>>, vector<32x352xbf16>,
    %c0_184 = arith.constant 0 : index
    %c0_185 = arith.constant 0 : index
    %c0_186 = arith.constant 0 : index
    %c93 = arith.constant 93 : index
    %122 = vector.load %arg2[%c0_184, %c0_185, %c0_186, %c93] : memref<1x1x32x506xbf16, #tpu.memory_space<vmem>>, vector<1x1x32x352xbf16>
    %123 = vector.shape_cast %122 : vector<1x1x32x352xbf16> to vector<32x352xbf16>
    %c160_187 = arith.constant 160 : index
    %c0_188 = arith.constant 0 : index
    %124 = vector.load %arg6[%c160_187, %c0_188] : memref<224x352xbf16, #tpu.memory_space<vmem>>, vector<32x352xbf16>
    tpu.vector_store %arg6[%c160_187, %c0_188], %123 {strides = array<i32>} : memref<224x352xbf16, #tpu.memory_space<vmem>>, vector<32x352xbf16>,
    %c0_189 = arith.constant 0 : index
    %c0_190 = arith.constant 0 : index
    %c0_191 = arith.constant 0 : index
    %c94 = arith.constant 94 : index
    %125 = vector.load %arg2[%c0_189, %c0_190, %c0_191, %c94] : memref<1x1x32x506xbf16, #tpu.memory_space<vmem>>, vector<1x1x32x352xbf16>
    %126 = vector.shape_cast %125 : vector<1x1x32x352xbf16> to vector<32x352xbf16>
    %c192_192 = arith.constant 192 : index
    %c0_193 = arith.constant 0 : index
    %127 = vector.load %arg6[%c192_192, %c0_193] : memref<224x352xbf16, #tpu.memory_space<vmem>>, vector<32x352xbf16>
    tpu.vector_store %arg6[%c192_192, %c0_193], %126 {strides = array<i32>} : memref<224x352xbf16, #tpu.memory_space<vmem>>, vector<32x352xbf16>,
    %c4_194 = arith.constant 4 : index
    %c0_195 = arith.constant 0 : index
    %c0_196 = arith.constant 0 : index
    %128 = vector.load %arg3[%c4_194, %c0_195, %c0_196] : memref<7x32x224xbf16, #tpu.memory_space<vmem>>, vector<1x32x224xbf16>
    %129 = vector.shape_cast %128 : vector<1x32x224xbf16> to vector<32x224xbf16>
    %c0_197 = arith.constant 0 : index
    %c0_198 = arith.constant 0 : index
    %130 = vector.load %arg6[%c0_197, %c0_198] : memref<224x352xbf16, #tpu.memory_space<vmem>>, vector<224x352xbf16>
    %cst_199 = arith.constant dense<0.000000e+00> : vector<32x352xf32>
    %131 = tpu.matmul %129, %130, %cst_199 {dimension_numbers = #tpu.dot_dimension_numbers<[1], [0], [0], [1], [0, 0, 1, 1], [], []>} : vector<32x224xbf16>, vector<224x352xbf16>, vector<32x352xf32> -> vector<32x352xf32>
    %132 = arith.addf %106, %131 : vector<32x352xf32>
    %c0_200 = arith.constant 0 : index
    %c0_201 = arith.constant 0 : index
    %c0_202 = arith.constant 0 : index
    %c110 = arith.constant 110 : index
    %133 = vector.load %arg2[%c0_200, %c0_201, %c0_202, %c110] : memref<1x1x32x506xbf16, #tpu.memory_space<vmem>>, vector<1x1x32x352xbf16>
    %134 = vector.shape_cast %133 : vector<1x1x32x352xbf16> to vector<32x352xbf16>
    %c0_203 = arith.constant 0 : index
    %c0_204 = arith.constant 0 : index
    %135 = vector.load %arg6[%c0_203, %c0_204] : memref<224x352xbf16, #tpu.memory_space<vmem>>, vector<32x352xbf16>
    tpu.vector_store %arg6[%c0_203, %c0_204], %134 {strides = array<i32>} : memref<224x352xbf16, #tpu.memory_space<vmem>>, vector<32x352xbf16>,
    %c0_205 = arith.constant 0 : index
    %c0_206 = arith.constant 0 : index
    %c0_207 = arith.constant 0 : index
    %c111 = arith.constant 111 : index
    %136 = vector.load %arg2[%c0_205, %c0_206, %c0_207, %c111] : memref<1x1x32x506xbf16, #tpu.memory_space<vmem>>, vector<1x1x32x352xbf16>
    %137 = vector.shape_cast %136 : vector<1x1x32x352xbf16> to vector<32x352xbf16>
    %c32_208 = arith.constant 32 : index
    %c0_209 = arith.constant 0 : index
    %138 = vector.load %arg6[%c32_208, %c0_209] : memref<224x352xbf16, #tpu.memory_space<vmem>>, vector<32x352xbf16>
    tpu.vector_store %arg6[%c32_208, %c0_209], %137 {strides = array<i32>} : memref<224x352xbf16, #tpu.memory_space<vmem>>, vector<32x352xbf16>,
    %c0_210 = arith.constant 0 : index
    %c0_211 = arith.constant 0 : index
    %c0_212 = arith.constant 0 : index
    %c112 = arith.constant 112 : index
    %139 = vector.load %arg2[%c0_210, %c0_211, %c0_212, %c112] : memref<1x1x32x506xbf16, #tpu.memory_space<vmem>>, vector<1x1x32x352xbf16>
    %140 = vector.shape_cast %139 : vector<1x1x32x352xbf16> to vector<32x352xbf16>
    %c64_213 = arith.constant 64 : index
    %c0_214 = arith.constant 0 : index
    %141 = vector.load %arg6[%c64_213, %c0_214] : memref<224x352xbf16, #tpu.memory_space<vmem>>, vector<32x352xbf16>
    tpu.vector_store %arg6[%c64_213, %c0_214], %140 {strides = array<i32>} : memref<224x352xbf16, #tpu.memory_space<vmem>>, vector<32x352xbf16>,
    %c0_215 = arith.constant 0 : index
    %c0_216 = arith.constant 0 : index
    %c0_217 = arith.constant 0 : index
    %c113 = arith.constant 113 : index
    %142 = vector.load %arg2[%c0_215, %c0_216, %c0_217, %c113] : memref<1x1x32x506xbf16, #tpu.memory_space<vmem>>, vector<1x1x32x352xbf16>
    %143 = vector.shape_cast %142 : vector<1x1x32x352xbf16> to vector<32x352xbf16>
    %c96_218 = arith.constant 96 : index
    %c0_219 = arith.constant 0 : index
    %144 = vector.load %arg6[%c96_218, %c0_219] : memref<224x352xbf16, #tpu.memory_space<vmem>>, vector<32x352xbf16>
    tpu.vector_store %arg6[%c96_218, %c0_219], %143 {strides = array<i32>} : memref<224x352xbf16, #tpu.memory_space<vmem>>, vector<32x352xbf16>,
    %c0_220 = arith.constant 0 : index
    %c0_221 = arith.constant 0 : index
    %c0_222 = arith.constant 0 : index
    %c114 = arith.constant 114 : index
    %145 = vector.load %arg2[%c0_220, %c0_221, %c0_222, %c114] : memref<1x1x32x506xbf16, #tpu.memory_space<vmem>>, vector<1x1x32x352xbf16>
    %146 = vector.shape_cast %145 : vector<1x1x32x352xbf16> to vector<32x352xbf16>
    %c128_223 = arith.constant 128 : index
    %c0_224 = arith.constant 0 : index
    %147 = vector.load %arg6[%c128_223, %c0_224] : memref<224x352xbf16, #tpu.memory_space<vmem>>, vector<32x352xbf16>
    tpu.vector_store %arg6[%c128_223, %c0_224], %146 {strides = array<i32>} : memref<224x352xbf16, #tpu.memory_space<vmem>>, vector<32x352xbf16>,
    %c0_225 = arith.constant 0 : index
    %c0_226 = arith.constant 0 : index
    %c0_227 = arith.constant 0 : index
    %c115 = arith.constant 115 : index
    %148 = vector.load %arg2[%c0_225, %c0_226, %c0_227, %c115] : memref<1x1x32x506xbf16, #tpu.memory_space<vmem>>, vector<1x1x32x352xbf16>
    %149 = vector.shape_cast %148 : vector<1x1x32x352xbf16> to vector<32x352xbf16>
    %c160_228 = arith.constant 160 : index
    %c0_229 = arith.constant 0 : index
    %150 = vector.load %arg6[%c160_228, %c0_229] : memref<224x352xbf16, #tpu.memory_space<vmem>>, vector<32x352xbf16>
    tpu.vector_store %arg6[%c160_228, %c0_229], %149 {strides = array<i32>} : memref<224x352xbf16, #tpu.memory_space<vmem>>, vector<32x352xbf16>,
    %c0_230 = arith.constant 0 : index
    %c0_231 = arith.constant 0 : index
    %c0_232 = arith.constant 0 : index
    %c116 = arith.constant 116 : index
    %151 = vector.load %arg2[%c0_230, %c0_231, %c0_232, %c116] : memref<1x1x32x506xbf16, #tpu.memory_space<vmem>>, vector<1x1x32x352xbf16>
    %152 = vector.shape_cast %151 : vector<1x1x32x352xbf16> to vector<32x352xbf16>
    %c192_233 = arith.constant 192 : index
    %c0_234 = arith.constant 0 : index
    %153 = vector.load %arg6[%c192_233, %c0_234] : memref<224x352xbf16, #tpu.memory_space<vmem>>, vector<32x352xbf16>
    tpu.vector_store %arg6[%c192_233, %c0_234], %152 {strides = array<i32>} : memref<224x352xbf16, #tpu.memory_space<vmem>>, vector<32x352xbf16>,
    %c5_235 = arith.constant 5 : index
    %c0_236 = arith.constant 0 : index
    %c0_237 = arith.constant 0 : index
    %154 = vector.load %arg3[%c5_235, %c0_236, %c0_237] : memref<7x32x224xbf16, #tpu.memory_space<vmem>>, vector<1x32x224xbf16>
    %155 = vector.shape_cast %154 : vector<1x32x224xbf16> to vector<32x224xbf16>
    %c0_238 = arith.constant 0 : index
    %c0_239 = arith.constant 0 : index
    %156 = vector.load %arg6[%c0_238, %c0_239] : memref<224x352xbf16, #tpu.memory_space<vmem>>, vector<224x352xbf16>
    %cst_240 = arith.constant dense<0.000000e+00> : vector<32x352xf32>
    %157 = tpu.matmul %155, %156, %cst_240 {dimension_numbers = #tpu.dot_dimension_numbers<[1], [0], [0], [1], [0, 0, 1, 1], [], []>} : vector<32x224xbf16>, vector<224x352xbf16>, vector<32x352xf32> -> vector<32x352xf32>
    %158 = arith.addf %132, %157 : vector<32x352xf32>
    %c0_241 = arith.constant 0 : index
    %c0_242 = arith.constant 0 : index
    %c0_243 = arith.constant 0 : index
    %c132 = arith.constant 132 : index
    %159 = vector.load %arg2[%c0_241, %c0_242, %c0_243, %c132] : memref<1x1x32x506xbf16, #tpu.memory_space<vmem>>, vector<1x1x32x352xbf16>
    %160 = vector.shape_cast %159 : vector<1x1x32x352xbf16> to vector<32x352xbf16>
    %c0_244 = arith.constant 0 : index
    %c0_245 = arith.constant 0 : index
    %161 = vector.load %arg6[%c0_244, %c0_245] : memref<224x352xbf16, #tpu.memory_space<vmem>>, vector<32x352xbf16>
    tpu.vector_store %arg6[%c0_244, %c0_245], %160 {strides = array<i32>} : memref<224x352xbf16, #tpu.memory_space<vmem>>, vector<32x352xbf16>,
    %c0_246 = arith.constant 0 : index
    %c0_247 = arith.constant 0 : index
    %c0_248 = arith.constant 0 : index
    %c133 = arith.constant 133 : index
    %162 = vector.load %arg2[%c0_246, %c0_247, %c0_248, %c133] : memref<1x1x32x506xbf16, #tpu.memory_space<vmem>>, vector<1x1x32x352xbf16>
    %163 = vector.shape_cast %162 : vector<1x1x32x352xbf16> to vector<32x352xbf16>
    %c32_249 = arith.constant 32 : index
    %c0_250 = arith.constant 0 : index
    %164 = vector.load %arg6[%c32_249, %c0_250] : memref<224x352xbf16, #tpu.memory_space<vmem>>, vector<32x352xbf16>
    tpu.vector_store %arg6[%c32_249, %c0_250], %163 {strides = array<i32>} : memref<224x352xbf16, #tpu.memory_space<vmem>>, vector<32x352xbf16>,
    %c0_251 = arith.constant 0 : index
    %c0_252 = arith.constant 0 : index
    %c0_253 = arith.constant 0 : index
    %c134 = arith.constant 134 : index
    %165 = vector.load %arg2[%c0_251, %c0_252, %c0_253, %c134] : memref<1x1x32x506xbf16, #tpu.memory_space<vmem>>, vector<1x1x32x352xbf16>
    %166 = vector.shape_cast %165 : vector<1x1x32x352xbf16> to vector<32x352xbf16>
    %c64_254 = arith.constant 64 : index
    %c0_255 = arith.constant 0 : index
    %167 = vector.load %arg6[%c64_254, %c0_255] : memref<224x352xbf16, #tpu.memory_space<vmem>>, vector<32x352xbf16>
    tpu.vector_store %arg6[%c64_254, %c0_255], %166 {strides = array<i32>} : memref<224x352xbf16, #tpu.memory_space<vmem>>, vector<32x352xbf16>,
    %c0_256 = arith.constant 0 : index
    %c0_257 = arith.constant 0 : index
    %c0_258 = arith.constant 0 : index
    %c135 = arith.constant 135 : index
    %168 = vector.load %arg2[%c0_256, %c0_257, %c0_258, %c135] : memref<1x1x32x506xbf16, #tpu.memory_space<vmem>>, vector<1x1x32x352xbf16>
    %169 = vector.shape_cast %168 : vector<1x1x32x352xbf16> to vector<32x352xbf16>
    %c96_259 = arith.constant 96 : index
    %c0_260 = arith.constant 0 : index
    %170 = vector.load %arg6[%c96_259, %c0_260] : memref<224x352xbf16, #tpu.memory_space<vmem>>, vector<32x352xbf16>
    tpu.vector_store %arg6[%c96_259, %c0_260], %169 {strides = array<i32>} : memref<224x352xbf16, #tpu.memory_space<vmem>>, vector<32x352xbf16>,
    %c0_261 = arith.constant 0 : index
    %c0_262 = arith.constant 0 : index
    %c0_263 = arith.constant 0 : index
    %c136 = arith.constant 136 : index
    %171 = vector.load %arg2[%c0_261, %c0_262, %c0_263, %c136] : memref<1x1x32x506xbf16, #tpu.memory_space<vmem>>, vector<1x1x32x352xbf16>
    %172 = vector.shape_cast %171 : vector<1x1x32x352xbf16> to vector<32x352xbf16>
    %c128_264 = arith.constant 128 : index
    %c0_265 = arith.constant 0 : index
    %173 = vector.load %arg6[%c128_264, %c0_265] : memref<224x352xbf16, #tpu.memory_space<vmem>>, vector<32x352xbf16>
    tpu.vector_store %arg6[%c128_264, %c0_265], %172 {strides = array<i32>} : memref<224x352xbf16, #tpu.memory_space<vmem>>, vector<32x352xbf16>,
    %c0_266 = arith.constant 0 : index
    %c0_267 = arith.constant 0 : index
    %c0_268 = arith.constant 0 : index
    %c137 = arith.constant 137 : index
    %174 = vector.load %arg2[%c0_266, %c0_267, %c0_268, %c137] : memref<1x1x32x506xbf16, #tpu.memory_space<vmem>>, vector<1x1x32x352xbf16>
    %175 = vector.shape_cast %174 : vector<1x1x32x352xbf16> to vector<32x352xbf16>
    %c160_269 = arith.constant 160 : index
    %c0_270 = arith.constant 0 : index
    %176 = vector.load %arg6[%c160_269, %c0_270] : memref<224x352xbf16, #tpu.memory_space<vmem>>, vector<32x352xbf16>
    tpu.vector_store %arg6[%c160_269, %c0_270], %175 {strides = array<i32>} : memref<224x352xbf16, #tpu.memory_space<vmem>>, vector<32x352xbf16>,
    %c0_271 = arith.constant 0 : index
    %c0_272 = arith.constant 0 : index
    %c0_273 = arith.constant 0 : index
    %c138 = arith.constant 138 : index
    %177 = vector.load %arg2[%c0_271, %c0_272, %c0_273, %c138] : memref<1x1x32x506xbf16, #tpu.memory_space<vmem>>, vector<1x1x32x352xbf16>
    %178 = vector.shape_cast %177 : vector<1x1x32x352xbf16> to vector<32x352xbf16>
    %c192_274 = arith.constant 192 : index
    %c0_275 = arith.constant 0 : index
    %179 = vector.load %arg6[%c192_274, %c0_275] : memref<224x352xbf16, #tpu.memory_space<vmem>>, vector<32x352xbf16>
    tpu.vector_store %arg6[%c192_274, %c0_275], %178 {strides = array<i32>} : memref<224x352xbf16, #tpu.memory_space<vmem>>, vector<32x352xbf16>,
    %c6_276 = arith.constant 6 : index
    %c0_277 = arith.constant 0 : index
    %c0_278 = arith.constant 0 : index
    %180 = vector.load %arg3[%c6_276, %c0_277, %c0_278] : memref<7x32x224xbf16, #tpu.memory_space<vmem>>, vector<1x32x224xbf16>
    %181 = vector.shape_cast %180 : vector<1x32x224xbf16> to vector<32x224xbf16>
    %c0_279 = arith.constant 0 : index
    %c0_280 = arith.constant 0 : index
    %182 = vector.load %arg6[%c0_279, %c0_280] : memref<224x352xbf16, #tpu.memory_space<vmem>>, vector<224x352xbf16>
    %cst_281 = arith.constant dense<0.000000e+00> : vector<32x352xf32>
    %183 = tpu.matmul %181, %182, %cst_281 {dimension_numbers = #tpu.dot_dimension_numbers<[1], [0], [0], [1], [0, 0, 1, 1], [], []>} : vector<32x224xbf16>, vector<224x352xbf16>, vector<32x352xf32> -> vector<32x352xf32>
    %184 = arith.addf %158, %183 : vector<32x352xf32>
    %cst_282 = arith.constant 0.000000e+00 : f32
    %185 = vector.broadcast %cst_282 : f32 to vector<32x352xf32>
    %186 = arith.maximumf %184, %185 : vector<32x352xf32>
    %c0_283 = arith.constant 0 : index
    %c0_284 = arith.constant 0 : index
    %c0_285 = arith.constant 0 : index
    %c0_286 = arith.constant 0 : index
    %187 = vector.load %arg5[%c0_283, %c0_284, %c0_285, %c0_286] : memref<1x1x32x352xf32, #tpu.memory_space<vmem>>, vector<1x1x32x352xf32>
    %188 = vector.shape_cast %187 : vector<1x1x32x352xf32> to vector<32x352xf32>
    %189 = vector.shape_cast %186 : vector<32x352xf32> to vector<1x1x32x352xf32>
    tpu.vector_store %arg5[%c0_283, %c0_284, %c0_285, %c0_286], %189 {strides = array<i32>} : memref<1x1x32x352xf32, #tpu.memory_space<vmem>>, vector<1x1x32x352xf32>,
    return
  }
  func.func @transform_0(%arg0: i32, %arg1: i32) -> (i32, i32, i32, i32) {
    %c0_i32 = arith.constant 0 : i32
    %c0_i32_0 = arith.constant 0 : i32
    %c0_i32_1 = arith.constant 0 : i32
    return %arg0, %arg1, %c0_i32, %c0_i32_0 : i32, i32, i32, i32
  }
  func.func @transform_1(%arg0: i32, %arg1: i32) -> (i32, i32, i32) {
    %c0_i32 = arith.constant 0 : i32
    %c0_i32_0 = arith.constant 0 : i32
    %c0_i32_1 = arith.constant 0 : i32
    %c0_i32_2 = arith.constant 0 : i32
    return %c0_i32, %c0_i32_0, %c0_i32_1 : i32, i32, i32
  }
  func.func @transform_2(%arg0: i32, %arg1: i32) -> (i32, i32) {
    %c0_i32 = arith.constant 0 : i32
    %c0_i32_0 = arith.constant 0 : i32
    %c0_i32_1 = arith.constant 0 : i32
    return %c0_i32, %c0_i32_0 : i32, i32
  }
  func.func @transform_3(%arg0: i32, %arg1: i32) -> (i32, i32, i32, i32) {
    %c0_i32 = arith.constant 0 : i32
    %c0_i32_0 = arith.constant 0 : i32
    %c0_i32_1 = arith.constant 0 : i32
    return %arg0, %arg1, %c0_i32, %c0_i32_0 : i32, i32, i32, i32
  }
}

</mosaic_0001>

<bundles_post_ra>
// kernel: tpu_custom_call.1
= control target key start
LH: loop header
LB: loop body
LE: loop exit
PB: predicated region body
PF: predicated region fallthrough
CT: control target
= control target key end

     0   :  { %8 = vsyncpa [#allocation4], 0  ;;  %s7543_s0 = inlined_call_operand.hbm [shape: bf16[2,1,32,506], index: 0, kind: input, shape index: {}]   ;;  %s7544_s1 = inlined_call_operand.hbm [shape: bf16[7,32,224], index: 1, kind: input, shape index: {}]   ;;  %s7545_s2 = inlined_call_operand.vmem [shape: f32[32,1], index: 2, kind: input, shape index: {}]   ;;  %s7546_s3 = inlined_call_operand.hbm [shape: f32[2,1,32,352], index: 3, kind: output, shape index: {}]  }
   0x1   :  { %10 = vsyncpa [#allocation4 + $0x1], 0 }
   0x2   :  { %11 = vsyncpa [#allocation7], 0 }
   0x3   :  { %12 = vsyncpa [#allocation5], 0 }
   0x4   :  { %14 = vsyncpa [#allocation5 + $0x1], 0  ;;  %s6095_s12 = smov 0   ;;  %s6097_s13 = smov 0  }
   0x5   :  { %s6099_s14 = smov 0   ;;  %s6101_s15 = smov 0  }
   0x6   :  { %s6103_s16 = smov 0   ;;  %s6105_s17 = smov 0  }
   0x7 LB: > { %s5082_s18 = sadd.s32 4294967295, %s6018_s17   ;;  %s5083_s19 = sadd.s32 4294967294, %s6018_s17   ;;  %s6018_s17 = sphi %s6105_s17, %s20_s17   ;;  %s6014_s16 = sphi %s6103_s16, %s7570_s16   ;;  %s6010_s15 = sphi %s6101_s15, %s7569_s15   ;;  %s6006_s14 = sphi %s6099_s14, %s7568_s14   ;;  %s6002_s13 = sphi %s6097_s13, %s7567_s13   ;;  %s5998_s12 = sphi %s6095_s12, %s7566_s12  }
   0x8   : > { %p54_p0 = scmp.ne.s32.totalorder %s6002_s13, %s5998_s12  ;;  %p6129_p1 = scmp.eq.s32.totalorder %s5082_s18, 0 }
   0x9   : > { %p6133_p2 = scmp.eq.s32.totalorder %s5082_s18, 1  ;;  %p128_p3 = scmp.eq.s32.totalorder %s5083_s19, 1 }
   0xa   : > { %s7551_s20 = scalar_select %p6129_p1, 1, 0 }
   0xb   : > { %s7552_s21 = scalar_select %p6133_p2, 1, 0 }
   0xc   : > { %p6139_p4 = por %p6129_p1, %p54_p0  ;;  %p5084_p5 = scmp.ge.s32.totalorder %s6018_s17, 1 }
   0xd   : > { %p6144_p6 = por %p128_p3, %p54_p0  ;;  %p135_p7 = scmp.lt.s32.totalorder %s6018_s17, 3 }
   0xe   : > { %s7553_s22 = scalar_select %p6139_p4, 1, 0 }
   0xf   : > { %s7554_s23 = scalar_select %p6144_p6, 1, 0 }
  0x10   : > { %p6149_p8 = pnand %p5084_p5, %p135_p7  ;;  %s6020_s25 = smov [#allocation6]  }
  0x11   : > { %s147_s26 = sshll.u32 %s6020_s25, 4  ;;  %s32_s28 = sadd.s32 1, %s6014_s16  ;;  %s148_s26 = int_to_ptr.vmem [resolvable:$true] %s147_s26 }
  0x12   : > { %s7555_s24 = scalar_select %p6149_p8, 1, 0 }
  0x13   : > { %p5621_p9 = pneg %p6149_p8  ;;  %s5874_s4 = scalar_lea.hbm %s7544_s1, 3584 }
  0x14   : > { %p5875_p12 = scmp.ne.s32.totalorder %s7544_s1, %s5874_s4  ;;  %p5881_p5 = scmp.lt.u32.totalorder %s5874_s4, %s7544_s1 }
  0x15   : > { %p6158_p11 = pnand %p5621_p9, %p6129_p1 }
  0x17   : > { %p5876_p13 = pneg %p6158_p11 }
  0x19   : > { %p5877_p0 = pnand %p5876_p13, %p5875_p12 }
  0x1b   : > { %p5878_p3 = pneg %p5877_p0 }
  0x1d   : > { %p5883_p7 = pnand %p5881_p5, %p5878_p3 }
  0x1f   : > { %5886 = shalt.err (!%p5883_p7)
}
  0x20   : > { %s5887_s9 = scalar_lea.vmem %s148_s26, 3584  ;;  %p5895_p1 = scmp.lt.s32.totalorder %s148_s26, %s148_s26 }
  0x21   : > { %p5888_p9 = scmp.ne.s32.totalorder %s148_s26, %s5887_s9  ;;  %p5896_p4 = scmp.lt.s32.totalorder %s5887_s9, %s5887_s9 }
  0x23   : > { %p5890_p10 = pnand %p5888_p9, %p5876_p13  ;;  %p5897_p8 = por %p5896_p4, %p5895_p1 }
  0x25   : > { %p5891_p6 = pneg %p5890_p10 }
  0x27   : > { %p5898_p2 = pnand %p5897_p8, %p5891_p6 }
  0x29   : > { %5901 = shalt.err (!%p5898_p2)
}
  0x2a   : > { %s6021_s10 = smov 128   ;;  %s6022_s11 = smov 8  }
  0x2b   : > { %5624 = dma.hbm_to_vmem [thread:$0]  (!%p6158_p11), %s7544_s1, 3584, %s148_s26, [#allocation7], %s6021_s10, %s6021_s10, %s6022_s11  }
  0x2c   : > { %p34_p1 = scmp.ge.s32.totalorder %s32_s28, 2  ;;  %s41_s25 = sadd.s32 1, %s6006_s14 }
  0x2d   : > { %p48_p2 = scmp.ne.s32.totalorder %s6006_s14, %s6002_s13  ;;  %p49_p4 = scmp.eq.s32.totalorder %s6018_s17, 0 }
  0x2e   : > { %s7572_s28 = smov (%p34_p1, %s32_s28), 0  ;;  %p7558_p8 = scmp.ne.s32.totalorder %s7552_s21, 0 }
  0x2f   : > { %p6185_p6 = por %p49_p4, %p48_p2  ;;  %s36_s27 = ssub.s32 %s6014_s16, %s7572_s28 }
  0x30   : > { %p6191_p10 = por %p7558_p8, %p48_p2  ;;  %p5634_p12 = scmp.lt.s32.totalorder %s6018_s17, 2 }
  0x31   : > { %p39_p11 = scmp.eq.s32.totalorder %s36_s27, 0  ;;  %s164_s26 = sand.u32 1, %s6006_s14  }
  0x32   : > { %s5087_s4 = sshll.u32 %s164_s26, 6  ;;  %s5502_s6 = sshll.u32 %s6014_s16, 10 }
  0x33   : > { %s6200_s5 = scalar_select %p39_p11, %s6006_s14, %s41_s25  }
  0x34   : > { %s6206_s9 = scalar_lea.hbm %s7543_s0, %s5502_s6  ;;  %s168_s21 = scalar_lea.vmem [#allocation3], %s5087_s4 }
  0x35   : > { %s177_s10 = sshll.u32 %s168_s21, 4  ;;  %p6212_p13 = pnand %p5634_p12, %p6185_p6  ;;  %s6208_s10 = int_to_ptr.vmem [resolvable:$true] %s177_s10 }
  0x36   : > { %s6216_s18 = scalar_lea.sflag [#allocation4], %s164_s26  ;;  %s5902_s19 = scalar_lea.hbm %s6206_s9, 1024 }
  0x37   : > { %p5903_p0 = scmp.ne.s32.totalorder %s6206_s9, %s5902_s19  ;;  %p5904_p3 = pneg %p6212_p13 }
  0x38   : > { %s5907_s29 = scalar_lea.hbm %s7543_s0, 2048  ;;  %p5908_p9 = scmp.lt.u32.totalorder %s6206_s9, %s7543_s0 }
  0x39   : > { %p5905_p5 = pnand %p5904_p3, %p5903_p0  ;;  %p5909_p1 = scmp.lt.u32.totalorder %s5907_s29, %s5902_s19 }
  0x3a   : > { %p5911_p4 = scmp.lt.u32.totalorder %s5902_s19, %s6206_s9 }
  0x3b   : > { %p5906_p7 = pneg %p5905_p5  ;;  %p5910_p2 = por %p5909_p1, %p5908_p9 }
  0x3d   : > { %p5912_p6 = por %p5911_p4, %p5910_p2 }
  0x3f   : > { %p5913_p8 = pnand %p5912_p6, %p5906_p7 }
  0x41   : > { %5916 = shalt.err (!%p5913_p8)
}
  0x42   : > { %s5917_s26 = scalar_lea.vmem %s6208_s10, 1024  ;;  %s6023_s7 = smov [#allocation3]  }
  0x43   : > { %p5918_p12 = scmp.ne.s32.totalorder %s6208_s10, %s5917_s26  ;;  %s5922_s8 = sshll.u32 %s6023_s7, 4  ;;  %s5923_s8 = int_to_ptr.vmem [resolvable:$false] %s5922_s8 }
  0x44   : > { %s5924_s21 = scalar_lea.vmem %s5923_s8, 2048  ;;  %p5925_p5 = scmp.lt.s32.totalorder %s6208_s10, %s5923_s8 }
  0x45   : > { %p5920_p11 = pnand %p5918_p12, %p5904_p3  ;;  %p5926_p9 = scmp.lt.s32.totalorder %s5924_s21, %s5917_s26 }
  0x47   : > { %p5921_p0 = pneg %p5920_p11  ;;  %p5927_p1 = por %p5926_p9, %p5925_p5 }
  0x49   : > { %p5928_p2 = pnand %p5927_p1, %p5921_p0 }
  0x4b   : > { %5931 = shalt.err (!%p5928_p2)
}
  0x4c   : > { %s6024_s19 = smov 256   ;;  %s6025_s25 = smov 16  }
  0x4d   : > { %5628 = dma.hbm_to_vmem [thread:$0]  (!%p6212_p13), %s6206_s9, 1024, %s6208_s10, %s6216_s18, %s6024_s19, %s6024_s19, %s6025_s25  }
  0x4e   : > { %p7561_p3 = scmp.ne.s32.totalorder %s7555_s24, 0 }
  0x4f   : > { %s6247_s27 = sand.u32 (!%p7561_p3), 1, %s6002_s13   ;;  %p7562_p7 = scmp.ne.s32.totalorder (!%p7561_p3), %s7553_s22, 0 }
  0x50   : > { %189 = sbr.rel (%p7561_p3) target bundleno = 1166 (0x48e), region = 32  ;;  %s5091_s29 = sshll.u32 (!%p7561_p3), %s6247_s27, 6 }
  0x51   : > { %s192_s4 = scalar_lea.sflag (!%p7561_p3), [#allocation4], %s6247_s27  ;;  %s6251_s6 = scalar_lea.vmem (!%p7561_p3), [#allocation3], %s5091_s29 }
  0x57   : > { %5985 = dma.done.wait (%p7562_p7), %s192_s4, 1024  }
  0x58   : > { %5987 = vsyncadd (%p7562_p7), %s192_s4, 4294966272  ;;  %p7563_p13 = scmp.ne.s32.totalorder %s7551_s20, 0 }
  0x5a   : > { %5989 = dma.done.wait (%p7563_p13), [#allocation7], 3584  }
  0x5b   : > { %5991 = vsyncadd (%p7563_p13), [#allocation7], 4294963712  ;;  %v6026_v0 = vmov 0   ;;  %v225_v1 = vld [vmem:[%s7545_s2 + $0x10] sm:$0xff]  ;;  %v223_v2 = vld [vmem:[%s7545_s2] sm:$0xff]  ;;  %s6027_s7 = smov 127  }
  0x5c   : > { %5739 = vset.pattern.permute.xlu1 %v6026_v0  ;;  %5738 = vset.pattern.permute.xlu0 %v6026_v0  ;;  %v226_v3 = vld [vmem:[%s7545_s2 + $0x18] sm:$0xff]  ;;  %v224_v4 = vld [vmem:[%s7545_s2 + $0x8] sm:$0xff]  ;;  %v6277_v5 = vld [vmem:[%s6251_s6 + $0x4] ss:$16 sps:$4 sm:$0xff]   ;;  %s6028_s8 = smov 126   ;;  %vm289_vm0 = vcmask 785408  }
  0x5d   : > { %795 = vmatprep.subr.bf16.mxu1 %v6026_v0  ;;  %239 = vperm.xlu1 %5739, %v225_v1   ;;  %v6280_v6 = vld [vmem:[%s6251_s6] ss:$16 sps:$4 sm:$0xff]   ;;  %v5744_v11 = vld [vmem:[%s6251_s6 + $0x8] ss:$16 sps:$4 sm:$0xff]   ;;  %s6029_s21 = smov 125   ;;  %s6030_s19 = smov 124  }
  0x5e   : > { %229 = vperm.xlu0 %5738, %v223_v2   ;;  %v298_v7 = vld [vmem:[%s6251_s6 + $0x20] sm:$0xff]  ;;  %v300_v8 = vld [vmem:[%s6251_s6 + $0x30] sm:$0xff]  ;;  %742 = vmatprep.subr.bf16.mxu0 %v6277_v5  ;;  %v5745_v12 = vld [vmem:[%s6251_s6 + $0x28] ss:$16 sps:$4 sm:$0xff]   ;;  %s6031_s25 = smov 123   ;;  %s6032_s29 = smov 122  }
  0x5f   : > { %v6285_v9 = vcombine.high %v298_v7, %v300_v8  ;;  %743 = vmatpush1.bf16.msra.mxu0 %v6280_v6  ;;  %v6289_v10 = vcombine.low %v298_v7, %v300_v8  ;;  %v5747_v13 = vld [vmem:[%s6251_s6 + $0x8] ss:$16 sps:$4 sm:$0xff]   ;;  %s6033_s4 = smov 106   ;;  %v5783_v28 = vld [vmem:[#allocation6 + $0x4] ss:$8 sps:$4 sm:$0xff]   ;;  %s6034_s24 = smov 105  }
  0x60   : > { %v5748_v14 = vld [vmem:[%s6251_s6 + $0x28] ss:$16 sps:$4 sm:$0xff]   ;;  %5141 = vmatprep.mubr.msk.bf16.mxu1 %vm289_vm0, %v5783_v28  ;;  %5139 = vmatprep.mubr.msk.bf16.mxu0 %vm289_vm0, %v5783_v28  ;;  %s6035_s22 = smov 104   ;;  %s6036_s9 = smov 103   ;;  %vm340_vm1 = vcmask 1039360   ;;  %vm403_vm2 = vcmask 1031168  }
  0x61   : > { %244 = vperm.xlu1 %5739, %v226_v3   ;;  %744 = vmatprep.subr.bf16.mxu0 %v6285_v9  ;;  %v5765_v15 = vld [vmem:[%s6251_s6 + $0x8] ss:$16 sps:$4 sm:$0xff]   ;;  %s6037_s10 = smov 102   ;;  %s6038_s20 = smov 101   ;;  %vm466_vm3 = vcmask 1022976   ;;  %vm529_vm4 = vcmask 1014784  }
  0x62   : > { %234 = vperm.xlu0 %5738, %v224_v4   ;;  %290 = vst.msk [vmem:[#allocation2 + $0x10] sm:$0xff] %vm289_vm0, %v5765_v15  ;;  %v5767_v16 = vld [vmem:[%s6251_s6 + $0x28] ss:$16 sps:$4 sm:$0xff]   ;;  %s6039_s11 = smov 100   ;;  %s6040_s18 = smov 84   ;;  %vm592_vm5 = vcmask 1006592  }
  0x63   : > { %745 = vmatpush1.bf16.msra.mxu0 %v6289_v10  ;;  %293 = vst.msk [vmem:[#allocation2 + $0x28] sm:$0xff] %vm289_vm0, %v5767_v16  ;;  %v5749_v17 = vld [vmem:[%s6251_s6 + $0x8] ss:$16 sps:$4 sm:$0xff]   ;;  %s6041_s26 = smov 83   ;;  %vm655_vm6 = vcmask 998400   ;;  %vm902_vm7 = vcmask 867328  }
  0x64   : > { %v5750_v19 = vld [vmem:[%s6251_s6 + $0x28] ss:$16 sps:$4 sm:$0xff]   ;;  %vm965_vm8 = vcmask 859136   ;;  %vm1028_vm9 = vcmask 850944   ;;  %vm1091_vm10 = vcmask 842752   ;;  %vm1154_vm11 = vcmask 834560  }
  0x65   : > { %330 = vrot.lane.b32.xlu1 %v6277_v5, %s6027_s7  ;;  %v5751_v21 = vld [vmem:[%s6251_s6 + $0x8] ss:$16 sps:$4 sm:$0xff]   ;;  %vm1217_vm12 = vcmask 826368   ;;  %vm1280_vm13 = vcmask 818176   ;;  %vm1538_vm14 = vcmask 687104   ;;  %vm1613_vm15 = vcmask 678912  }
  0x66   : > { %328 = vrot.lane.b32.xlu0 %v6280_v6, %s6027_s7  ;;  %v5752_v22 = vld [vmem:[%s6251_s6 + $0x28] ss:$16 sps:$4 sm:$0xff]  }
  0x67   : > { %v5753_v23 = vld [vmem:[%s6251_s6 + $0x8] ss:$16 sps:$4 sm:$0xff]  }
  0x68   : > { %v5754_v24 = vld [vmem:[%s6251_s6 + $0x28] ss:$16 sps:$4 sm:$0xff]  }
  0x69   : > { %334 = vrot.lane.b32.xlu1 %v6289_v10, %s6027_s7  ;;  %v678_v18 = vld [vmem:[#allocation2 + $0x10] sm:$0xff]  ;;  %v5755_v25 = vld [vmem:[%s6251_s6 + $0x8] ss:$16 sps:$4 sm:$0xff]  }
  0x6a   : > { %332 = vrot.lane.b32.xlu0 %v5744_v11, %s6027_s7  ;;  %796 = vmatpush1.bf16.msra.mxu1 %v678_v18  ;;  %v681_v20 = vld [vmem:[#allocation2 + $0x28] sm:$0xff] }
  0x6b   : > { %797 = vmatprep.subr.bf16.mxu1 %v6026_v0  ;;  %v5756_v26 = vld [vmem:[%s6251_s6 + $0x28] ss:$16 sps:$4 sm:$0xff]  }
  0x6c   : > { %v5757_v27 = vld [vmem:[%s6251_s6 + $0x8] ss:$16 sps:$4 sm:$0xff]  }
  0x6d   : > { %338 = vrot.lane.b32.xlu1 %v5745_v12, %s6027_s7  ;;  %v5758_v29 = vld [vmem:[%s6251_s6 + $0x28] ss:$16 sps:$4 sm:$0xff]  }
  0x6e   : > { %336 = vrot.lane.b32.xlu0 %v6285_v9, %s6027_s7  ;;  %798 = vmatpush1.bf16.msra.mxu1 %v681_v20  ;;  %v5759_v30 = vld [vmem:[%s6251_s6 + $0x8] ss:$16 sps:$4 sm:$0xff]   ;;  %s6042_s7 = smov 82  }
  0x6f   : > { %799 = vmatprep.subr.bf16.mxu1 %v6026_v0  ;;  %v5760_v31 = vld [vmem:[%s6251_s6 + $0x28] ss:$16 sps:$4 sm:$0xff]  }
  0x70   : > { %v5761_v32 = vld [vmem:[%s6251_s6 + $0x8] ss:$16 sps:$4 sm:$0xff]  }
  0x71   : > { %393 = vrot.lane.b32.xlu1 %v6277_v5, %s6028_s8  ;;  %v5762_v33 = vld [vmem:[%s6251_s6 + $0x28] ss:$16 sps:$4 sm:$0xff]  }
  0x72   : > { %391 = vrot.lane.b32.xlu0 %v6280_v6, %s6028_s8  ;;  %v5763_v34 = vld [vmem:[%s6251_s6 + $0x8] ss:$16 sps:$4 sm:$0xff]  }
  0x73   : > { %v5764_v35 = vld [vmem:[%s6251_s6 + $0x28] ss:$16 sps:$4 sm:$0xff]  }
  0x74   : > { %v5766_v36 = vld [vmem:[%s6251_s6 + $0x8] ss:$16 sps:$4 sm:$0xff]  }
  0x75   : > { %397 = vrot.lane.b32.xlu1 %v6289_v10, %s6028_s8  ;;  %v5768_v41 = vld [vmem:[%s6251_s6 + $0x28] ss:$16 sps:$4 sm:$0xff]  }
  0x76   : > { %395 = vrot.lane.b32.xlu0 %v5747_v13, %s6028_s8  ;;  %v5769_v44 = vld [vmem:[%s6251_s6 + $0x8] ss:$16 sps:$4 sm:$0xff]  }
  0x77   : > { %v5770_v53 = vld [vmem:[%s6251_s6 + $0x28] ss:$16 sps:$4 sm:$0xff]  }
  0x78   : > { %v5771_v57 = vld [vmem:[%s6251_s6 + $0x8] ss:$16 sps:$4 sm:$0xff]  }
  0x79   : > { %401 = vrot.lane.b32.xlu1 %v5748_v14, %s6028_s8  ;;  %v5772_v4 = vld [vmem:[%s6251_s6 + $0x28] ss:$16 sps:$4 sm:$0xff]  }
  0x7a   : > { %399 = vrot.lane.b32.xlu0 %v6285_v9, %s6028_s8  ;;  %v6415_v12 = vld [vmem:[%s6251_s6 + $0x8] ss:$16 sps:$4 sm:$0xff]   ;;  %s6043_s8 = smov 81  }
  0x7b   : > { %v1483_v13 = vld [vmem:[%s6251_s6 + $0x8] sm:$0xff]  ;;  %v1485_v14 = vld [vmem:[%s6251_s6 + $0x18] sm:$0xff] }
  0x7d   : > { %456 = vrot.lane.b32.xlu1 %v6277_v5, %s6029_s21 }
  0x7e   : > { %454 = vrot.lane.b32.xlu0 %v6280_v6, %s6029_s21 }
  0x81   : > { %462 = vrot.lane.b32.xlu1 %v6285_v9, %s6029_s21 }
  0x82   : > { %458 = vrot.lane.b32.xlu0 %v5749_v17, %s6029_s21 }
  0x85   : > { %460 = vrot.lane.b32.xlu1 %v6289_v10, %s6029_s21 }
  0x86   : > { %464 = vrot.lane.b32.xlu0 %v5750_v19, %s6029_s21  ;;  %v6424_v19 = vcombine.high %v1483_v13, %v1485_v14  ;;  %v5786_v13 = vld [vmem:[#allocation6 + $0x14] ss:$8 sps:$4 sm:$0xff]   ;;  %s6044_s21 = smov 80  }
  0x89   : > { %521 = vrot.lane.b32.xlu1 %v5751_v21, %s6030_s19 }
  0x8a   : > { %519 = vrot.lane.b32.xlu0 %v6277_v5, %s6030_s19 }
  0x8d   : > { %525 = vrot.lane.b32.xlu1 %v6285_v9, %s6030_s19 }
  0x8e   : > { %517 = vrot.lane.b32.xlu0 %v6280_v6, %s6030_s19 }
  0x91   : > { %523 = vrot.lane.b32.xlu1 %v6289_v10, %s6030_s19 }
  0x92   : > { %527 = vrot.lane.b32.xlu0 %v5752_v22, %s6030_s19 }
  0x95   : > { %584 = vrot.lane.b32.xlu1 %v5753_v23, %s6031_s25 }
  0x96   : > { %582 = vrot.lane.b32.xlu0 %v6277_v5, %s6031_s25 }
  0x99   : > { %588 = vrot.lane.b32.xlu1 %v6285_v9, %s6031_s25 }
  0x9a   : > { %580 = vrot.lane.b32.xlu0 %v6280_v6, %s6031_s25 }
  0x9d   : > { %586 = vrot.lane.b32.xlu1 %v6289_v10, %s6031_s25 }
  0x9e   : > { %590 = vrot.lane.b32.xlu0 %v5754_v24, %s6031_s25 }
  0xa1   : > { %647 = vrot.lane.b32.xlu1 %v5755_v25, %s6032_s29  ;;  %v6436_v25 = vld [vmem:[%s6251_s6 + $0x28] ss:$16 sps:$4 sm:$0xff]  }
  0xa2   : > { %645 = vrot.lane.b32.xlu0 %v6277_v5, %s6032_s29 }
  0xa5   : > { %651 = vrot.lane.b32.xlu1 %v6285_v9, %s6032_s29 }
  0xa6   : > { %643 = vrot.lane.b32.xlu0 %v6280_v6, %s6032_s29 }
  0xa9   : > { %649 = vrot.lane.b32.xlu1 %v6289_v10, %s6032_s29 }
  0xaa   : > { %653 = vrot.lane.b32.xlu0 %v5756_v26, %s6032_s29 }
  0xad   : > { %894 = vrot.lane.b32.xlu1 %v5757_v27, %s6033_s4 }
  0xae   : > { %892 = vrot.lane.b32.xlu0 %v6277_v5, %s6033_s4 }
  0xb1   : > { %898 = vrot.lane.b32.xlu1 %v6285_v9, %s6033_s4 }
  0xb2   : > { %890 = vrot.lane.b32.xlu0 %v6280_v6, %s6033_s4 }
  0xb5   : > { %896 = vrot.lane.b32.xlu1 %v6289_v10, %s6033_s4 }
  0xb6   : > { %900 = vrot.lane.b32.xlu0 %v5758_v29, %s6033_s4  ;;  %s6045_s4 = smov 79  }
  0xb9   : > { %957 = vrot.lane.b32.xlu1 %v5759_v30, %s6034_s24  ;;  %v6445_v30 = vld [vmem:[%s6251_s6 + $0x2c] ss:$16 sps:$4 sm:$0xff]  }
  0xba   : > { %955 = vrot.lane.b32.xlu0 %v6277_v5, %s6034_s24 }
  0xbd   : > { %961 = vrot.lane.b32.xlu1 %v6285_v9, %s6034_s24 }
  0xbe   : > { %953 = vrot.lane.b32.xlu0 %v6280_v6, %s6034_s24 }
  0xc1   : > { %959 = vrot.lane.b32.xlu1 %v6289_v10, %s6034_s24 }
  0xc2   : > { %963 = vrot.lane.b32.xlu0 %v5760_v31, %s6034_s24  ;;  %s6046_s24 = smov 78  }
  0xc5   : > { %1020 = vrot.lane.b32.xlu1 %v5761_v32, %s6035_s22 }
  0xc6   : > { %1018 = vrot.lane.b32.xlu0 %v6277_v5, %s6035_s22 }
  0xc9   : > { %1024 = vrot.lane.b32.xlu1 %v6285_v9, %s6035_s22 }
  0xca   : > { %1016 = vrot.lane.b32.xlu0 %v6280_v6, %s6035_s22 }
  0xcd   : > { %1022 = vrot.lane.b32.xlu1 %v6289_v10, %s6035_s22 }
  0xce   : > { %1026 = vrot.lane.b32.xlu0 %v5762_v33, %s6035_s22  ;;  %s6047_s22 = smov 62  }
  0xd1   : > { %1083 = vrot.lane.b32.xlu1 %v5763_v34, %s6036_s9 }
  0xd2   : > { %1081 = vrot.lane.b32.xlu0 %v6277_v5, %s6036_s9 }
  0xd5   : > { %1087 = vrot.lane.b32.xlu1 %v6285_v9, %s6036_s9 }
  0xd6   : > { %1079 = vrot.lane.b32.xlu0 %v6280_v6, %s6036_s9 }
  0xd9   : > { %1085 = vrot.lane.b32.xlu1 %v6289_v10, %s6036_s9 }
  0xda   : > { %1089 = vrot.lane.b32.xlu0 %v5764_v35, %s6036_s9  ;;  %s6048_s9 = smov 61  }
  0xdc   : > { %v6379_v37 = vpop.permute.xlu1 %239 }
  0xdd   : > { %v6381_v38 = vpop.permute.xlu0 %229  ;;  %1146 = vrot.lane.b32.xlu1 %v5766_v36, %s6037_s10 }
  0xde   : > { %1144 = vrot.lane.b32.xlu0 %v6277_v5, %s6037_s10 }
  0xe0   : > { %v6384_v39 = vpop.permute.xlu1 %244 }
  0xe1   : > { %v6386_v40 = vpop.permute.xlu0 %234  ;;  %1150 = vrot.lane.b32.xlu1 %v6285_v9, %s6037_s10 }
  0xe2   : > { %1142 = vrot.lane.b32.xlu0 %v6280_v6, %s6037_s10 }
  0xe4   : > { %v331_v42 = vpop.permute.xlu1 %330 }
  0xe5   : > { %v329_v43 = vpop.permute.xlu0 %328  ;;  %1148 = vrot.lane.b32.xlu1 %v6289_v10, %s6037_s10 }
  0xe6   : > { %1152 = vrot.lane.b32.xlu0 %v5768_v41, %s6037_s10  ;;  %v341_v48 = vsel %vm340_vm1, %v329_v43, %v331_v42  ;;  %s6049_s10 = smov 60  }
  0xe8   : > { %v335_v45 = vpop.permute.xlu1 %334 }
  0xe9   : > { %v333_v46 = vpop.permute.xlu0 %332  ;;  %1209 = vrot.lane.b32.xlu1 %v5769_v44, %s6038_s20 }
  0xea   : > { %v342_v47 = vsel %vm340_vm1, %v331_v42, %v333_v46  ;;  %353 = vst.msk [vmem:[#allocation2 + $0x40] sm:$0xff] %vm289_vm0, %v333_v46  ;;  %1207 = vrot.lane.b32.xlu0 %v6277_v5, %s6038_s20 }
  0xeb   : > { %746 = vmatprep.subr.bf16.mxu0 %v342_v47 }
  0xec   : > { %747 = vmatpush1.bf16.msra.mxu0 %v341_v48  ;;  %v339_v49 = vpop.permute.xlu1 %338 }
  0xed   : > { %v337_v50 = vpop.permute.xlu0 %336  ;;  %356 = vst.msk [vmem:[#allocation2 + $0x58] sm:$0xff] %vm289_vm0, %v339_v49  ;;  %1213 = vrot.lane.b32.xlu1 %v6285_v9, %s6038_s20 }
  0xee   : > { %v343_v51 = vsel %vm340_vm1, %v335_v45, %v337_v50  ;;  %v344_v52 = vsel %vm340_vm1, %v337_v50, %v339_v49  ;;  %1205 = vrot.lane.b32.xlu0 %v6280_v6, %s6038_s20  ;;  %vm1688_vm1 = vcmask 670720  }
  0xef   : > { %748 = vmatprep.subr.bf16.mxu0 %v344_v52 }
  0xf0   : > { %749 = vmatpush1.bf16.msra.mxu0 %v343_v51  ;;  %v394_v54 = vpop.permute.xlu1 %393 }
  0xf1   : > { %v392_v55 = vpop.permute.xlu0 %391  ;;  %v684_v56 = vld [vmem:[#allocation2 + $0x40] sm:$0xff]  ;;  %1211 = vrot.lane.b32.xlu1 %v6289_v10, %s6038_s20 }
  0xf2   : > { %800 = vmatpush1.bf16.msra.mxu1 %v684_v56  ;;  %1215 = vrot.lane.b32.xlu0 %v5770_v53, %s6038_s20  ;;  %v404_v62 = vsel %vm403_vm2, %v392_v55, %v394_v54  ;;  %s6050_s20 = smov 59  }
  0xf3   : > { %801 = vmatprep.subr.bf16.mxu1 %v6026_v0 }
  0xf4   : > { %v398_v58 = vpop.permute.xlu1 %397  ;;  %v687_v60 = vld [vmem:[#allocation2 + $0x58] sm:$0xff] }
  0xf5   : > { %v396_v59 = vpop.permute.xlu0 %395  ;;  %1272 = vrot.lane.b32.xlu1 %v5771_v57, %s6039_s11 }
  0xf6   : > { %v405_v61 = vsel %vm403_vm2, %v394_v54, %v396_v59  ;;  %416 = vst.msk [vmem:[#allocation2 + $0x70] sm:$0xff] %vm289_vm0, %v396_v59  ;;  %802 = vmatpush1.bf16.msra.mxu1 %v687_v60  ;;  %1270 = vrot.lane.b32.xlu0 %v6277_v5, %s6039_s11 }
  0xf7   : > { %803 = vmatprep.subr.bf16.mxu1 %v6026_v0  ;;  %750 = vmatprep.subr.bf16.mxu0 %v405_v61  ;;  %v6503_v61 = vld [vmem:[%s6251_s6 + $0x24] ss:$16 sps:$4 sm:$0xff]  }
  0xf8   : > { %751 = vmatpush1.bf16.msra.mxu0 %v404_v62  ;;  %v402_v63 = vpop.permute.xlu1 %401 }
  0xf9   : > { %v400_v1 = vpop.permute.xlu0 %399  ;;  %419 = vst.msk [vmem:[#allocation2 + $0x88] sm:$0xff] %vm289_vm0, %v402_v63  ;;  %1276 = vrot.lane.b32.xlu1 %v6285_v9, %s6039_s11 }
  0xfa   : > { %v406_v2 = vsel %vm403_vm2, %v398_v58, %v400_v1  ;;  %v407_v3 = vsel %vm403_vm2, %v400_v1, %v402_v63  ;;  %1268 = vrot.lane.b32.xlu0 %v6280_v6, %s6039_s11  ;;  %vm1763_vm2 = vcmask 662528  }
  0xfb   : > { %752 = vmatprep.subr.bf16.mxu0 %v407_v3  ;;  %v1638_v3 = vld [vmem:[%s6251_s6 + $0x30] sm:$0xff] }
  0xfc   : > { %753 = vmatpush1.bf16.msra.mxu0 %v406_v2  ;;  %v457_v7 = vpop.permute.xlu1 %456  ;;  %v1636_v2 = vld [vmem:[%s6251_s6 + $0x20] sm:$0xff] }
  0xfd   : > { %v455_v8 = vpop.permute.xlu0 %454  ;;  %v690_v11 = vld [vmem:[#allocation2 + $0x70] sm:$0xff]  ;;  %1274 = vrot.lane.b32.xlu1 %v6289_v10, %s6039_s11 }
  0xfe   : > { %804 = vmatpush1.bf16.msra.mxu1 %v690_v11  ;;  %1278 = vrot.lane.b32.xlu0 %v5772_v4, %s6039_s11  ;;  %v467_v20 = vsel %vm466_vm3, %v455_v8, %v457_v7  ;;  %v5781_v8 = vld [vmem:[#allocation6] ss:$8 sps:$4 sm:$0xff]   ;;  %v6515_v11 = vcombine.low %v1636_v2, %v1638_v3  ;;  %s6051_s11 = smov 58  }
  0xff   : > { %805 = vmatprep.subr.bf16.mxu1 %v6026_v0 }
 0x100   : > { %v463_v15 = vpop.permute.xlu1 %462  ;;  %v693_v17 = vld [vmem:[#allocation2 + $0x88] sm:$0xff] }
 0x101   : > { %v459_v16 = vpop.permute.xlu0 %458  ;;  %1526 = vrot.lane.b32.xlu1 %v6415_v12, %s6040_s18 }
 0x102   : > { %v468_v18 = vsel %vm466_vm3, %v457_v7, %v459_v16  ;;  %479 = vst.msk [vmem:[#allocation2 + $0xa0] sm:$0xff] %vm289_vm0, %v459_v16  ;;  %806 = vmatpush1.bf16.msra.mxu1 %v693_v17  ;;  %1524 = vrot.lane.b32.xlu0 %v6277_v5, %s6040_s18 }
 0x103   : > { %807 = vmatprep.subr.bf16.mxu1 %v6026_v0  ;;  %754 = vmatprep.subr.bf16.mxu0 %v468_v18 }
 0x104   : > { %755 = vmatpush1.bf16.msra.mxu0 %v467_v20  ;;  %v461_v21 = vpop.permute.xlu1 %460 }
 0x105   : > { %v465_v22 = vpop.permute.xlu0 %464  ;;  %v469_v23 = vsel %vm466_vm3, %v461_v21, %v463_v15  ;;  %1528 = vrot.lane.b32.xlu1 %v6424_v19, %s6040_s18 }
 0x106   : > { %v470_v24 = vsel %vm466_vm3, %v463_v15, %v465_v22  ;;  %482 = vst.msk [vmem:[#allocation2 + $0xb8] sm:$0xff] %vm289_vm0, %v465_v22  ;;  %1522 = vrot.lane.b32.xlu0 %v6280_v6, %s6040_s18  ;;  %vm1838_vm3 = vcmask 654336  }
 0x107   : > { %756 = vmatprep.subr.bf16.mxu0 %v470_v24 }
 0x108   : > { %757 = vmatpush1.bf16.msra.mxu0 %v469_v23  ;;  %v522_v26 = vpop.permute.xlu1 %521 }
 0x109   : > { %v520_v27 = vpop.permute.xlu0 %519  ;;  %v696_v28 = vld [vmem:[#allocation2 + $0xa0] sm:$0xff]  ;;  %542 = vst.msk [vmem:[#allocation2 + $0xd0] sm:$0xff] %vm289_vm0, %v522_v26  ;;  %1534 = vrot.lane.b32.xlu1 %v6436_v25, %s6040_s18 }
 0x10a   : > { %v531_v29 = vsel %vm529_vm4, %v520_v27, %v522_v26  ;;  %808 = vmatpush1.bf16.msra.mxu1 %v696_v28  ;;  %1532 = vrot.lane.b32.xlu0 %v6285_v9, %s6040_s18  ;;  %v5788_v26 = vld [vmem:[#allocation6 + $0x10] ss:$8 sps:$4 sm:$0xff]  }
 0x10b   : > { %809 = vmatprep.subr.bf16.mxu1 %v6026_v0  ;;  %758 = vmatprep.subr.bf16.mxu0 %v531_v29  ;;  %v5791_v29 = vld [vmem:[#allocation6 + $0x24] ss:$8 sps:$4 sm:$0xff]  }
 0x10c   : > { %v526_v31 = vpop.permute.xlu1 %525 }
 0x10d   : > { %v518_v32 = vpop.permute.xlu0 %517  ;;  %v699_v33 = vld [vmem:[#allocation2 + $0xb8] sm:$0xff]  ;;  %1536 = vrot.lane.b32.xlu1 %v6445_v30, %s6040_s18 }
 0x10e   : > { %v530_v34 = vsel %vm529_vm4, %v518_v32, %v520_v27  ;;  %810 = vmatpush1.bf16.msra.mxu1 %v699_v33  ;;  %1530 = vrot.lane.b32.xlu0 %v6289_v10, %s6040_s18  ;;  %s6052_s18 = smov 57  }
 0x10f   : > { %811 = vmatprep.subr.bf16.mxu1 %v6026_v0  ;;  %759 = vmatpush1.bf16.msra.mxu0 %v530_v34 }
 0x110   : > { %v524_v35 = vpop.permute.xlu1 %523  ;;  %v702_v41 = vld [vmem:[#allocation2 + $0xd0] sm:$0xff] }
 0x111   : > { %v528_v36 = vpop.permute.xlu0 %527  ;;  %v532_v42 = vsel %vm529_vm4, %v524_v35, %v526_v31  ;;  %1601 = vrot.lane.b32.xlu1 %v6415_v12, %s6041_s26 }
 0x112   : > { %v533_v43 = vsel %vm529_vm4, %v526_v31, %v528_v36  ;;  %545 = vst.msk [vmem:[#allocation2 + $0xe8] sm:$0xff] %vm289_vm0, %v528_v36  ;;  %812 = vmatpush1.bf16.msra.mxu1 %v702_v41  ;;  %1599 = vrot.lane.b32.xlu0 %v6277_v5, %s6041_s26 }
 0x113   : > { %813 = vmatprep.subr.bf16.mxu1 %v6026_v0  ;;  %760 = vmatprep.subr.bf16.mxu0 %v533_v43 }
 0x114   : > { %761 = vmatpush1.bf16.msra.mxu0 %v532_v42  ;;  %v585_v44 = vpop.permute.xlu1 %584 }
 0x115   : > { %v583_v45 = vpop.permute.xlu0 %582  ;;  %605 = vst.msk [vmem:[#allocation2 + $0x100] sm:$0xff] %vm289_vm0, %v585_v44  ;;  %1603 = vrot.lane.b32.xlu1 %v6424_v19, %s6041_s26 }
 0x116   : > { %v594_v46 = vsel %vm592_vm5, %v583_v45, %v585_v44  ;;  %1597 = vrot.lane.b32.xlu0 %v6280_v6, %s6041_s26 }
 0x117   : > { %762 = vmatprep.subr.bf16.mxu0 %v594_v46 }
 0x118   : > { %v589_v47 = vpop.permute.xlu1 %588 }
 0x119   : > { %v581_v48 = vpop.permute.xlu0 %580  ;;  %v705_v49 = vld [vmem:[#allocation2 + $0xe8] sm:$0xff]  ;;  %1609 = vrot.lane.b32.xlu1 %v6436_v25, %s6041_s26 }
 0x11a   : > { %v593_v50 = vsel %vm592_vm5, %v581_v48, %v583_v45  ;;  %814 = vmatpush1.bf16.msra.mxu1 %v705_v49  ;;  %1607 = vrot.lane.b32.xlu0 %v6285_v9, %s6041_s26  ;;  %v6485_v9 = vld [vmem:[%s6251_s6 + $0x4] ss:$16 sps:$4 sm:$0xff]  }
 0x11b   : > { %815 = vmatprep.subr.bf16.mxu1 %v6026_v0  ;;  %763 = vmatpush1.bf16.msra.mxu0 %v593_v50 }
 0x11c   : > { %v587_v5 = vpop.permute.xlu1 %586  ;;  %v708_v52 = vld [vmem:[#allocation2 + $0x100] sm:$0xff] }
 0x11d   : > { %v591_v51 = vpop.permute.xlu0 %590  ;;  %v595_v6 = vsel %vm592_vm5, %v587_v5, %v589_v47  ;;  %1611 = vrot.lane.b32.xlu1 %v6445_v30, %s6041_s26 }
 0x11e   : > { %v596_v53 = vsel %vm592_vm5, %v589_v47, %v591_v51  ;;  %608 = vst.msk [vmem:[#allocation2 + $0x118] sm:$0xff] %vm289_vm0, %v591_v51  ;;  %816 = vmatpush1.bf16.msra.mxu1 %v708_v52  ;;  %1605 = vrot.lane.b32.xlu0 %v6289_v10, %s6041_s26  ;;  %v6494_v10 = vld [vmem:[%s6251_s6] ss:$16 sps:$4 sm:$0xff]   ;;  %s6053_s26 = smov 56  }
 0x11f   : > { %817 = vmatprep.subr.bf16.mxu1 %v6026_v0  ;;  %764 = vmatprep.subr.bf16.mxu0 %v596_v53 }
 0x120   : > { %765 = vmatpush1.bf16.msra.mxu0 %v595_v6  ;;  %v648_v54 = vpop.permute.xlu1 %647 }
 0x121   : > { %v646_v55 = vpop.permute.xlu0 %645  ;;  %668 = vst.msk [vmem:[#allocation2 + $0x130] sm:$0xff] %vm289_vm0, %v648_v54  ;;  %1676 = vrot.lane.b32.xlu1 %v6415_v12, %s6042_s7 }
 0x122   : > { %v657_v56 = vsel %vm655_vm6, %v646_v55, %v648_v54  ;;  %1674 = vrot.lane.b32.xlu0 %v6485_v9, %s6042_s7 }
 0x123   : > { %766 = vmatprep.subr.bf16.mxu0 %v657_v56 }
 0x124   : > { %v652_v57 = vpop.permute.xlu1 %651 }
 0x125   : > { %v644_v58 = vpop.permute.xlu0 %643  ;;  %v711_v59 = vld [vmem:[#allocation2 + $0x118] sm:$0xff]  ;;  %1678 = vrot.lane.b32.xlu1 %v6424_v19, %s6042_s7 }
 0x126   : > { %v656_v60 = vsel %vm655_vm6, %v644_v58, %v646_v55  ;;  %818 = vmatpush1.bf16.msra.mxu1 %v711_v59  ;;  %1672 = vrot.lane.b32.xlu0 %v6494_v10, %s6042_s7 }
 0x127   : > { %819 = vmatprep.subr.bf16.mxu1 %v6026_v0  ;;  %767 = vmatpush1.bf16.msra.mxu0 %v656_v60 }
 0x128   : > { %v650_v62 = vpop.permute.xlu1 %649  ;;  %v714_v1 = vld [vmem:[#allocation2 + $0x130] sm:$0xff] }
 0x129   : > { %v654_v63 = vpop.permute.xlu0 %653  ;;  %v658_v4 = vsel %vm655_vm6, %v650_v62, %v652_v57  ;;  %1684 = vrot.lane.b32.xlu1 %v6436_v25, %s6042_s7 }
 0x12a   : > { %v659_v7 = vsel %vm655_vm6, %v652_v57, %v654_v63  ;;  %671 = vst.msk [vmem:[#allocation2 + $0x148] sm:$0xff] %vm289_vm0, %v654_v63  ;;  %820 = vmatpush1.bf16.msra.mxu1 %v714_v1  ;;  %1682 = vrot.lane.b32.xlu0 %v6503_v61, %s6042_s7 }
 0x12b   : > { %821 = vmatprep.subr.bf16.mxu1 %v6026_v0  ;;  %768 = vmatprep.subr.bf16.mxu0 %v659_v7 }
 0x12c   : > { %769 = vmatpush1.bf16.msra.mxu0 %v658_v4  ;;  %v895_v14 = vpop.permute.xlu1 %894 }
 0x12d   : > { %v893_v15 = vpop.permute.xlu0 %892  ;;  %915 = vst.msk [vmem:[#allocation2 + $0x10] sm:$0xff] %vm289_vm0, %v895_v14  ;;  %1686 = vrot.lane.b32.xlu1 %v6445_v30, %s6042_s7 }
 0x12e   : > { %v904_v16 = vsel %vm902_vm7, %v893_v15, %v895_v14  ;;  %1680 = vrot.lane.b32.xlu0 %v6515_v11, %s6042_s7  ;;  %s6054_s7 = smov 40  }
 0x12f   : > { %1368 = vmatprep.subr.bf16.mxu0 %v904_v16  ;;  %775 = vmatmul.mubr.bf16.vlgmr.msra.gmra.mrb[0].mxu0 %v5781_v8 }
 0x130   : > { %5140 = vmatprep.mubr.msk.bf16.mxu0 %vm289_vm0, %v5786_v13  ;;  %v899_v17 = vpop.permute.xlu1 %898 }
 0x131   : > { %v891_v18 = vpop.permute.xlu0 %890  ;;  %v717_v20 = vld [vmem:[#allocation2 + $0x148] sm:$0xff]  ;;  %1751 = vrot.lane.b32.xlu1 %v6415_v12, %s6043_s8 }
 0x132   : > { %v903_v21 = vsel %vm902_vm7, %v891_v18, %v893_v15  ;;  %822 = vmatpush1.bf16.msra.mxu1 %v717_v20  ;;  %1749 = vrot.lane.b32.xlu0 %v6485_v9, %s6043_s8 }
 0x133   : > { %1421 = vmatprep.subr.bf16.mxu1 %v6026_v0  ;;  %1369 = vmatpush1.bf16.msra.mxu0 %v903_v21 }
 0x134   : > { %v897_v22 = vpop.permute.xlu1 %896  ;;  %v1304_v24 = vld [vmem:[#allocation2 + $0x10] sm:$0xff] }
 0x135   : > { %v901_v23 = vpop.permute.xlu0 %900  ;;  %828 = vmatmul.mubr.bf16.vlgmr.msra.gmra.mrb[0].mxu1 %v5781_v8  ;;  %v905_v27 = vsel %vm902_vm7, %v897_v22, %v899_v17  ;;  %1753 = vrot.lane.b32.xlu1 %v6424_v19, %s6043_s8 }
 0x136   : > { %v906_v28 = vsel %vm902_vm7, %v899_v17, %v901_v23  ;;  %918 = vst.msk [vmem:[#allocation2 + $0x28] sm:$0xff] %vm289_vm0, %v901_v23  ;;  %1422 = vmatpush1.bf16.msra.mxu1 %v1304_v24  ;;  %1747 = vrot.lane.b32.xlu0 %v6494_v10, %s6043_s8  ;;  %vm1913_vm7 = vcmask 646144  }
 0x137   : > { %1423 = vmatprep.subr.bf16.mxu1 %v6026_v0  ;;  %1370 = vmatprep.subr.bf16.mxu0 %v906_v28 }
 0x138   : > { %1371 = vmatpush1.bf16.msra.mxu0 %v905_v27  ;;  %v958_v31 = vpop.permute.xlu1 %957  ;;  %5142 = vmatprep.mubr.msk.bf16.mxu1 %vm289_vm0, %v5786_v13 }
 0x139   : > { %v956_v32 = vpop.permute.xlu0 %955  ;;  %785 = vmatmul.mubr.bf16.gmra.mrb[4].mxu0 %v5788_v26  ;;  %978 = vst.msk [vmem:[#allocation2 + $0x40] sm:$0xff] %vm289_vm0, %v958_v31  ;;  %1759 = vrot.lane.b32.xlu1 %v6436_v25, %s6043_s8 }
 0x13a   : > { %v967_v33 = vsel %vm965_vm8, %v956_v32, %v958_v31  ;;  %5189 = vmatprep.mubr.msk.bf16.mxu0 %vm289_vm0, %v5791_v29  ;;  %1757 = vrot.lane.b32.xlu0 %v6503_v61, %s6043_s8 }
 0x13b   : > { %1372 = vmatprep.subr.bf16.mxu0 %v967_v33 }
 0x13c   : > { %v962_v34 = vpop.permute.xlu1 %961 }
 0x13d   : > { %v954_v35 = vpop.permute.xlu0 %953  ;;  %v1307_v36 = vld [vmem:[#allocation2 + $0x28] sm:$0xff]  ;;  %836 = vmatmul.mubr.bf16.gmra.mrb[4].mxu1 %v5788_v26  ;;  %1761 = vrot.lane.b32.xlu1 %v6445_v30, %s6043_s8 }
 0x13e   : > { %v966_v41 = vsel %vm965_vm8, %v954_v35, %v956_v32  ;;  %1424 = vmatpush1.bf16.msra.mxu1 %v1307_v36  ;;  %1755 = vrot.lane.b32.xlu0 %v6515_v11, %s6043_s8  ;;  %s6055_s8 = smov 39  }
 0x13f   : > { %1425 = vmatprep.subr.bf16.mxu1 %v6026_v0  ;;  %1373 = vmatpush1.bf16.msra.mxu0 %v966_v41 }
 0x140   : > { %5191 = vmatprep.mubr.msk.bf16.mxu1 %vm289_vm0, %v5791_v29  ;;  %v960_v42 = vpop.permute.xlu1 %959  ;;  %v1310_v44 = vld [vmem:[#allocation2 + $0x40] sm:$0xff] }
 0x141   : > { %v964_v43 = vpop.permute.xlu0 %963  ;;  %v968_v45 = vsel %vm965_vm8, %v960_v42, %v962_v34  ;;  %1826 = vrot.lane.b32.xlu1 %v6415_v12, %s6044_s21 }
 0x142   : > { %v969_v46 = vsel %vm965_vm8, %v962_v34, %v964_v43  ;;  %981 = vst.msk [vmem:[#allocation2 + $0x58] sm:$0xff] %vm289_vm0, %v964_v43  ;;  %1426 = vmatpush1.bf16.msra.mxu1 %v1310_v44  ;;  %1824 = vrot.lane.b32.xlu0 %v6485_v9, %s6044_s21  ;;  %vm1988_vm8 = vcmask 637952  }
 0x143   : > { %1427 = vmatprep.subr.bf16.mxu1 %v6026_v0  ;;  %1374 = vmatprep.subr.bf16.mxu0 %v969_v46 }
 0x144   : > { %1375 = vmatpush1.bf16.msra.mxu0 %v968_v45  ;;  %v1021_v47 = vpop.permute.xlu1 %1020 }
 0x145   : > { %v1019_v48 = vpop.permute.xlu0 %1018  ;;  %1041 = vst.msk [vmem:[#allocation2 + $0x70] sm:$0xff] %vm289_vm0, %v1021_v47  ;;  %1828 = vrot.lane.b32.xlu1 %v6424_v19, %s6044_s21 }
 0x146   : > { %v1030_v49 = vsel %vm1028_vm9, %v1019_v48, %v1021_v47  ;;  %1822 = vrot.lane.b32.xlu0 %v6494_v10, %s6044_s21 }
 0x147   : > { %1376 = vmatprep.subr.bf16.mxu0 %v1030_v49 }
 0x148   : > { %v1025_v50 = vpop.permute.xlu1 %1024 }
 0x149   : > { %v1017_v5 = vpop.permute.xlu0 %1016  ;;  %v1313_v51 = vld [vmem:[#allocation2 + $0x58] sm:$0xff]  ;;  %1834 = vrot.lane.b32.xlu1 %v6436_v25, %s6044_s21 }
 0x14a   : > { %v1029_v52 = vsel %vm1028_vm9, %v1017_v5, %v1019_v48  ;;  %1428 = vmatpush1.bf16.msra.mxu1 %v1313_v51  ;;  %1832 = vrot.lane.b32.xlu0 %v6503_v61, %s6044_s21 }
 0x14b   : > { %1429 = vmatprep.subr.bf16.mxu1 %v6026_v0  ;;  %1377 = vmatpush1.bf16.msra.mxu0 %v1029_v52 }
 0x14c   : > { %v1023_v6 = vpop.permute.xlu1 %1022  ;;  %v1316_v54 = vld [vmem:[#allocation2 + $0x70] sm:$0xff] }
 0x14d   : > { %v1027_v53 = vpop.permute.xlu0 %1026  ;;  %v1031_v55 = vsel %vm1028_vm9, %v1023_v6, %v1025_v50  ;;  %1836 = vrot.lane.b32.xlu1 %v6445_v30, %s6044_s21  ;;  %v5789_v6 = vld [vmem:[#allocation6 + $0x20] ss:$8 sps:$4 sm:$0xff]  }
 0x14e   : > { %v1032_v56 = vsel %vm1028_vm9, %v1025_v50, %v1027_v53  ;;  %1044 = vst.msk [vmem:[#allocation2 + $0x88] sm:$0xff] %vm289_vm0, %v1027_v53  ;;  %1430 = vmatpush1.bf16.msra.mxu1 %v1316_v54  ;;  %1830 = vrot.lane.b32.xlu0 %v6515_v11, %s6044_s21  ;;  %v5804_v53 = vld [vmem:[#allocation6 + $0x34] ss:$8 sps:$4 sm:$0xff]   ;;  %vm2248_vm9 = vcmask 506880   ;;  %s6056_s21 = smov 38  }
 0x14f   : > { %1431 = vmatprep.subr.bf16.mxu1 %v6026_v0  ;;  %1378 = vmatprep.subr.bf16.mxu0 %v1032_v56 }
 0x150   : > { %1379 = vmatpush1.bf16.msra.mxu0 %v1031_v55  ;;  %v1084_v57 = vpop.permute.xlu1 %1083 }
 0x151   : > { %v1082_v58 = vpop.permute.xlu0 %1081  ;;  %1104 = vst.msk [vmem:[#allocation2 + $0xa0] sm:$0xff] %vm289_vm0, %v1084_v57  ;;  %1901 = vrot.lane.b32.xlu1 %v6415_v12, %s6045_s4 }
 0x152   : > { %v1093_v59 = vsel %vm1091_vm10, %v1082_v58, %v1084_v57  ;;  %1899 = vrot.lane.b32.xlu0 %v6485_v9, %s6045_s4 }
 0x153   : > { %1380 = vmatprep.subr.bf16.mxu0 %v1093_v59 }
 0x154   : > { %v1088_v60 = vpop.permute.xlu1 %1087 }
 0x155   : > { %v1080_v62 = vpop.permute.xlu0 %1079  ;;  %v1319_v63 = vld [vmem:[#allocation2 + $0x88] sm:$0xff]  ;;  %1903 = vrot.lane.b32.xlu1 %v6424_v19, %s6045_s4 }
 0x156   : > { %v1092_v1 = vsel %vm1091_vm10, %v1080_v62, %v1082_v58  ;;  %1432 = vmatpush1.bf16.msra.mxu1 %v1319_v63  ;;  %1897 = vrot.lane.b32.xlu0 %v6494_v10, %s6045_s4  ;;  %v6678_v63 = vld [vmem:[%s6251_s6 + $0x28] ss:$16 sps:$4 sm:$0xff]  }
 0x157   : > { %1433 = vmatprep.subr.bf16.mxu1 %v6026_v0  ;;  %1381 = vmatpush1.bf16.msra.mxu0 %v1092_v1  ;;  %v5806_v1 = vld [vmem:[#allocation6 + $0x30] ss:$8 sps:$4 sm:$0xff]  }
 0x158   : > { %v1086_v2 = vpop.permute.xlu1 %1085  ;;  %v1322_v4 = vld [vmem:[#allocation2 + $0xa0] sm:$0xff] }
 0x159   : > { %v1090_v3 = vpop.permute.xlu0 %1089  ;;  %v1094_v7 = vsel %vm1091_vm10, %v1086_v2, %v1088_v60  ;;  %1909 = vrot.lane.b32.xlu1 %v6436_v25, %s6045_s4  ;;  %v5809_v2 = vld [vmem:[#allocation6 + $0x44] ss:$8 sps:$4 sm:$0xff]  }
 0x15a   : > { %v1095_v8 = vsel %vm1091_vm10, %v1088_v60, %v1090_v3  ;;  %1107 = vst.msk [vmem:[#allocation2 + $0xb8] sm:$0xff] %vm289_vm0, %v1090_v3  ;;  %1434 = vmatpush1.bf16.msra.mxu1 %v1322_v4  ;;  %1907 = vrot.lane.b32.xlu0 %v6503_v61, %s6045_s4  ;;  %vm2323_vm10 = vcmask 498688  }
 0x15b   : > { %1435 = vmatprep.subr.bf16.mxu1 %v6026_v0  ;;  %1382 = vmatprep.subr.bf16.mxu0 %v1095_v8  ;;  %v6688_v8 = vld [vmem:[%s6251_s6 + $0x2c] ss:$16 sps:$4 sm:$0xff]  }
 0x15c   : > { %1383 = vmatpush1.bf16.msra.mxu0 %v1094_v7  ;;  %v1147_v13 = vpop.permute.xlu1 %1146 }
 0x15d   : > { %v1145_v14 = vpop.permute.xlu0 %1144  ;;  %1167 = vst.msk [vmem:[#allocation2 + $0xd0] sm:$0xff] %vm289_vm0, %v1147_v13  ;;  %1911 = vrot.lane.b32.xlu1 %v6445_v30, %s6045_s4 }
 0x15e   : > { %v1156_v15 = vsel %vm1154_vm11, %v1145_v14, %v1147_v13  ;;  %1905 = vrot.lane.b32.xlu0 %v6515_v11, %s6045_s4  ;;  %s6057_s4 = smov 37  }
 0x15f   : > { %1384 = vmatprep.subr.bf16.mxu0 %v1156_v15 }
 0x160   : > { %v1151_v16 = vpop.permute.xlu1 %1150 }
 0x161   : > { %v1143_v17 = vpop.permute.xlu0 %1142  ;;  %v1325_v18 = vld [vmem:[#allocation2 + $0xb8] sm:$0xff]  ;;  %1976 = vrot.lane.b32.xlu1 %v6415_v12, %s6046_s24 }
 0x162   : > { %v1155_v20 = vsel %vm1154_vm11, %v1143_v17, %v1145_v14  ;;  %1436 = vmatpush1.bf16.msra.mxu1 %v1325_v18  ;;  %1974 = vrot.lane.b32.xlu0 %v6485_v9, %s6046_s24 }
 0x163   : > { %1437 = vmatprep.subr.bf16.mxu1 %v6026_v0  ;;  %1385 = vmatpush1.bf16.msra.mxu0 %v1155_v20 }
 0x164   : > { %v1149_v21 = vpop.permute.xlu1 %1148  ;;  %v1328_v23 = vld [vmem:[#allocation2 + $0xd0] sm:$0xff] }
 0x165   : > { %v1153_v22 = vpop.permute.xlu0 %1152  ;;  %v1157_v24 = vsel %vm1154_vm11, %v1149_v21, %v1151_v16  ;;  %1978 = vrot.lane.b32.xlu1 %v6424_v19, %s6046_s24 }
 0x166   : > { %v1158_v26 = vsel %vm1154_vm11, %v1151_v16, %v1153_v22  ;;  %1170 = vst.msk [vmem:[#allocation2 + $0xe8] sm:$0xff] %vm289_vm0, %v1153_v22  ;;  %1438 = vmatpush1.bf16.msra.mxu1 %v1328_v23  ;;  %1972 = vrot.lane.b32.xlu0 %v6494_v10, %s6046_s24  ;;  %vm2398_vm11 = vcmask 490496  }
 0x167   : > { %1439 = vmatprep.subr.bf16.mxu1 %v6026_v0  ;;  %1386 = vmatprep.subr.bf16.mxu0 %v1158_v26 }
 0x168   : > { %1387 = vmatpush1.bf16.msra.mxu0 %v1157_v24  ;;  %v1210_v27 = vpop.permute.xlu1 %1209 }
 0x169   : > { %v1208_v28 = vpop.permute.xlu0 %1207  ;;  %1230 = vst.msk [vmem:[#allocation2 + $0x100] sm:$0xff] %vm289_vm0, %v1210_v27  ;;  %1984 = vrot.lane.b32.xlu1 %v6436_v25, %s6046_s24 }
 0x16a   : > { %v1219_v29 = vsel %vm1217_vm12, %v1208_v28, %v1210_v27  ;;  %1982 = vrot.lane.b32.xlu0 %v6503_v61, %s6046_s24 }
 0x16b   : > { %1388 = vmatprep.subr.bf16.mxu0 %v1219_v29 }
 0x16c   : > { %v1214_v31 = vpop.permute.xlu1 %1213 }
 0x16d   : > { %v1206_v32 = vpop.permute.xlu0 %1205  ;;  %v1331_v33 = vld [vmem:[#allocation2 + $0xe8] sm:$0xff]  ;;  %1986 = vrot.lane.b32.xlu1 %v6445_v30, %s6046_s24 }
 0x16e   : > { %v1218_v34 = vsel %vm1217_vm12, %v1206_v32, %v1208_v28  ;;  %1440 = vmatpush1.bf16.msra.mxu1 %v1331_v33  ;;  %1980 = vrot.lane.b32.xlu0 %v6515_v11, %s6046_s24  ;;  %s6058_s24 = smov 36  }
 0x16f   : > { %1441 = vmatprep.subr.bf16.mxu1 %v6026_v0  ;;  %1389 = vmatpush1.bf16.msra.mxu0 %v1218_v34 }
 0x170   : > { %v1212_v35 = vpop.permute.xlu1 %1211  ;;  %v1334_v41 = vld [vmem:[#allocation2 + $0x100] sm:$0xff] }
 0x171   : > { %v1216_v36 = vpop.permute.xlu0 %1215  ;;  %v1220_v42 = vsel %vm1217_vm12, %v1212_v35, %v1214_v31  ;;  %2236 = vrot.lane.b32.xlu1 %v6415_v12, %s6047_s22 }
 0x172   : > { %v1221_v43 = vsel %vm1217_vm12, %v1214_v31, %v1216_v36  ;;  %1233 = vst.msk [vmem:[#allocation2 + $0x118] sm:$0xff] %vm289_vm0, %v1216_v36  ;;  %1442 = vmatpush1.bf16.msra.mxu1 %v1334_v41  ;;  %2234 = vrot.lane.b32.xlu0 %v6485_v9, %s6047_s22  ;;  %vm2473_vm12 = vcmask 482304  }
 0x173   : > { %1443 = vmatprep.subr.bf16.mxu1 %v6026_v0  ;;  %1390 = vmatprep.subr.bf16.mxu0 %v1221_v43 }
 0x174   : > { %1391 = vmatpush1.bf16.msra.mxu0 %v1220_v42  ;;  %v1273_v44 = vpop.permute.xlu1 %1272  ;;  %v6738_v42 = vld [vmem:[%s6251_s6] ss:$16 sps:$4 sm:$0xff]  }
 0x175   : > { %v1271_v45 = vpop.permute.xlu0 %1270  ;;  %1293 = vst.msk [vmem:[#allocation2 + $0x130] sm:$0xff] %vm289_vm0, %v1273_v44  ;;  %2238 = vrot.lane.b32.xlu1 %v6424_v19, %s6047_s22 }
 0x176   : > { %v1282_v46 = vsel %vm1280_vm13, %v1271_v45, %v1273_v44  ;;  %2232 = vrot.lane.b32.xlu0 %v6494_v10, %s6047_s22 }
 0x177   : > { %1392 = vmatprep.subr.bf16.mxu0 %v1282_v46 }
 0x178   : > { %v1277_v12 = vpop.permute.xlu1 %1276 }
 0x179   : > { %v1269_v47 = vpop.permute.xlu0 %1268  ;;  %v1337_v48 = vld [vmem:[#allocation2 + $0x118] sm:$0xff]  ;;  %2244 = vrot.lane.b32.xlu1 %v6436_v25, %s6047_s22 }
 0x17a   : > { %v1281_v49 = vsel %vm1280_vm13, %v1269_v47, %v1271_v45  ;;  %1444 = vmatpush1.bf16.msra.mxu1 %v1337_v48  ;;  %2242 = vrot.lane.b32.xlu0 %v6503_v61, %s6047_s22  ;;  %v6659_v25 = vld [vmem:[%s6251_s6 + $0x8] ss:$16 sps:$4 sm:$0xff]  }
 0x17b   : > { %1445 = vmatprep.subr.bf16.mxu1 %v6026_v0  ;;  %1393 = vmatpush1.bf16.msra.mxu0 %v1281_v49 }
 0x17c   : > { %v1275_v19 = vpop.permute.xlu1 %1274  ;;  %v1340_v5 = vld [vmem:[#allocation2 + $0x130] sm:$0xff] }
 0x17d   : > { %v1279_v50 = vpop.permute.xlu0 %1278  ;;  %v1283_v51 = vsel %vm1280_vm13, %v1275_v19, %v1277_v12  ;;  %2246 = vrot.lane.b32.xlu1 %v6445_v30, %s6047_s22  ;;  %v6668_v30 = vld [vmem:[%s6251_s6 + $0xc] ss:$16 sps:$4 sm:$0xff]   ;;  %v6757_v19 = vld [vmem:[%s6251_s6 + $0x20] ss:$16 sps:$4 sm:$0xff]  }
 0x17e   : > { %v1284_v52 = vsel %vm1280_vm13, %v1277_v12, %v1279_v50  ;;  %1296 = vst.msk [vmem:[#allocation2 + $0x148] sm:$0xff] %vm289_vm0, %v1279_v50  ;;  %1446 = vmatpush1.bf16.msra.mxu1 %v1340_v5  ;;  %2240 = vrot.lane.b32.xlu0 %v6515_v11, %s6047_s22  ;;  %v6749_v12 = vld [vmem:[%s6251_s6 + $0x24] ss:$16 sps:$4 sm:$0xff]   ;;  %vm2548_vm13 = vcmask 474112   ;;  %s6059_s22 = smov 35  }
 0x17f   : > { %1447 = vmatprep.subr.bf16.mxu1 %v6026_v0  ;;  %1394 = vmatprep.subr.bf16.mxu0 %v1284_v52 }
 0x180   : > { %1395 = vmatpush1.bf16.msra.mxu0 %v1283_v51  ;;  %v1527_v54 = vpop.permute.xlu1 %1526 }
 0x181   : > { %v1525_v55 = vpop.permute.xlu0 %1524  ;;  %2311 = vrot.lane.b32.xlu1 %v6659_v25, %s6048_s9 }
 0x182   : > { %v1540_v56 = vsel %vm1538_vm14, %v1525_v55, %v1527_v54  ;;  %2309 = vrot.lane.b32.xlu0 %v6485_v9, %s6048_s9 }
 0x183   : > { %2078 = vmatprep.subr.bf16.mxu0 %v1540_v56  ;;  %1401 = vmatmul.mubr.bf16.vlgmr.msra.gmra.mrb[0].mxu0 %v5789_v6 }
 0x184   : > { %5190 = vmatprep.mubr.msk.bf16.mxu0 %vm289_vm0, %v5804_v53  ;;  %v1529_v57 = vpop.permute.xlu1 %1528 }
 0x185   : > { %v1523_v58 = vpop.permute.xlu0 %1522  ;;  %v1343_v59 = vld [vmem:[#allocation2 + $0x148] sm:$0xff]  ;;  %v1541_v60 = vsel %vm1538_vm14, %v1527_v54, %v1529_v57  ;;  %2313 = vrot.lane.b32.xlu1 %v6668_v30, %s6048_s9 }
 0x186   : > { %v1539_v62 = vsel %vm1538_vm14, %v1523_v58, %v1525_v55  ;;  %1448 = vmatpush1.bf16.msra.mxu1 %v1343_v59  ;;  %1553 = vst.msk [vmem:[#allocation2 + $0x10] sm:$0xff] %vm289_vm0, %v1541_v60  ;;  %2307 = vrot.lane.b32.xlu0 %v6494_v10, %s6048_s9 }
 0x187   : > { %2131 = vmatprep.subr.bf16.mxu1 %v6026_v0  ;;  %2079 = vmatpush1.bf16.msra.mxu0 %v1539_v62 }
 0x188   : > { %v1535_v3 = vpop.permute.xlu1 %1534 }
 0x189   : > { %v1533_v4 = vpop.permute.xlu0 %1532  ;;  %1454 = vmatmul.mubr.bf16.vlgmr.msra.gmra.mrb[0].mxu1 %v5789_v6  ;;  %2319 = vrot.lane.b32.xlu1 %v6678_v63, %s6048_s9 }
 0x18a   : > { %v1543_v7 = vsel %vm1538_vm14, %v1533_v4, %v1535_v3  ;;  %5192 = vmatprep.mubr.msk.bf16.mxu1 %vm289_vm0, %v5804_v53  ;;  %2317 = vrot.lane.b32.xlu0 %v6503_v61, %s6048_s9 }
 0x18b   : > { %2080 = vmatprep.subr.bf16.mxu0 %v1543_v7  ;;  %1411 = vmatmul.mubr.bf16.gmra.mrb[4].mxu0 %v5806_v1 }
 0x18c   : > { %5253 = vmatprep.mubr.msk.bf16.mxu0 %vm289_vm0, %v5809_v2  ;;  %v1537_v13 = vpop.permute.xlu1 %1536 }
 0x18d   : > { %v1531_v14 = vpop.permute.xlu0 %1530  ;;  %v1544_v15 = vsel %vm1538_vm14, %v1535_v3, %v1537_v13  ;;  %v2014_v17 = vld [vmem:[#allocation2 + $0x10] sm:$0xff]  ;;  %2321 = vrot.lane.b32.xlu1 %v6688_v8, %s6048_s9 }
 0x18e   : > { %v1542_v16 = vsel %vm1538_vm14, %v1531_v14, %v1533_v4  ;;  %1556 = vst.msk [vmem:[#allocation2 + $0x28] sm:$0xff] %vm289_vm0, %v1544_v15  ;;  %2132 = vmatpush1.bf16.msra.mxu1 %v2014_v17  ;;  %2315 = vrot.lane.b32.xlu0 %v6515_v11, %s6048_s9  ;;  %vm2623_vm14 = vcmask 465920   ;;  %s6060_s9 = smov 34  }
 0x18f   : > { %2081 = vmatpush1.bf16.msra.mxu0 %v1542_v16  ;;  %2133 = vmatprep.subr.bf16.mxu1 %v6026_v0 }
 0x190   : > { %v1602_v18 = vpop.permute.xlu1 %1601 }
 0x191   : > { %v1600_v20 = vpop.permute.xlu0 %1599  ;;  %1462 = vmatmul.mubr.bf16.gmra.mrb[4].mxu1 %v5806_v1  ;;  %2386 = vrot.lane.b32.xlu1 %v6659_v25, %s6049_s10 }
 0x192   : > { %v1615_v21 = vsel %vm1613_vm15, %v1600_v20, %v1602_v18  ;;  %5255 = vmatprep.mubr.msk.bf16.mxu1 %vm289_vm0, %v5809_v2  ;;  %2384 = vrot.lane.b32.xlu0 %v6485_v9, %s6049_s10 }
 0x193   : > { %2082 = vmatprep.subr.bf16.mxu0 %v1615_v21 }
 0x194   : > { %v1604_v22 = vpop.permute.xlu1 %1603 }
 0x195   : > { %v1598_v23 = vpop.permute.xlu0 %1597  ;;  %v1616_v24 = vsel %vm1613_vm15, %v1602_v18, %v1604_v22  ;;  %v2017_v27 = vld [vmem:[#allocation2 + $0x28] sm:$0xff]  ;;  %2388 = vrot.lane.b32.xlu1 %v6668_v30, %s6049_s10 }
 0x196   : > { %v1614_v26 = vsel %vm1613_vm15, %v1598_v23, %v1600_v20  ;;  %1628 = vst.msk [vmem:[#allocation2 + $0x40] sm:$0xff] %vm289_vm0, %v1616_v24  ;;  %2134 = vmatpush1.bf16.msra.mxu1 %v2017_v27  ;;  %2382 = vrot.lane.b32.xlu0 %v6494_v10, %s6049_s10  ;;  %v6730_v10 = vld [vmem:[%s6251_s6 + $0x4] ss:$16 sps:$4 sm:$0xff]  }
 0x197   : > { %2083 = vmatpush1.bf16.msra.mxu0 %v1614_v26  ;;  %2135 = vmatprep.subr.bf16.mxu1 %v6026_v0 }
 0x198   : > { %v1610_v9 = vpop.permute.xlu1 %1609 }
 0x199   : > { %v1608_v28 = vpop.permute.xlu0 %1607  ;;  %2394 = vrot.lane.b32.xlu1 %v6678_v63, %s6049_s10 }
 0x19a   : > { %v1618_v29 = vsel %vm1613_vm15, %v1608_v28, %v1610_v9  ;;  %2392 = vrot.lane.b32.xlu0 %v6503_v61, %s6049_s10 }
 0x19b   : > { %2084 = vmatprep.subr.bf16.mxu0 %v1618_v29 }
 0x19c   : > { %v1612_v31 = vpop.permute.xlu1 %1611 }
 0x19d   : > { %v1606_v32 = vpop.permute.xlu0 %1605  ;;  %v1619_v33 = vsel %vm1613_vm15, %v1610_v9, %v1612_v31  ;;  %v2020_v35 = vld [vmem:[#allocation2 + $0x40] sm:$0xff]  ;;  %2396 = vrot.lane.b32.xlu1 %v6688_v8, %s6049_s10 }
 0x19e   : > { %v1617_v34 = vsel %vm1613_vm15, %v1606_v32, %v1608_v28  ;;  %1631 = vst.msk [vmem:[#allocation2 + $0x58] sm:$0xff] %vm289_vm0, %v1619_v33  ;;  %2136 = vmatpush1.bf16.msra.mxu1 %v2020_v35  ;;  %2390 = vrot.lane.b32.xlu0 %v6515_v11, %s6049_s10  ;;  %vm2698_vm15 = vcmask 457728   ;;  %s6061_s10 = smov 18  }
 0x19f   : > { %2085 = vmatpush1.bf16.msra.mxu0 %v1617_v34  ;;  %2137 = vmatprep.subr.bf16.mxu1 %v6026_v0 }
 0x1a0   : > { %v1677_v61 = vpop.permute.xlu1 %1676 }
 0x1a1   : > { %v1675_v36 = vpop.permute.xlu0 %1674  ;;  %2461 = vrot.lane.b32.xlu1 %v6659_v25, %s6050_s20 }
 0x1a2   : > { %v1690_v41 = vsel %vm1688_vm1, %v1675_v36, %v1677_v61  ;;  %2459 = vrot.lane.b32.xlu0 %v6730_v10, %s6050_s20 }
 0x1a3   : > { %2086 = vmatprep.subr.bf16.mxu0 %v1690_v41 }
 0x1a4   : > { %v1679_v43 = vpop.permute.xlu1 %1678 }
 0x1a5   : > { %v1673_v44 = vpop.permute.xlu0 %1672  ;;  %v1691_v11 = vsel %vm1688_vm1, %v1677_v61, %v1679_v43  ;;  %v2023_v46 = vld [vmem:[#allocation2 + $0x58] sm:$0xff]  ;;  %2463 = vrot.lane.b32.xlu1 %v6668_v30, %s6050_s20 }
 0x1a6   : > { %v1689_v45 = vsel %vm1688_vm1, %v1673_v44, %v1675_v36  ;;  %1703 = vst.msk [vmem:[#allocation2 + $0x70] sm:$0xff] %vm289_vm0, %v1691_v11  ;;  %2138 = vmatpush1.bf16.msra.mxu1 %v2023_v46  ;;  %2457 = vrot.lane.b32.xlu0 %v6738_v42, %s6050_s20 }
 0x1a7   : > { %2087 = vmatpush1.bf16.msra.mxu0 %v1689_v45  ;;  %2139 = vmatprep.subr.bf16.mxu1 %v6026_v0 }
 0x1a8   : > { %v1685_v47 = vpop.permute.xlu1 %1684 }
 0x1a9   : > { %v1683_v48 = vpop.permute.xlu0 %1682  ;;  %2469 = vrot.lane.b32.xlu1 %v6678_v63, %s6050_s20 }
 0x1aa   : > { %v1693_v49 = vsel %vm1688_vm1, %v1683_v48, %v1685_v47  ;;  %2467 = vrot.lane.b32.xlu0 %v6749_v12, %s6050_s20 }
 0x1ab   : > { %2088 = vmatprep.subr.bf16.mxu0 %v1693_v49 }
 0x1ac   : > { %v1687_v50 = vpop.permute.xlu1 %1686 }
 0x1ad   : > { %v1681_v5 = vpop.permute.xlu0 %1680  ;;  %v1694_v51 = vsel %vm1688_vm1, %v1685_v47, %v1687_v50  ;;  %v2026_v6 = vld [vmem:[#allocation2 + $0x70] sm:$0xff]  ;;  %2471 = vrot.lane.b32.xlu1 %v6688_v8, %s6050_s20 }
 0x1ae   : > { %v1692_v52 = vsel %vm1688_vm1, %v1681_v5, %v1683_v48  ;;  %1706 = vst.msk [vmem:[#allocation2 + $0x88] sm:$0xff] %vm289_vm0, %v1694_v51  ;;  %2140 = vmatpush1.bf16.msra.mxu1 %v2026_v6  ;;  %2465 = vrot.lane.b32.xlu0 %v6757_v19, %s6050_s20  ;;  %vm2958_vm1 = vcmask 326656   ;;  %s6062_s20 = smov 17  }
 0x1af   : > { %2089 = vmatpush1.bf16.msra.mxu0 %v1692_v52  ;;  %2141 = vmatprep.subr.bf16.mxu1 %v6026_v0 }
 0x1b0   : > { %v1752_v53 = vpop.permute.xlu1 %1751 }
 0x1b1   : > { %v1750_v54 = vpop.permute.xlu0 %1749  ;;  %2536 = vrot.lane.b32.xlu1 %v6659_v25, %s6051_s11 }
 0x1b2   : > { %v1765_v55 = vsel %vm1763_vm2, %v1750_v54, %v1752_v53  ;;  %2534 = vrot.lane.b32.xlu0 %v6730_v10, %s6051_s11 }
 0x1b3   : > { %2090 = vmatprep.subr.bf16.mxu0 %v1765_v55 }
 0x1b4   : > { %v1754_v56 = vpop.permute.xlu1 %1753 }
 0x1b5   : > { %v1748_v57 = vpop.permute.xlu0 %1747  ;;  %v1766_v58 = vsel %vm1763_vm2, %v1752_v53, %v1754_v56  ;;  %v2029_v60 = vld [vmem:[#allocation2 + $0x88] sm:$0xff]  ;;  %2538 = vrot.lane.b32.xlu1 %v6668_v30, %s6051_s11 }
 0x1b6   : > { %v1764_v59 = vsel %vm1763_vm2, %v1748_v57, %v1750_v54  ;;  %1778 = vst.msk [vmem:[#allocation2 + $0xa0] sm:$0xff] %vm289_vm0, %v1766_v58  ;;  %2142 = vmatpush1.bf16.msra.mxu1 %v2029_v60  ;;  %2532 = vrot.lane.b32.xlu0 %v6738_v42, %s6051_s11 }
 0x1b7   : > { %2091 = vmatpush1.bf16.msra.mxu0 %v1764_v59  ;;  %2143 = vmatprep.subr.bf16.mxu1 %v6026_v0 }
 0x1b8   : > { %v1760_v62 = vpop.permute.xlu1 %1759 }
 0x1b9   : > { %v1758_v1 = vpop.permute.xlu0 %1757  ;;  %2544 = vrot.lane.b32.xlu1 %v6678_v63, %s6051_s11 }
 0x1ba   : > { %v1768_v2 = vsel %vm1763_vm2, %v1758_v1, %v1760_v62  ;;  %2542 = vrot.lane.b32.xlu0 %v6749_v12, %s6051_s11 }
 0x1bb   : > { %2092 = vmatprep.subr.bf16.mxu0 %v1768_v2 }
 0x1bc   : > { %v1762_v3 = vpop.permute.xlu1 %1761 }
 0x1bd   : > { %v1756_v4 = vpop.permute.xlu0 %1755  ;;  %v1769_v7 = vsel %vm1763_vm2, %v1760_v62, %v1762_v3  ;;  %v2032_v14 = vld [vmem:[#allocation2 + $0xa0] sm:$0xff]  ;;  %2546 = vrot.lane.b32.xlu1 %v6688_v8, %s6051_s11 }
 0x1be   : > { %v1767_v13 = vsel %vm1763_vm2, %v1756_v4, %v1758_v1  ;;  %1781 = vst.msk [vmem:[#allocation2 + $0xb8] sm:$0xff] %vm289_vm0, %v1769_v7  ;;  %2144 = vmatpush1.bf16.msra.mxu1 %v2032_v14  ;;  %2540 = vrot.lane.b32.xlu0 %v6757_v19, %s6051_s11  ;;  %v5807_v7 = vld [vmem:[#allocation6 + $0x40] ss:$8 sps:$4 sm:$0xff]   ;;  %vm3033_vm2 = vcmask 318464   ;;  %s6063_s11 = smov 16  }
 0x1bf   : > { %2093 = vmatpush1.bf16.msra.mxu0 %v1767_v13  ;;  %2145 = vmatprep.subr.bf16.mxu1 %v6026_v0  ;;  %v5822_v13 = vld [vmem:[#allocation6 + $0x54] ss:$8 sps:$4 sm:$0xff]  }
 0x1c0   : > { %v1827_v15 = vpop.permute.xlu1 %1826 }
 0x1c1   : > { %v1825_v16 = vpop.permute.xlu0 %1824  ;;  %2611 = vrot.lane.b32.xlu1 %v6659_v25, %s6052_s18 }
 0x1c2   : > { %v1840_v17 = vsel %vm1838_vm3, %v1825_v16, %v1827_v15  ;;  %2609 = vrot.lane.b32.xlu0 %v6730_v10, %s6052_s18 }
 0x1c3   : > { %2094 = vmatprep.subr.bf16.mxu0 %v1840_v17 }
 0x1c4   : > { %v1829_v18 = vpop.permute.xlu1 %1828 }
 0x1c5   : > { %v1823_v20 = vpop.permute.xlu0 %1822  ;;  %v1841_v21 = vsel %vm1838_vm3, %v1827_v15, %v1829_v18  ;;  %v2035_v23 = vld [vmem:[#allocation2 + $0xb8] sm:$0xff]  ;;  %2613 = vrot.lane.b32.xlu1 %v6668_v30, %s6052_s18 }
 0x1c6   : > { %v1839_v22 = vsel %vm1838_vm3, %v1823_v20, %v1825_v16  ;;  %1853 = vst.msk [vmem:[#allocation2 + $0xd0] sm:$0xff] %vm289_vm0, %v1841_v21  ;;  %2146 = vmatpush1.bf16.msra.mxu1 %v2035_v23  ;;  %2607 = vrot.lane.b32.xlu0 %v6738_v42, %s6052_s18  ;;  %v5824_v23 = vld [vmem:[#allocation6 + $0x50] ss:$8 sps:$4 sm:$0xff]  }
 0x1c7   : > { %2095 = vmatpush1.bf16.msra.mxu0 %v1839_v22  ;;  %2147 = vmatprep.subr.bf16.mxu1 %v6026_v0 }
 0x1c8   : > { %v1835_v24 = vpop.permute.xlu1 %1834 }
 0x1c9   : > { %v1833_v26 = vpop.permute.xlu0 %1832  ;;  %2619 = vrot.lane.b32.xlu1 %v6678_v63, %s6052_s18 }
 0x1ca   : > { %v1843_v27 = vsel %vm1838_vm3, %v1833_v26, %v1835_v24  ;;  %2617 = vrot.lane.b32.xlu0 %v6749_v12, %s6052_s18 }
 0x1cb   : > { %2096 = vmatprep.subr.bf16.mxu0 %v1843_v27  ;;  %v5827_v27 = vld [vmem:[#allocation6 + $0x64] ss:$8 sps:$4 sm:$0xff]  }
 0x1cc   : > { %v1837_v9 = vpop.permute.xlu1 %1836 }
 0x1cd   : > { %v1831_v28 = vpop.permute.xlu0 %1830  ;;  %v1844_v29 = vsel %vm1838_vm3, %v1835_v24, %v1837_v9  ;;  %v2038_v32 = vld [vmem:[#allocation2 + $0xd0] sm:$0xff]  ;;  %2621 = vrot.lane.b32.xlu1 %v6688_v8, %s6052_s18 }
 0x1ce   : > { %v1842_v31 = vsel %vm1838_vm3, %v1831_v28, %v1833_v26  ;;  %1856 = vst.msk [vmem:[#allocation2 + $0xe8] sm:$0xff] %vm289_vm0, %v1844_v29  ;;  %2148 = vmatpush1.bf16.msra.mxu1 %v2038_v32  ;;  %2615 = vrot.lane.b32.xlu0 %v6757_v19, %s6052_s18  ;;  %vm3108_vm3 = vcmask 310272   ;;  %s6064_s18 = smov 15  }
 0x1cf   : > { %2097 = vmatpush1.bf16.msra.mxu0 %v1842_v31  ;;  %2149 = vmatprep.subr.bf16.mxu1 %v6026_v0 }
 0x1d0   : > { %v1902_v33 = vpop.permute.xlu1 %1901 }
 0x1d1   : > { %v1900_v34 = vpop.permute.xlu0 %1899  ;;  %2686 = vrot.lane.b32.xlu1 %v6659_v25, %s6053_s26 }
 0x1d2   : > { %v1915_v35 = vsel %vm1913_vm7, %v1900_v34, %v1902_v33  ;;  %2684 = vrot.lane.b32.xlu0 %v6730_v10, %s6053_s26 }
 0x1d3   : > { %2098 = vmatprep.subr.bf16.mxu0 %v1915_v35 }
 0x1d4   : > { %v1904_v61 = vpop.permute.xlu1 %1903 }
 0x1d5   : > { %v1898_v36 = vpop.permute.xlu0 %1897  ;;  %v1916_v41 = vsel %vm1913_vm7, %v1902_v33, %v1904_v61  ;;  %v2041_v44 = vld [vmem:[#allocation2 + $0xe8] sm:$0xff]  ;;  %2688 = vrot.lane.b32.xlu1 %v6668_v30, %s6053_s26 }
 0x1d6   : > { %v1914_v43 = vsel %vm1913_vm7, %v1898_v36, %v1900_v34  ;;  %1928 = vst.msk [vmem:[#allocation2 + $0x100] sm:$0xff] %vm289_vm0, %v1916_v41  ;;  %2150 = vmatpush1.bf16.msra.mxu1 %v2041_v44  ;;  %2682 = vrot.lane.b32.xlu0 %v6738_v42, %s6053_s26 }
 0x1d7   : > { %2099 = vmatpush1.bf16.msra.mxu0 %v1914_v43  ;;  %2151 = vmatprep.subr.bf16.mxu1 %v6026_v0 }
 0x1d8   : > { %v1910_v11 = vpop.permute.xlu1 %1909 }
 0x1d9   : > { %v1908_v45 = vpop.permute.xlu0 %1907  ;;  %2694 = vrot.lane.b32.xlu1 %v6678_v63, %s6053_s26 }
 0x1da   : > { %v1918_v46 = vsel %vm1913_vm7, %v1908_v45, %v1910_v11  ;;  %2692 = vrot.lane.b32.xlu0 %v6749_v12, %s6053_s26 }
 0x1db   : > { %2100 = vmatprep.subr.bf16.mxu0 %v1918_v46 }
 0x1dc   : > { %v1912_v47 = vpop.permute.xlu1 %1911 }
 0x1dd   : > { %v1906_v48 = vpop.permute.xlu0 %1905  ;;  %v1919_v49 = vsel %vm1913_vm7, %v1910_v11, %v1912_v47  ;;  %v2044_v5 = vld [vmem:[#allocation2 + $0x100] sm:$0xff]  ;;  %2696 = vrot.lane.b32.xlu1 %v6688_v8, %s6053_s26 }
 0x1de   : > { %v1917_v50 = vsel %vm1913_vm7, %v1906_v48, %v1908_v45  ;;  %1931 = vst.msk [vmem:[#allocation2 + $0x118] sm:$0xff] %vm289_vm0, %v1919_v49  ;;  %2152 = vmatpush1.bf16.msra.mxu1 %v2044_v5  ;;  %2690 = vrot.lane.b32.xlu0 %v6757_v19, %s6053_s26  ;;  %v6924_v5 = vld [vmem:[%s6251_s6 + $0x8] ss:$16 sps:$4 sm:$0xff]   ;;  %vm3183_vm7 = vcmask 302080   ;;  %s6065_s26 = smov 14  }
 0x1df   : > { %2101 = vmatpush1.bf16.msra.mxu0 %v1917_v50  ;;  %2153 = vmatprep.subr.bf16.mxu1 %v6026_v0 }
 0x1e0   : > { %v1977_v51 = vpop.permute.xlu1 %1976 }
 0x1e1   : > { %v1975_v52 = vpop.permute.xlu0 %1974  ;;  %2946 = vrot.lane.b32.xlu1 %v6659_v25, %s6054_s7 }
 0x1e2   : > { %v1990_v6 = vsel %vm1988_vm8, %v1975_v52, %v1977_v51  ;;  %2944 = vrot.lane.b32.xlu0 %v6730_v10, %s6054_s7 }
 0x1e3   : > { %2102 = vmatprep.subr.bf16.mxu0 %v1990_v6 }
 0x1e4   : > { %v1979_v53 = vpop.permute.xlu1 %1978 }
 0x1e5   : > { %v1973_v54 = vpop.permute.xlu0 %1972  ;;  %v1991_v55 = vsel %vm1988_vm8, %v1977_v51, %v1979_v53  ;;  %v2047_v57 = vld [vmem:[#allocation2 + $0x118] sm:$0xff]  ;;  %2948 = vrot.lane.b32.xlu1 %v6668_v30, %s6054_s7 }
 0x1e6   : > { %v1989_v56 = vsel %vm1988_vm8, %v1973_v54, %v1975_v52  ;;  %2003 = vst.msk [vmem:[#allocation2 + $0x130] sm:$0xff] %vm289_vm0, %v1991_v55  ;;  %2154 = vmatpush1.bf16.msra.mxu1 %v2047_v57  ;;  %2942 = vrot.lane.b32.xlu0 %v6738_v42, %s6054_s7  ;;  %v6943_v57 = vld [vmem:[%s6251_s6 + $0x28] ss:$16 sps:$4 sm:$0xff]  }
 0x1e7   : > { %2103 = vmatpush1.bf16.msra.mxu0 %v1989_v56  ;;  %2155 = vmatprep.subr.bf16.mxu1 %v6026_v0 }
 0x1e8   : > { %v1985_v58 = vpop.permute.xlu1 %1984 }
 0x1e9   : > { %v1983_v59 = vpop.permute.xlu0 %1982  ;;  %2954 = vrot.lane.b32.xlu1 %v6678_v63, %s6054_s7 }
 0x1ea   : > { %v1993_v60 = vsel %vm1988_vm8, %v1983_v59, %v1985_v58  ;;  %2952 = vrot.lane.b32.xlu0 %v6749_v12, %s6054_s7 }
 0x1eb   : > { %2104 = vmatprep.subr.bf16.mxu0 %v1993_v60 }
 0x1ec   : > { %v1987_v62 = vpop.permute.xlu1 %1986 }
 0x1ed   : > { %v1981_v1 = vpop.permute.xlu0 %1980  ;;  %v1994_v2 = vsel %vm1988_vm8, %v1985_v58, %v1987_v62  ;;  %v2050_v4 = vld [vmem:[#allocation2 + $0x130] sm:$0xff]  ;;  %2956 = vrot.lane.b32.xlu1 %v6688_v8, %s6054_s7  ;;  %v6953_v62 = vld [vmem:[%s6251_s6 + $0x2c] ss:$16 sps:$4 sm:$0xff]  }
 0x1ee   : > { %v1992_v3 = vsel %vm1988_vm8, %v1981_v1, %v1983_v59  ;;  %2006 = vst.msk [vmem:[#allocation2 + $0x148] sm:$0xff] %vm289_vm0, %v1994_v2  ;;  %2156 = vmatpush1.bf16.msra.mxu1 %v2050_v4  ;;  %2950 = vrot.lane.b32.xlu0 %v6757_v19, %s6054_s7  ;;  %vm3258_vm8 = vcmask 293888   ;;  %s6066_s7 = smov 13  }
 0x1ef   : > { %2105 = vmatpush1.bf16.msra.mxu0 %v1992_v3  ;;  %2157 = vmatprep.subr.bf16.mxu1 %v6026_v0 }
 0x1f0   : > { %v2237_v14 = vpop.permute.xlu1 %2236 }
 0x1f1   : > { %v2235_v15 = vpop.permute.xlu0 %2234  ;;  %3021 = vrot.lane.b32.xlu1 %v6659_v25, %s6055_s8 }
 0x1f2   : > { %v2250_v16 = vsel %vm2248_vm9, %v2235_v15, %v2237_v14  ;;  %2111 = vmatmul.mubr.bf16.vlgmr.msra.gmra.mrb[0].mxu0 %v5807_v7  ;;  %3019 = vrot.lane.b32.xlu0 %v6730_v10, %s6055_s8 }
 0x1f3   : > { %2788 = vmatprep.subr.bf16.mxu0 %v2250_v16  ;;  %5254 = vmatprep.mubr.msk.bf16.mxu0 %vm289_vm0, %v5822_v13 }
 0x1f4   : > { %v2239_v17 = vpop.permute.xlu1 %2238 }
 0x1f5   : > { %v2233_v18 = vpop.permute.xlu0 %2232  ;;  %v2251_v20 = vsel %vm2248_vm9, %v2237_v14, %v2239_v17  ;;  %v2053_v22 = vld [vmem:[#allocation2 + $0x148] sm:$0xff]  ;;  %3023 = vrot.lane.b32.xlu1 %v6668_v30, %s6055_s8 }
 0x1f6   : > { %v2249_v21 = vsel %vm2248_vm9, %v2233_v18, %v2235_v15  ;;  %2263 = vst.msk [vmem:[#allocation2 + $0x10] sm:$0xff] %vm289_vm0, %v2251_v20  ;;  %2158 = vmatpush1.bf16.msra.mxu1 %v2053_v22  ;;  %3017 = vrot.lane.b32.xlu0 %v6738_v42, %s6055_s8 }
 0x1f7   : > { %2789 = vmatpush1.bf16.msra.mxu0 %v2249_v21  ;;  %2841 = vmatprep.subr.bf16.mxu1 %v6026_v0 }
 0x1f8   : > { %v2245_v24 = vpop.permute.xlu1 %2244 }
 0x1f9   : > { %v2243_v26 = vpop.permute.xlu0 %2242  ;;  %2164 = vmatmul.mubr.bf16.vlgmr.msra.gmra.mrb[0].mxu1 %v5807_v7  ;;  %3029 = vrot.lane.b32.xlu1 %v6678_v63, %s6055_s8 }
 0x1fa   : > { %v2253_v9 = vsel %vm2248_vm9, %v2243_v26, %v2245_v24  ;;  %5256 = vmatprep.mubr.msk.bf16.mxu1 %vm289_vm0, %v5822_v13  ;;  %3027 = vrot.lane.b32.xlu0 %v6749_v12, %s6055_s8 }
 0x1fb   : > { %2790 = vmatprep.subr.bf16.mxu0 %v2253_v9  ;;  %2121 = vmatmul.mubr.bf16.gmra.mrb[4].mxu0 %v5824_v23 }
 0x1fc   : > { %v2247_v28 = vpop.permute.xlu1 %2246  ;;  %5317 = vmatprep.mubr.msk.bf16.mxu0 %vm289_vm0, %v5827_v27 }
 0x1fd   : > { %v2241_v29 = vpop.permute.xlu0 %2240  ;;  %v2254_v31 = vsel %vm2248_vm9, %v2245_v24, %v2247_v28  ;;  %v2724_v33 = vld [vmem:[#allocation2 + $0x10] sm:$0xff]  ;;  %3031 = vrot.lane.b32.xlu1 %v6688_v8, %s6055_s8 }
 0x1fe   : > { %v2252_v32 = vsel %vm2248_vm9, %v2241_v29, %v2243_v26  ;;  %2266 = vst.msk [vmem:[#allocation2 + $0x28] sm:$0xff] %vm289_vm0, %v2254_v31  ;;  %2842 = vmatpush1.bf16.msra.mxu1 %v2724_v33  ;;  %3025 = vrot.lane.b32.xlu0 %v6757_v19, %s6055_s8  ;;  %vm3333_vm9 = vcmask 285696   ;;  %s6067_s8 = smov 12  }
 0x1ff   : > { %2791 = vmatpush1.bf16.msra.mxu0 %v2252_v32  ;;  %2843 = vmatprep.subr.bf16.mxu1 %v6026_v0  ;;  %v7000_v32 = vld [vmem:[%s6251_s6] ss:$16 sps:$4 sm:$0xff]  }
 0x200   : > { %v2312_v34 = vpop.permute.xlu1 %2311 }
 0x201   : > { %v2310_v35 = vpop.permute.xlu0 %2309  ;;  %3096 = vrot.lane.b32.xlu1 %v6659_v25, %s6056_s21  ;;  %2172 = vmatmul.mubr.bf16.gmra.mrb[4].mxu1 %v5824_v23 }
 0x202   : > { %v2325_v61 = vsel %vm2323_vm10, %v2310_v35, %v2312_v34  ;;  %5319 = vmatprep.mubr.msk.bf16.mxu1 %vm289_vm0, %v5827_v27  ;;  %3094 = vrot.lane.b32.xlu0 %v6730_v10, %s6056_s21 }
 0x203   : > { %2792 = vmatprep.subr.bf16.mxu0 %v2325_v61 }
 0x204   : > { %v2314_v36 = vpop.permute.xlu1 %2313 }
 0x205   : > { %v2308_v41 = vpop.permute.xlu0 %2307  ;;  %v2326_v43 = vsel %vm2323_vm10, %v2312_v34, %v2314_v36  ;;  %v2727_v11 = vld [vmem:[#allocation2 + $0x28] sm:$0xff]  ;;  %3098 = vrot.lane.b32.xlu1 %v6668_v30, %s6056_s21  ;;  %v7011_v36 = vld [vmem:[%s6251_s6 + $0x24] ss:$16 sps:$4 sm:$0xff]  }
 0x206   : > { %v2324_v44 = vsel %vm2323_vm10, %v2308_v41, %v2310_v35  ;;  %2338 = vst.msk [vmem:[#allocation2 + $0x40] sm:$0xff] %vm289_vm0, %v2326_v43  ;;  %2844 = vmatpush1.bf16.msra.mxu1 %v2727_v11  ;;  %3092 = vrot.lane.b32.xlu0 %v6738_v42, %s6056_s21  ;;  %v7019_v11 = vld [vmem:[%s6251_s6 + $0x20] ss:$16 sps:$4 sm:$0xff]  }
 0x207   : > { %2793 = vmatpush1.bf16.msra.mxu0 %v2324_v44  ;;  %2845 = vmatprep.subr.bf16.mxu1 %v6026_v0 }
 0x208   : > { %v2320_v25 = vpop.permute.xlu1 %2319 }
 0x209   : > { %v2318_v45 = vpop.permute.xlu0 %2317  ;;  %3104 = vrot.lane.b32.xlu1 %v6678_v63, %s6056_s21 }
 0x20a   : > { %v2328_v46 = vsel %vm2323_vm10, %v2318_v45, %v2320_v25  ;;  %3102 = vrot.lane.b32.xlu0 %v6749_v12, %s6056_s21 }
 0x20b   : > { %2794 = vmatprep.subr.bf16.mxu0 %v2328_v46 }
 0x20c   : > { %v2322_v30 = vpop.permute.xlu1 %2321 }
 0x20d   : > { %v2316_v47 = vpop.permute.xlu0 %2315  ;;  %v2329_v48 = vsel %vm2323_vm10, %v2320_v25, %v2322_v30  ;;  %v2730_v50 = vld [vmem:[#allocation2 + $0x40] sm:$0xff]  ;;  %3106 = vrot.lane.b32.xlu1 %v6688_v8, %s6056_s21  ;;  %v6934_v8 = vld [vmem:[%s6251_s6 + $0xc] ss:$16 sps:$4 sm:$0xff]  }
 0x20e   : > { %v2327_v49 = vsel %vm2323_vm10, %v2316_v47, %v2318_v45  ;;  %2341 = vst.msk [vmem:[#allocation2 + $0x58] sm:$0xff] %vm289_vm0, %v2329_v48  ;;  %2846 = vmatpush1.bf16.msra.mxu1 %v2730_v50  ;;  %3100 = vrot.lane.b32.xlu0 %v6757_v19, %s6056_s21  ;;  %vm3408_vm10 = vcmask 277504   ;;  %s6071_s21 = smov 118  }
 0x20f   : > { %2795 = vmatpush1.bf16.msra.mxu0 %v2327_v49  ;;  %2847 = vmatprep.subr.bf16.mxu1 %v6026_v0 }
 0x210   : > { %v2387_v63 = vpop.permute.xlu1 %2386 }
 0x211   : > { %v2385_v51 = vpop.permute.xlu0 %2384  ;;  %3171 = vrot.lane.b32.xlu1 %v6924_v5, %s6057_s4 }
 0x212   : > { %v2400_v52 = vsel %vm2398_vm11, %v2385_v51, %v2387_v63  ;;  %3169 = vrot.lane.b32.xlu0 %v6730_v10, %s6057_s4 }
 0x213   : > { %2796 = vmatprep.subr.bf16.mxu0 %v2400_v52 }
 0x214   : > { %v2389_v6 = vpop.permute.xlu1 %2388 }
 0x215   : > { %v2383_v53 = vpop.permute.xlu0 %2382  ;;  %v2401_v54 = vsel %vm2398_vm11, %v2387_v63, %v2389_v6  ;;  %v2733_v56 = vld [vmem:[#allocation2 + $0x58] sm:$0xff]  ;;  %3173 = vrot.lane.b32.xlu1 %v6934_v8, %s6057_s4 }
 0x216   : > { %v2399_v55 = vsel %vm2398_vm11, %v2383_v53, %v2385_v51  ;;  %2413 = vst.msk [vmem:[#allocation2 + $0x70] sm:$0xff] %vm289_vm0, %v2401_v54  ;;  %2848 = vmatpush1.bf16.msra.mxu1 %v2733_v56  ;;  %3167 = vrot.lane.b32.xlu0 %v6738_v42, %s6057_s4 }
 0x217   : > { %2797 = vmatpush1.bf16.msra.mxu0 %v2399_v55  ;;  %2849 = vmatprep.subr.bf16.mxu1 %v6026_v0 }
 0x218   : > { %v2395_v58 = vpop.permute.xlu1 %2394 }
 0x219   : > { %v2393_v59 = vpop.permute.xlu0 %2392  ;;  %3179 = vrot.lane.b32.xlu1 %v6943_v57, %s6057_s4 }
 0x21a   : > { %v2403_v60 = vsel %vm2398_vm11, %v2393_v59, %v2395_v58  ;;  %3177 = vrot.lane.b32.xlu0 %v6749_v12, %s6057_s4 }
 0x21b   : > { %2798 = vmatprep.subr.bf16.mxu0 %v2403_v60 }
 0x21c   : > { %v2397_v1 = vpop.permute.xlu1 %2396 }
 0x21d   : > { %v2391_v2 = vpop.permute.xlu0 %2390  ;;  %v2404_v3 = vsel %vm2398_vm11, %v2395_v58, %v2397_v1  ;;  %v2736_v7 = vld [vmem:[#allocation2 + $0x70] sm:$0xff]  ;;  %3181 = vrot.lane.b32.xlu1 %v6953_v62, %s6057_s4 }
 0x21e   : > { %v2402_v4 = vsel %vm2398_vm11, %v2391_v2, %v2393_v59  ;;  %2416 = vst.msk [vmem:[#allocation2 + $0x88] sm:$0xff] %vm289_vm0, %v2404_v3  ;;  %2850 = vmatpush1.bf16.msra.mxu1 %v2736_v7  ;;  %3175 = vrot.lane.b32.xlu0 %v6757_v19, %s6057_s4  ;;  %vm3668_vm11 = vcmask 146432  }
 0x21f   : > { %2799 = vmatpush1.bf16.msra.mxu0 %v2402_v4  ;;  %2851 = vmatprep.subr.bf16.mxu1 %v6026_v0 }
 0x220   : > { %v2462_v13 = vpop.permute.xlu1 %2461 }
 0x221   : > { %v2460_v14 = vpop.permute.xlu0 %2459  ;;  %3246 = vrot.lane.b32.xlu1 %v6924_v5, %s6058_s24 }
 0x222   : > { %v2475_v15 = vsel %vm2473_vm12, %v2460_v14, %v2462_v13  ;;  %3244 = vrot.lane.b32.xlu0 %v6730_v10, %s6058_s24 }
 0x223   : > { %2800 = vmatprep.subr.bf16.mxu0 %v2475_v15 }
 0x224   : > { %v2464_v16 = vpop.permute.xlu1 %2463 }
 0x225   : > { %v2458_v17 = vpop.permute.xlu0 %2457  ;;  %v2476_v18 = vsel %vm2473_vm12, %v2462_v13, %v2464_v16  ;;  %v2739_v21 = vld [vmem:[#allocation2 + $0x88] sm:$0xff]  ;;  %3248 = vrot.lane.b32.xlu1 %v6934_v8, %s6058_s24 }
 0x226   : > { %v2474_v20 = vsel %vm2473_vm12, %v2458_v17, %v2460_v14  ;;  %2488 = vst.msk [vmem:[#allocation2 + $0xa0] sm:$0xff] %vm289_vm0, %v2476_v18  ;;  %2852 = vmatpush1.bf16.msra.mxu1 %v2739_v21  ;;  %3242 = vrot.lane.b32.xlu0 %v6738_v42, %s6058_s24  ;;  %v6992_v42 = vld [vmem:[%s6251_s6 + $0x4] ss:$16 sps:$4 sm:$0xff]  }
 0x227   : > { %2801 = vmatpush1.bf16.msra.mxu0 %v2474_v20  ;;  %2853 = vmatprep.subr.bf16.mxu1 %v6026_v0 }
 0x228   : > { %v2470_v10 = vpop.permute.xlu1 %2469 }
 0x229   : > { %v2468_v22 = vpop.permute.xlu0 %2467  ;;  %3254 = vrot.lane.b32.xlu1 %v6943_v57, %s6058_s24 }
 0x22a   : > { %v2478_v23 = vsel %vm2473_vm12, %v2468_v22, %v2470_v10  ;;  %3252 = vrot.lane.b32.xlu0 %v6749_v12, %s6058_s24 }
 0x22b   : > { %2802 = vmatprep.subr.bf16.mxu0 %v2478_v23 }
 0x22c   : > { %v2472_v24 = vpop.permute.xlu1 %2471 }
 0x22d   : > { %v2466_v26 = vpop.permute.xlu0 %2465  ;;  %v2479_v27 = vsel %vm2473_vm12, %v2470_v10, %v2472_v24  ;;  %v2742_v28 = vld [vmem:[#allocation2 + $0xa0] sm:$0xff]  ;;  %3256 = vrot.lane.b32.xlu1 %v6953_v62, %s6058_s24 }
 0x22e   : > { %v2477_v9 = vsel %vm2473_vm12, %v2466_v26, %v2468_v22  ;;  %2491 = vst.msk [vmem:[#allocation2 + $0xb8] sm:$0xff] %vm289_vm0, %v2479_v27  ;;  %2854 = vmatpush1.bf16.msra.mxu1 %v2742_v28  ;;  %3250 = vrot.lane.b32.xlu0 %v6757_v19, %s6058_s24  ;;  %v5825_v27 = vld [vmem:[#allocation6 + $0x60] ss:$8 sps:$4 sm:$0xff]   ;;  %vm3743_vm12 = vcmask 138240   ;;  %s5612_s24 = smul.u32 1536, %s6010_s15  ;;  %s4970_s15 = scalar_lea.sflag [#allocation5], %s6247_s27 }
 0x22f   : > { %2803 = vmatpush1.bf16.msra.mxu0 %v2477_v9  ;;  %2855 = vmatprep.subr.bf16.mxu1 %v6026_v0  ;;  %v5840_v9 = vld [vmem:[#allocation6 + $0x74] ss:$8 sps:$4 sm:$0xff]  }
 0x230   : > { %v2537_v12 = vpop.permute.xlu1 %2536 }
 0x231   : > { %v2535_v29 = vpop.permute.xlu0 %2534  ;;  %3321 = vrot.lane.b32.xlu1 %v6924_v5, %s6059_s22 }
 0x232   : > { %v2550_v31 = vsel %vm2548_vm13, %v2535_v29, %v2537_v12  ;;  %3319 = vrot.lane.b32.xlu0 %v6992_v42, %s6059_s22 }
 0x233   : > { %2804 = vmatprep.subr.bf16.mxu0 %v2550_v31 }
 0x234   : > { %v2539_v33 = vpop.permute.xlu1 %2538 }
 0x235   : > { %v2533_v34 = vpop.permute.xlu0 %2532  ;;  %v2551_v19 = vsel %vm2548_vm13, %v2537_v12, %v2539_v33  ;;  %v2745_v61 = vld [vmem:[#allocation2 + $0xb8] sm:$0xff]  ;;  %3323 = vrot.lane.b32.xlu1 %v6934_v8, %s6059_s22 }
 0x236   : > { %v2549_v35 = vsel %vm2548_vm13, %v2533_v34, %v2535_v29  ;;  %2563 = vst.msk [vmem:[#allocation2 + $0xd0] sm:$0xff] %vm289_vm0, %v2551_v19  ;;  %2856 = vmatpush1.bf16.msra.mxu1 %v2745_v61  ;;  %3317 = vrot.lane.b32.xlu0 %v7000_v32, %s6059_s22  ;;  %v5842_v61 = vld [vmem:[#allocation6 + $0x70] ss:$8 sps:$4 sm:$0xff]  }
 0x237   : > { %2805 = vmatpush1.bf16.msra.mxu0 %v2549_v35  ;;  %2857 = vmatprep.subr.bf16.mxu1 %v6026_v0 }
 0x238   : > { %v2545_v41 = vpop.permute.xlu1 %2544 }
 0x239   : > { %v2543_v43 = vpop.permute.xlu0 %2542  ;;  %3329 = vrot.lane.b32.xlu1 %v6943_v57, %s6059_s22 }
 0x23a   : > { %v2553_v44 = vsel %vm2548_vm13, %v2543_v43, %v2545_v41  ;;  %3327 = vrot.lane.b32.xlu0 %v7011_v36, %s6059_s22 }
 0x23b   : > { %2806 = vmatprep.subr.bf16.mxu0 %v2553_v44  ;;  %v5847_v44 = vld [vmem:[#allocation6 + $0x84] ss:$8 sps:$4 sm:$0xff]  }
 0x23c   : > { %v2547_v25 = vpop.permute.xlu1 %2546 }
 0x23d   : > { %v2541_v45 = vpop.permute.xlu0 %2540  ;;  %v2554_v46 = vsel %vm2548_vm13, %v2545_v41, %v2547_v25  ;;  %v2748_v47 = vld [vmem:[#allocation2 + $0xd0] sm:$0xff]  ;;  %3331 = vrot.lane.b32.xlu1 %v6953_v62, %s6059_s22 }
 0x23e   : > { %v2552_v30 = vsel %vm2548_vm13, %v2541_v45, %v2543_v43  ;;  %2566 = vst.msk [vmem:[#allocation2 + $0xe8] sm:$0xff] %vm289_vm0, %v2554_v46  ;;  %2858 = vmatpush1.bf16.msra.mxu1 %v2748_v47  ;;  %3325 = vrot.lane.b32.xlu0 %v7019_v11, %s6059_s22  ;;  %vm3818_vm13 = vcmask 130048  }
 0x23f   : > { %2807 = vmatpush1.bf16.msra.mxu0 %v2552_v30  ;;  %2859 = vmatprep.subr.bf16.mxu1 %v6026_v0 }
 0x240   : > { %v2612_v48 = vpop.permute.xlu1 %2611 }
 0x241   : > { %v2610_v49 = vpop.permute.xlu0 %2609  ;;  %3396 = vrot.lane.b32.xlu1 %v6924_v5, %s6060_s9 }
 0x242   : > { %v2625_v50 = vsel %vm2623_vm14, %v2610_v49, %v2612_v48  ;;  %3394 = vrot.lane.b32.xlu0 %v6992_v42, %s6060_s9 }
 0x243   : > { %2808 = vmatprep.subr.bf16.mxu0 %v2625_v50 }
 0x244   : > { %v2614_v63 = vpop.permute.xlu1 %2613 }
 0x245   : > { %v2608_v51 = vpop.permute.xlu0 %2607  ;;  %v2626_v52 = vsel %vm2623_vm14, %v2612_v48, %v2614_v63  ;;  %v2751_v53 = vld [vmem:[#allocation2 + $0xe8] sm:$0xff]  ;;  %3398 = vrot.lane.b32.xlu1 %v6934_v8, %s6060_s9 }
 0x246   : > { %v2624_v6 = vsel %vm2623_vm14, %v2608_v51, %v2610_v49  ;;  %2638 = vst.msk [vmem:[#allocation2 + $0x100] sm:$0xff] %vm289_vm0, %v2626_v52  ;;  %2860 = vmatpush1.bf16.msra.mxu1 %v2751_v53  ;;  %3392 = vrot.lane.b32.xlu0 %v7000_v32, %s6060_s9 }
 0x247   : > { %2809 = vmatpush1.bf16.msra.mxu0 %v2624_v6  ;;  %2861 = vmatprep.subr.bf16.mxu1 %v6026_v0 }
 0x248   : > { %v2620_v54 = vpop.permute.xlu1 %2619 }
 0x249   : > { %v2618_v55 = vpop.permute.xlu0 %2617  ;;  %3404 = vrot.lane.b32.xlu1 %v6943_v57, %s6060_s9 }
 0x24a   : > { %v2628_v56 = vsel %vm2623_vm14, %v2618_v55, %v2620_v54  ;;  %3402 = vrot.lane.b32.xlu0 %v7011_v36, %s6060_s9 }
 0x24b   : > { %2810 = vmatprep.subr.bf16.mxu0 %v2628_v56 }
 0x24c   : > { %v2622_v58 = vpop.permute.xlu1 %2621 }
 0x24d   : > { %v2616_v59 = vpop.permute.xlu0 %2615  ;;  %v2629_v60 = vsel %vm2623_vm14, %v2620_v54, %v2622_v58  ;;  %v2754_v2 = vld [vmem:[#allocation2 + $0x100] sm:$0xff]  ;;  %3406 = vrot.lane.b32.xlu1 %v6953_v62, %s6060_s9 }
 0x24e   : > { %v2627_v1 = vsel %vm2623_vm14, %v2616_v59, %v2618_v55  ;;  %2641 = vst.msk [vmem:[#allocation2 + $0x118] sm:$0xff] %vm289_vm0, %v2629_v60  ;;  %2862 = vmatpush1.bf16.msra.mxu1 %v2754_v2  ;;  %3400 = vrot.lane.b32.xlu0 %v7019_v11, %s6060_s9  ;;  %vm3893_vm14 = vcmask 121856  }
 0x24f   : > { %2811 = vmatpush1.bf16.msra.mxu0 %v2627_v1  ;;  %2863 = vmatprep.subr.bf16.mxu1 %v6026_v0 }
 0x250   : > { %v2687_v3 = vpop.permute.xlu1 %2686 }
 0x251   : > { %v2685_v4 = vpop.permute.xlu0 %2684  ;;  %3656 = vrot.lane.b32.xlu1 %v6924_v5, %s6061_s10 }
 0x252   : > { %v2700_v7 = vsel %vm2698_vm15, %v2685_v4, %v2687_v3  ;;  %3654 = vrot.lane.b32.xlu0 %v6992_v42, %s6061_s10 }
 0x253   : > { %2812 = vmatprep.subr.bf16.mxu0 %v2700_v7 }
 0x254   : > { %v2689_v13 = vpop.permute.xlu1 %2688 }
 0x255   : > { %v2683_v14 = vpop.permute.xlu0 %2682  ;;  %v2701_v15 = vsel %vm2698_vm15, %v2687_v3, %v2689_v13  ;;  %v2757_v17 = vld [vmem:[#allocation2 + $0x118] sm:$0xff]  ;;  %3658 = vrot.lane.b32.xlu1 %v6934_v8, %s6061_s10 }
 0x256   : > { %v2699_v16 = vsel %vm2698_vm15, %v2683_v14, %v2685_v4  ;;  %2713 = vst.msk [vmem:[#allocation2 + $0x130] sm:$0xff] %vm289_vm0, %v2701_v15  ;;  %2864 = vmatpush1.bf16.msra.mxu1 %v2757_v17  ;;  %3652 = vrot.lane.b32.xlu0 %v7000_v32, %s6061_s10 }
 0x257   : > { %2813 = vmatpush1.bf16.msra.mxu0 %v2699_v16  ;;  %2865 = vmatprep.subr.bf16.mxu1 %v6026_v0 }
 0x258   : > { %v2695_v18 = vpop.permute.xlu1 %2694 }
 0x259   : > { %v2693_v20 = vpop.permute.xlu0 %2692  ;;  %3664 = vrot.lane.b32.xlu1 %v6943_v57, %s6061_s10 }
 0x25a   : > { %v2703_v21 = vsel %vm2698_vm15, %v2693_v20, %v2695_v18  ;;  %3662 = vrot.lane.b32.xlu0 %v7011_v36, %s6061_s10 }
 0x25b   : > { %2814 = vmatprep.subr.bf16.mxu0 %v2703_v21 }
 0x25c   : > { %v2697_v10 = vpop.permute.xlu1 %2696 }
 0x25d   : > { %v2691_v22 = vpop.permute.xlu0 %2690  ;;  %v2704_v23 = vsel %vm2698_vm15, %v2695_v18, %v2697_v10  ;;  %v2760_v26 = vld [vmem:[#allocation2 + $0x130] sm:$0xff]  ;;  %3666 = vrot.lane.b32.xlu1 %v6953_v62, %s6061_s10 }
 0x25e   : > { %v2702_v24 = vsel %vm2698_vm15, %v2691_v22, %v2693_v20  ;;  %2716 = vst.msk [vmem:[#allocation2 + $0x148] sm:$0xff] %vm289_vm0, %v2704_v23  ;;  %2866 = vmatpush1.bf16.msra.mxu1 %v2760_v26  ;;  %3660 = vrot.lane.b32.xlu0 %v7019_v11, %s6061_s10  ;;  %vm3968_vm15 = vcmask 113664  }
 0x25f   : > { %2815 = vmatpush1.bf16.msra.mxu0 %v2702_v24  ;;  %2867 = vmatprep.subr.bf16.mxu1 %v6026_v0 }
 0x260   : > { %v2947_v28 = vpop.permute.xlu1 %2946 }
 0x261   : > { %v2945_v12 = vpop.permute.xlu0 %2944  ;;  %3731 = vrot.lane.b32.xlu1 %v6924_v5, %s6062_s20 }
 0x262   : > { %v2960_v29 = vsel %vm2958_vm1, %v2945_v12, %v2947_v28  ;;  %2821 = vmatmul.mubr.bf16.vlgmr.msra.gmra.mrb[0].mxu0 %v5825_v27  ;;  %3729 = vrot.lane.b32.xlu0 %v6992_v42, %s6062_s20 }
 0x263   : > { %3498 = vmatprep.subr.bf16.mxu0 %v2960_v29  ;;  %5318 = vmatprep.mubr.msk.bf16.mxu0 %vm289_vm0, %v5840_v9 }
 0x264   : > { %v2949_v31 = vpop.permute.xlu1 %2948 }
 0x265   : > { %v2943_v33 = vpop.permute.xlu0 %2942  ;;  %v2961_v34 = vsel %vm2958_vm1, %v2947_v28, %v2949_v31  ;;  %v2763_v35 = vld [vmem:[#allocation2 + $0x148] sm:$0xff]  ;;  %3733 = vrot.lane.b32.xlu1 %v6934_v8, %s6062_s20 }
 0x266   : > { %v2959_v19 = vsel %vm2958_vm1, %v2943_v33, %v2945_v12  ;;  %2973 = vst.msk [vmem:[#allocation2 + $0x10] sm:$0xff] %vm289_vm0, %v2961_v34  ;;  %2868 = vmatpush1.bf16.msra.mxu1 %v2763_v35  ;;  %3727 = vrot.lane.b32.xlu0 %v7000_v32, %s6062_s20 }
 0x267   : > { %3499 = vmatpush1.bf16.msra.mxu0 %v2959_v19  ;;  %3551 = vmatprep.subr.bf16.mxu1 %v6026_v0 }
 0x268   : > { %v2955_v41 = vpop.permute.xlu1 %2954 }
 0x269   : > { %v2953_v43 = vpop.permute.xlu0 %2952  ;;  %2874 = vmatmul.mubr.bf16.vlgmr.msra.gmra.mrb[0].mxu1 %v5825_v27  ;;  %3739 = vrot.lane.b32.xlu1 %v6943_v57, %s6062_s20 }
 0x26a   : > { %v2963_v25 = vsel %vm2958_vm1, %v2953_v43, %v2955_v41  ;;  %5320 = vmatprep.mubr.msk.bf16.mxu1 %vm289_vm0, %v5840_v9  ;;  %3737 = vrot.lane.b32.xlu0 %v7011_v36, %s6062_s20 }
 0x26b   : > { %3500 = vmatprep.subr.bf16.mxu0 %v2963_v25  ;;  %2831 = vmatmul.mubr.bf16.gmra.mrb[4].mxu0 %v5842_v61 }
 0x26c   : > { %v2957_v45 = vpop.permute.xlu1 %2956  ;;  %5381 = vmatprep.mubr.msk.bf16.mxu0 %vm289_vm0, %v5847_v44 }
 0x26d   : > { %v2951_v46 = vpop.permute.xlu0 %2950  ;;  %v2964_v30 = vsel %vm2958_vm1, %v2955_v41, %v2957_v45  ;;  %v3434_v48 = vld [vmem:[#allocation2 + $0x10] sm:$0xff]  ;;  %3741 = vrot.lane.b32.xlu1 %v6953_v62, %s6062_s20  ;;  %v5828_v45 = vld [vmem:[%s6251_s6 + $0x8] ss:$16 sps:$4 sm:$0xff]  }
 0x26e   : > { %v2962_v47 = vsel %vm2958_vm1, %v2951_v46, %v2953_v43  ;;  %2976 = vst.msk [vmem:[#allocation2 + $0x28] sm:$0xff] %vm289_vm0, %v2964_v30  ;;  %3552 = vmatpush1.bf16.msra.mxu1 %v3434_v48  ;;  %3735 = vrot.lane.b32.xlu0 %v7019_v11, %s6062_s20  ;;  %vm4043_vm1 = vcmask 105472   ;;  %s7488_s20 = scalar_lea.hbm %s7546_s3, %s5612_s24 }
 0x26f   : > { %3501 = vmatpush1.bf16.msra.mxu0 %v2962_v47  ;;  %3553 = vmatprep.subr.bf16.mxu1 %v6026_v0 }
 0x270   : > { %v3022_v49 = vpop.permute.xlu1 %3021 }
 0x271   : > { %v3020_v50 = vpop.permute.xlu0 %3019  ;;  %3806 = vrot.lane.b32.xlu1 %v6924_v5, %s6063_s11  ;;  %2882 = vmatmul.mubr.bf16.gmra.mrb[4].mxu1 %v5842_v61 }
 0x272   : > { %v3035_v63 = vsel %vm3033_vm2, %v3020_v50, %v3022_v49  ;;  %5383 = vmatprep.mubr.msk.bf16.mxu1 %vm289_vm0, %v5847_v44  ;;  %3804 = vrot.lane.b32.xlu0 %v6992_v42, %s6063_s11 }
 0x273   : > { %3502 = vmatprep.subr.bf16.mxu0 %v3035_v63 }
 0x274   : > { %v3024_v51 = vpop.permute.xlu1 %3023 }
 0x275   : > { %v3018_v52 = vpop.permute.xlu0 %3017  ;;  %v3036_v6 = vsel %vm3033_vm2, %v3022_v49, %v3024_v51  ;;  %v3437_v54 = vld [vmem:[#allocation2 + $0x28] sm:$0xff]  ;;  %3808 = vrot.lane.b32.xlu1 %v6934_v8, %s6063_s11 }
 0x276   : > { %v3034_v53 = vsel %vm3033_vm2, %v3018_v52, %v3020_v50  ;;  %3048 = vst.msk [vmem:[#allocation2 + $0x40] sm:$0xff] %vm289_vm0, %v3036_v6  ;;  %3554 = vmatpush1.bf16.msra.mxu1 %v3437_v54  ;;  %3802 = vrot.lane.b32.xlu0 %v7000_v32, %s6063_s11  ;;  %v5831_v51 = vld [vmem:[%s6251_s6 + $0x28] ss:$16 sps:$4 sm:$0xff]   ;;  %v5833_v54 = vld [vmem:[%s6251_s6 + $0x2c] ss:$16 sps:$4 sm:$0xff]  }
 0x277   : > { %3503 = vmatpush1.bf16.msra.mxu0 %v3034_v53  ;;  %3555 = vmatprep.subr.bf16.mxu1 %v6026_v0 }
 0x278   : > { %v3030_v55 = vpop.permute.xlu1 %3029 }
 0x279   : > { %v3028_v56 = vpop.permute.xlu0 %3027  ;;  %3814 = vrot.lane.b32.xlu1 %v6943_v57, %s6063_s11 }
 0x27a   : > { %v3038_v58 = vsel %vm3033_vm2, %v3028_v56, %v3030_v55  ;;  %3812 = vrot.lane.b32.xlu0 %v7011_v36, %s6063_s11 }
 0x27b   : > { %3504 = vmatprep.subr.bf16.mxu0 %v3038_v58 }
 0x27c   : > { %v3032_v59 = vpop.permute.xlu1 %3031 }
 0x27d   : > { %v3026_v60 = vpop.permute.xlu0 %3025  ;;  %v3039_v1 = vsel %vm3033_vm2, %v3030_v55, %v3032_v59  ;;  %v3440_v3 = vld [vmem:[#allocation2 + $0x40] sm:$0xff]  ;;  %3816 = vrot.lane.b32.xlu1 %v6953_v62, %s6063_s11 }
 0x27e   : > { %v3037_v2 = vsel %vm3033_vm2, %v3026_v60, %v3028_v56  ;;  %3051 = vst.msk [vmem:[#allocation2 + $0x58] sm:$0xff] %vm289_vm0, %v3039_v1  ;;  %3556 = vmatpush1.bf16.msra.mxu1 %v3440_v3  ;;  %3810 = vrot.lane.b32.xlu0 %v7019_v11, %s6063_s11  ;;  %vm4118_vm2 = vcmask 97280  }
 0x27f   : > { %3505 = vmatpush1.bf16.msra.mxu0 %v3037_v2  ;;  %3557 = vmatprep.subr.bf16.mxu1 %v6026_v0 }
 0x280   : > { %v3097_v4 = vpop.permute.xlu1 %3096 }
 0x281   : > { %v3095_v7 = vpop.permute.xlu0 %3094  ;;  %3881 = vrot.lane.b32.xlu1 %v6924_v5, %s6064_s18 }
 0x282   : > { %v3110_v13 = vsel %vm3108_vm3, %v3095_v7, %v3097_v4  ;;  %3879 = vrot.lane.b32.xlu0 %v6992_v42, %s6064_s18 }
 0x283   : > { %3506 = vmatprep.subr.bf16.mxu0 %v3110_v13 }
 0x284   : > { %v3099_v14 = vpop.permute.xlu1 %3098 }
 0x285   : > { %v3093_v15 = vpop.permute.xlu0 %3092  ;;  %v3111_v16 = vsel %vm3108_vm3, %v3097_v4, %v3099_v14  ;;  %v3443_v18 = vld [vmem:[#allocation2 + $0x58] sm:$0xff]  ;;  %3883 = vrot.lane.b32.xlu1 %v6934_v8, %s6064_s18 }
 0x286   : > { %v3109_v17 = vsel %vm3108_vm3, %v3093_v15, %v3095_v7  ;;  %3123 = vst.msk [vmem:[#allocation2 + $0x70] sm:$0xff] %vm289_vm0, %v3111_v16  ;;  %3558 = vmatpush1.bf16.msra.mxu1 %v3443_v18  ;;  %3877 = vrot.lane.b32.xlu0 %v7000_v32, %s6064_s18 }
 0x287   : > { %3507 = vmatpush1.bf16.msra.mxu0 %v3109_v17  ;;  %3559 = vmatprep.subr.bf16.mxu1 %v6026_v0 }
 0x288   : > { %v3105_v20 = vpop.permute.xlu1 %3104 }
 0x289   : > { %v3103_v21 = vpop.permute.xlu0 %3102  ;;  %3889 = vrot.lane.b32.xlu1 %v6943_v57, %s6064_s18 }
 0x28a   : > { %v3113_v10 = vsel %vm3108_vm3, %v3103_v21, %v3105_v20  ;;  %3887 = vrot.lane.b32.xlu0 %v7011_v36, %s6064_s18 }
 0x28b   : > { %3508 = vmatprep.subr.bf16.mxu0 %v3113_v10 }
 0x28c   : > { %v3107_v22 = vpop.permute.xlu1 %3106 }
 0x28d   : > { %v3101_v23 = vpop.permute.xlu0 %3100  ;;  %v3114_v24 = vsel %vm3108_vm3, %v3105_v20, %v3107_v22  ;;  %v3446_v27 = vld [vmem:[#allocation2 + $0x70] sm:$0xff]  ;;  %3891 = vrot.lane.b32.xlu1 %v6953_v62, %s6064_s18 }
 0x28e   : > { %v3112_v26 = vsel %vm3108_vm3, %v3101_v23, %v3103_v21  ;;  %3126 = vst.msk [vmem:[#allocation2 + $0x88] sm:$0xff] %vm289_vm0, %v3114_v24  ;;  %3560 = vmatpush1.bf16.msra.mxu1 %v3446_v27  ;;  %3885 = vrot.lane.b32.xlu0 %v7019_v11, %s6064_s18  ;;  %v7244_v27 = vld [vmem:[%s6251_s6 + $0x28] ss:$16 sps:$4 sm:$0xff]   ;;  %vm4743_vm3 = vcmask 965632   ;;  %s6072_s18 = smov [#allocation8]  }
 0x28f   : > { %3509 = vmatpush1.bf16.msra.mxu0 %v3112_v26  ;;  %3561 = vmatprep.subr.bf16.mxu1 %v6026_v0 }
 0x290   : > { %v3172_v9 = vpop.permute.xlu1 %3171 }
 0x291   : > { %v3170_v28 = vpop.permute.xlu0 %3169  ;;  %3956 = vrot.lane.b32.xlu1 %v6924_v5, %s6065_s26 }
 0x292   : > { %v3185_v12 = vsel %vm3183_vm7, %v3170_v28, %v3172_v9  ;;  %3954 = vrot.lane.b32.xlu0 %v6992_v42, %s6065_s26 }
 0x293   : > { %3510 = vmatprep.subr.bf16.mxu0 %v3185_v12  ;;  %v7251_v12 = vld [vmem:[%s6251_s6 + $0x4] ss:$16 sps:$4 sm:$0xff]  }
 0x294   : > { %v3174_v29 = vpop.permute.xlu1 %3173 }
 0x295   : > { %v3168_v31 = vpop.permute.xlu0 %3167  ;;  %v3186_v33 = vsel %vm3183_vm7, %v3172_v9, %v3174_v29  ;;  %v3449_v19 = vld [vmem:[#allocation2 + $0x88] sm:$0xff]  ;;  %3958 = vrot.lane.b32.xlu1 %v6934_v8, %s6065_s26  ;;  %v4326_v9 = vld [vmem:[%s6251_s6 + $0x24] sm:$0xff] }
 0x296   : > { %v3184_v34 = vsel %vm3183_vm7, %v3168_v31, %v3170_v28  ;;  %3198 = vst.msk [vmem:[#allocation2 + $0xa0] sm:$0xff] %vm289_vm0, %v3186_v33  ;;  %3562 = vmatpush1.bf16.msra.mxu1 %v3449_v19  ;;  %3952 = vrot.lane.b32.xlu0 %v7000_v32, %s6065_s26  ;;  %v4328_v28 = vld [vmem:[%s6251_s6 + $0x34] sm:$0xff] }
 0x297   : > { %3511 = vmatpush1.bf16.msra.mxu0 %v3184_v34  ;;  %3563 = vmatprep.subr.bf16.mxu1 %v6026_v0  ;;  %v7257_v19 = vcombine.low %v4326_v9, %v4328_v28 }
 0x298   : > { %v3180_v5 = vpop.permute.xlu1 %3179 }
 0x299   : > { %v3178_v35 = vpop.permute.xlu0 %3177  ;;  %3964 = vrot.lane.b32.xlu1 %v6943_v57, %s6065_s26 }
 0x29a   : > { %v3188_v61 = vsel %vm3183_vm7, %v3178_v35, %v3180_v5  ;;  %3962 = vrot.lane.b32.xlu0 %v7011_v36, %s6065_s26 }
 0x29b   : > { %3512 = vmatprep.subr.bf16.mxu0 %v3188_v61 }
 0x29c   : > { %v3182_v8 = vpop.permute.xlu1 %3181 }
 0x29d   : > { %v3176_v41 = vpop.permute.xlu0 %3175  ;;  %v3189_v43 = vsel %vm3183_vm7, %v3180_v5, %v3182_v8  ;;  %v3452_v25 = vld [vmem:[#allocation2 + $0xa0] sm:$0xff]  ;;  %3966 = vrot.lane.b32.xlu1 %v6953_v62, %s6065_s26  ;;  %v5830_v62 = vld [vmem:[%s6251_s6 + $0xc] ss:$16 sps:$4 sm:$0xff]  }
 0x29e   : > { %v3187_v44 = vsel %vm3183_vm7, %v3176_v41, %v3178_v35  ;;  %3201 = vst.msk [vmem:[#allocation2 + $0xb8] sm:$0xff] %vm289_vm0, %v3189_v43  ;;  %3564 = vmatpush1.bf16.msra.mxu1 %v3452_v25  ;;  %3960 = vrot.lane.b32.xlu0 %v7019_v11, %s6065_s26  ;;  %v5843_v5 = vld [vmem:[%s6251_s6 + $0x2c] ss:$16 sps:$4 sm:$0xff]   ;;  %s5936_s26 = sshll.u32 %s6072_s18, 4  ;;  %s5937_s26 = int_to_ptr.vmem [resolvable:$false] %s5936_s26 }
 0x29f   : > { %3513 = vmatpush1.bf16.msra.mxu0 %v3187_v44  ;;  %3565 = vmatprep.subr.bf16.mxu1 %v6026_v0  ;;  %v5844_v41 = vld [vmem:[%s6251_s6 + $0xc] ss:$16 sps:$4 sm:$0xff]  }
 0x2a0   : > { %v3247_v57 = vpop.permute.xlu1 %3246 }
 0x2a1   : > { %v3245_v46 = vpop.permute.xlu0 %3244  ;;  %4031 = vrot.lane.b32.xlu1 %v5828_v45, %s6066_s7 }
 0x2a2   : > { %v3260_v30 = vsel %vm3258_vm8, %v3245_v46, %v3247_v57  ;;  %4029 = vrot.lane.b32.xlu0 %v6992_v42, %s6066_s7 }
 0x2a3   : > { %3514 = vmatprep.subr.bf16.mxu0 %v3260_v30  ;;  %v5859_v30 = vld [vmem:[#allocation6 + $0x94] ss:$8 sps:$4 sm:$0xff]  }
 0x2a4   : > { %v3249_v47 = vpop.permute.xlu1 %3248 }
 0x2a5   : > { %v3243_v48 = vpop.permute.xlu0 %3242  ;;  %v3261_v49 = vsel %vm3258_vm8, %v3247_v57, %v3249_v47  ;;  %v3455_v63 = vld [vmem:[#allocation2 + $0xb8] sm:$0xff]  ;;  %4033 = vrot.lane.b32.xlu1 %v5830_v62, %s6066_s7 }
 0x2a6   : > { %v3259_v50 = vsel %vm3258_vm8, %v3243_v48, %v3245_v46  ;;  %3273 = vst.msk [vmem:[#allocation2 + $0xd0] sm:$0xff] %vm289_vm0, %v3261_v49  ;;  %3566 = vmatpush1.bf16.msra.mxu1 %v3455_v63  ;;  %4027 = vrot.lane.b32.xlu0 %v7000_v32, %s6066_s7  ;;  %v5845_v46 = vld [vmem:[#allocation6 + $0x80] ss:$8 sps:$4 sm:$0xff]   ;;  %v5848_v49 = vld [vmem:[%s6251_s6 + $0x2c] ss:$16 sps:$4 sm:$0xff]  }
 0x2a7   : > { %3515 = vmatpush1.bf16.msra.mxu0 %v3259_v50  ;;  %3567 = vmatprep.subr.bf16.mxu1 %v6026_v0 }
 0x2a8   : > { %v3255_v52 = vpop.permute.xlu1 %3254 }
 0x2a9   : > { %v3253_v6 = vpop.permute.xlu0 %3252  ;;  %4039 = vrot.lane.b32.xlu1 %v5831_v51, %s6066_s7 }
 0x2aa   : > { %v3263_v53 = vsel %vm3258_vm8, %v3253_v6, %v3255_v52  ;;  %4037 = vrot.lane.b32.xlu0 %v7011_v36, %s6066_s7 }
 0x2ab   : > { %3516 = vmatprep.subr.bf16.mxu0 %v3263_v53  ;;  %v5849_v53 = vld [vmem:[%s6251_s6 + $0xc] ss:$16 sps:$4 sm:$0xff]  }
 0x2ac   : > { %v3257_v55 = vpop.permute.xlu1 %3256 }
 0x2ad   : > { %v3251_v56 = vpop.permute.xlu0 %3250  ;;  %v3264_v58 = vsel %vm3258_vm8, %v3255_v52, %v3257_v55  ;;  %v3458_v60 = vld [vmem:[#allocation2 + $0xd0] sm:$0xff]  ;;  %4041 = vrot.lane.b32.xlu1 %v5833_v54, %s6066_s7 }
 0x2ae   : > { %v3262_v59 = vsel %vm3258_vm8, %v3251_v56, %v3253_v6  ;;  %3276 = vst.msk [vmem:[#allocation2 + $0xe8] sm:$0xff] %vm289_vm0, %v3264_v58  ;;  %3568 = vmatpush1.bf16.msra.mxu1 %v3458_v60  ;;  %4035 = vrot.lane.b32.xlu0 %v7019_v11, %s6066_s7  ;;  %v5864_v58 = vld [vmem:[#allocation6 + $0xa4] ss:$8 sps:$4 sm:$0xff]   ;;  %s5938_s7 = scalar_lea.vmem %s5937_s26, 3072 }
 0x2af   : > { %3517 = vmatpush1.bf16.msra.mxu0 %v3262_v59  ;;  %3569 = vmatprep.subr.bf16.mxu1 %v6026_v0 }
 0x2b0   : > { %v3322_v1 = vpop.permute.xlu1 %3321 }
 0x2b1   : > { %v3320_v2 = vpop.permute.xlu0 %3319  ;;  %4106 = vrot.lane.b32.xlu1 %v5828_v45, %s6067_s8 }
 0x2b2   : > { %v3335_v3 = vsel %vm3333_vm9, %v3320_v2, %v3322_v1  ;;  %4104 = vrot.lane.b32.xlu0 %v6992_v42, %s6067_s8 }
 0x2b3   : > { %3518 = vmatprep.subr.bf16.mxu0 %v3335_v3 }
 0x2b4   : > { %v3324_v4 = vpop.permute.xlu1 %3323 }
 0x2b5   : > { %v3318_v7 = vpop.permute.xlu0 %3317  ;;  %v3336_v13 = vsel %vm3333_vm9, %v3322_v1, %v3324_v4  ;;  %v3461_v15 = vld [vmem:[#allocation2 + $0xe8] sm:$0xff]  ;;  %4108 = vrot.lane.b32.xlu1 %v5830_v62, %s6067_s8 }
 0x2b6   : > { %v3334_v14 = vsel %vm3333_vm9, %v3318_v7, %v3320_v2  ;;  %3348 = vst.msk [vmem:[#allocation2 + $0x100] sm:$0xff] %vm289_vm0, %v3336_v13  ;;  %3570 = vmatpush1.bf16.msra.mxu1 %v3461_v15  ;;  %4102 = vrot.lane.b32.xlu0 %v7000_v32, %s6067_s8  ;;  %v5834_v32 = vld [vmem:[%s6251_s6 + $0xc] ss:$16 sps:$4 sm:$0xff]  }
 0x2b7   : > { %3519 = vmatpush1.bf16.msra.mxu0 %v3334_v14  ;;  %3571 = vmatprep.subr.bf16.mxu1 %v6026_v0  ;;  %v5850_v7 = vld [vmem:[%s6251_s6 + $0x2c] ss:$16 sps:$4 sm:$0xff]  }
 0x2b8   : > { %v3330_v42 = vpop.permute.xlu1 %3329 }
 0x2b9   : > { %v3328_v16 = vpop.permute.xlu0 %3327  ;;  %4114 = vrot.lane.b32.xlu1 %v5831_v51, %s6067_s8 }
 0x2ba   : > { %v3338_v17 = vsel %vm3333_vm9, %v3328_v16, %v3330_v42  ;;  %4112 = vrot.lane.b32.xlu0 %v7011_v36, %s6067_s8  ;;  %v7239_v36 = vld [vmem:[%s6251_s6 + $0x8] ss:$16 sps:$4 sm:$0xff]  }
 0x2bb   : > { %3520 = vmatprep.subr.bf16.mxu0 %v3338_v17 }
 0x2bc   : > { %v3332_v18 = vpop.permute.xlu1 %3331 }
 0x2bd   : > { %v3326_v20 = vpop.permute.xlu0 %3325  ;;  %v3339_v21 = vsel %vm3333_vm9, %v3330_v42, %v3332_v18  ;;  %v3464_v22 = vld [vmem:[#allocation2 + $0x100] sm:$0xff]  ;;  %4116 = vrot.lane.b32.xlu1 %v5833_v54, %s6067_s8  ;;  %v5851_v42 = vld [vmem:[%s6251_s6 + $0xc] ss:$16 sps:$4 sm:$0xff]  }
 0x2be   : > { %v3337_v10 = vsel %vm3333_vm9, %v3326_v20, %v3328_v16  ;;  %3351 = vst.msk [vmem:[#allocation2 + $0x118] sm:$0xff] %vm289_vm0, %v3339_v21  ;;  %3572 = vmatpush1.bf16.msra.mxu1 %v3464_v22  ;;  %4110 = vrot.lane.b32.xlu0 %v7019_v11, %s6067_s8  ;;  %v5861_v54 = vld [vmem:[#allocation6 + $0x90] ss:$8 sps:$4 sm:$0xff]  }
 0x2bf   : > { %3521 = vmatpush1.bf16.msra.mxu0 %v3337_v10  ;;  %3573 = vmatprep.subr.bf16.mxu1 %v6026_v0 }
 0x2c0   : > { %v3397_v23 = vpop.permute.xlu1 %3396 }
 0x2c1   : > { %v3395_v24 = vpop.permute.xlu0 %3394  ;;  %4360 = vrot.lane.b32.xlu1 %v5834_v32, %s6030_s19 }
 0x2c2   : > { %v3410_v26 = vsel %vm3408_vm10, %v3395_v24, %v3397_v23  ;;  %4358 = vrot.lane.b32.xlu0 %v7239_v36, %s6030_s19 }
 0x2c3   : > { %3522 = vmatprep.subr.bf16.mxu0 %v3410_v26 }
 0x2c4   : > { %v3399_v11 = vpop.permute.xlu1 %3398 }
 0x2c5   : > { %v3393_v29 = vpop.permute.xlu0 %3392  ;;  %v3411_v31 = vsel %vm3408_vm10, %v3397_v23, %v3399_v11  ;;  %v3467_v34 = vld [vmem:[#allocation2 + $0x118] sm:$0xff]  ;;  %4364 = vrot.lane.b32.xlu1 %v7244_v27, %s6030_s19 }
 0x2c6   : > { %v3409_v33 = vsel %vm3408_vm10, %v3393_v29, %v3395_v24  ;;  %3423 = vst.msk [vmem:[#allocation2 + $0x130] sm:$0xff] %vm289_vm0, %v3411_v31  ;;  %3574 = vmatpush1.bf16.msra.mxu1 %v3467_v34  ;;  %4356 = vrot.lane.b32.xlu0 %v7251_v12, %s6030_s19  ;;  %v5852_v23 = vld [vmem:[%s6251_s6 + $0x2c] ss:$16 sps:$4 sm:$0xff]  }
 0x2c7   : > { %3523 = vmatpush1.bf16.msra.mxu0 %v3409_v33  ;;  %3575 = vmatprep.subr.bf16.mxu1 %v6026_v0  ;;  %v5853_v29 = vld [vmem:[%s6251_s6 + $0xc] ss:$16 sps:$4 sm:$0xff]  }
 0x2c8   : > { %v3405_v35 = vpop.permute.xlu1 %3404 }
 0x2c9   : > { %v3403_v61 = vpop.permute.xlu0 %3402  ;;  %4362 = vrot.lane.b32.xlu1 %v7257_v19, %s6030_s19 }
 0x2ca   : > { %v3413_v8 = vsel %vm3408_vm10, %v3403_v61, %v3405_v35  ;;  %4366 = vrot.lane.b32.xlu0 %v5843_v5, %s6030_s19  ;;  %s6068_s19 = smov 121  }
 0x2cb   : > { %3524 = vmatprep.subr.bf16.mxu0 %v3413_v8 }
 0x2cc   : > { %v3407_v43 = vpop.permute.xlu1 %3406 }
 0x2cd   : > { %v3401_v44 = vpop.permute.xlu0 %3400  ;;  %v3414_v25 = vsel %vm3408_vm10, %v3405_v35, %v3407_v43  ;;  %v3470_v57 = vld [vmem:[#allocation2 + $0x130] sm:$0xff]  ;;  %4422 = vrot.lane.b32.xlu1 %v5844_v41, %s6031_s25  ;;  %v5854_v43 = vld [vmem:[%s6251_s6 + $0x2c] ss:$16 sps:$4 sm:$0xff]  }
 0x2ce   : > { %v3412_v45 = vsel %vm3408_vm10, %v3401_v44, %v3403_v61  ;;  %3426 = vst.msk [vmem:[#allocation2 + $0x148] sm:$0xff] %vm289_vm0, %v3414_v25  ;;  %3576 = vmatpush1.bf16.msra.mxu1 %v3470_v57  ;;  %4420 = vrot.lane.b32.xlu0 %v7239_v36, %s6031_s25  ;;  %v5855_v57 = vld [vmem:[%s6251_s6 + $0xc] ss:$16 sps:$4 sm:$0xff]  }
 0x2cf   : > { %3525 = vmatpush1.bf16.msra.mxu0 %v3412_v45  ;;  %3577 = vmatprep.subr.bf16.mxu1 %v6026_v0 }
 0x2d0   : > { %v3657_v62 = vpop.permute.xlu1 %3656 }
 0x2d1   : > { %v3655_v47 = vpop.permute.xlu0 %3654  ;;  %4426 = vrot.lane.b32.xlu1 %v7244_v27, %s6031_s25 }
 0x2d2   : > { %v3670_v48 = vsel %vm3668_vm11, %v3655_v47, %v3657_v62  ;;  %3531 = vmatmul.mubr.bf16.vlgmr.msra.gmra.mrb[0].mxu0 %v5845_v46  ;;  %4418 = vrot.lane.b32.xlu0 %v7251_v12, %s6031_s25 }
 0x2d3   : > { %4208 = vmatprep.subr.bf16.mxu0 %v3670_v48  ;;  %5382 = vmatprep.mubr.msk.bf16.mxu0 %vm289_vm0, %v5859_v30 }
 0x2d4   : > { %v3659_v50 = vpop.permute.xlu1 %3658 }
 0x2d5   : > { %v3653_v63 = vpop.permute.xlu0 %3652  ;;  %v3671_v51 = vsel %vm3668_vm11, %v3657_v62, %v3659_v50  ;;  %v3473_v6 = vld [vmem:[#allocation2 + $0x148] sm:$0xff]  ;;  %4424 = vrot.lane.b32.xlu1 %v7257_v19, %s6031_s25 }
 0x2d6   : > { %v3669_v52 = vsel %vm3668_vm11, %v3653_v63, %v3655_v47  ;;  %3683 = vst.msk [vmem:[#allocation2 + $0x10] sm:$0xff] %vm289_vm0, %v3671_v51  ;;  %3578 = vmatpush1.bf16.msra.mxu1 %v3473_v6  ;;  %4428 = vrot.lane.b32.xlu0 %v5848_v49, %s6031_s25  ;;  %s6069_s25 = smov 120   ;;  %v5856_v51 = vld [vmem:[%s6251_s6 + $0x2c] ss:$16 sps:$4 sm:$0xff]  }
 0x2d7   : > { %4209 = vmatpush1.bf16.msra.mxu0 %v3669_v52  ;;  %4261 = vmatprep.subr.bf16.mxu1 %v6026_v0 }
 0x2d8   : > { %v3665_v55 = vpop.permute.xlu1 %3664 }
 0x2d9   : > { %v3663_v56 = vpop.permute.xlu0 %3662  ;;  %3584 = vmatmul.mubr.bf16.vlgmr.msra.gmra.mrb[0].mxu1 %v5845_v46  ;;  %4484 = vrot.lane.b32.xlu1 %v5849_v53, %s6032_s29 }
 0x2da   : > { %v3673_v59 = vsel %vm3668_vm11, %v3663_v56, %v3665_v55  ;;  %5384 = vmatprep.mubr.msk.bf16.mxu1 %vm289_vm0, %v5859_v30  ;;  %4482 = vrot.lane.b32.xlu0 %v7239_v36, %s6032_s29 }
 0x2db   : > { %4210 = vmatprep.subr.bf16.mxu0 %v3673_v59  ;;  %3541 = vmatmul.mubr.bf16.gmra.mrb[4].mxu0 %v5861_v54 }
 0x2dc   : > { %v3667_v60 = vpop.permute.xlu1 %3666  ;;  %5445 = vmatprep.mubr.msk.bf16.mxu0 %vm289_vm0, %v5864_v58 }
 0x2dd   : > { %v3661_v1 = vpop.permute.xlu0 %3660  ;;  %v3674_v2 = vsel %vm3668_vm11, %v3665_v55, %v3667_v60  ;;  %v4144_v4 = vld [vmem:[#allocation2 + $0x10] sm:$0xff]  ;;  %4488 = vrot.lane.b32.xlu1 %v7244_v27, %s6032_s29 }
 0x2de   : > { %v3672_v3 = vsel %vm3668_vm11, %v3661_v1, %v3663_v56  ;;  %3686 = vst.msk [vmem:[#allocation2 + $0x28] sm:$0xff] %vm289_vm0, %v3674_v2  ;;  %4262 = vmatpush1.bf16.msra.mxu1 %v4144_v4  ;;  %4480 = vrot.lane.b32.xlu0 %v7251_v12, %s6032_s29  ;;  %v5857_v56 = vld [vmem:[%s6251_s6 + $0xc] ss:$16 sps:$4 sm:$0xff]  }
 0x2df   : > { %4211 = vmatpush1.bf16.msra.mxu0 %v3672_v3  ;;  %4263 = vmatprep.subr.bf16.mxu1 %v6026_v0 }
 0x2e0   : > { %v3732_v13 = vpop.permute.xlu1 %3731 }
 0x2e1   : > { %v3730_v14 = vpop.permute.xlu0 %3729  ;;  %4486 = vrot.lane.b32.xlu1 %v7257_v19, %s6032_s29  ;;  %3592 = vmatmul.mubr.bf16.gmra.mrb[4].mxu1 %v5861_v54 }
 0x2e2   : > { %v3745_v15 = vsel %vm3743_vm12, %v3730_v14, %v3732_v13  ;;  %5447 = vmatprep.mubr.msk.bf16.mxu1 %vm289_vm0, %v5864_v58  ;;  %4490 = vrot.lane.b32.xlu0 %v5850_v7, %s6032_s29  ;;  %s6070_s29 = smov 119  }
 0x2e3   : > { %4212 = vmatprep.subr.bf16.mxu0 %v3745_v15 }
 0x2e4   : > { %v3734_v16 = vpop.permute.xlu1 %3733 }
 0x2e5   : > { %v3728_v17 = vpop.permute.xlu0 %3727  ;;  %v3746_v18 = vsel %vm3743_vm12, %v3732_v13, %v3734_v16  ;;  %v4147_v21 = vld [vmem:[#allocation2 + $0x28] sm:$0xff]  ;;  %4546 = vrot.lane.b32.xlu1 %v5851_v42, %s6068_s19 }
 0x2e6   : > { %v3744_v20 = vsel %vm3743_vm12, %v3728_v17, %v3730_v14  ;;  %3758 = vst.msk [vmem:[#allocation2 + $0x40] sm:$0xff] %vm289_vm0, %v3746_v18  ;;  %4264 = vmatpush1.bf16.msra.mxu1 %v4147_v21  ;;  %4544 = vrot.lane.b32.xlu0 %v7239_v36, %s6068_s19  ;;  %v5858_v13 = vld [vmem:[%s6251_s6 + $0x2c] ss:$16 sps:$4 sm:$0xff]   ;;  %s5611_s6 = smul.u32 96, %s6247_s27 }
 0x2e7   : > { %4213 = vmatpush1.bf16.msra.mxu0 %v3744_v20  ;;  %4265 = vmatprep.subr.bf16.mxu1 %v6026_v0 }
 0x2e8   : > { %v3740_v10 = vpop.permute.xlu1 %3739  ;;  %s7461_s4 = scalar_lea.vmem [#allocation8], %s5611_s6 }
 0x2e9   : > { %v3738_v22 = vpop.permute.xlu0 %3737  ;;  %4550 = vrot.lane.b32.xlu1 %v7244_v27, %s6068_s19  ;;  %s4985_s22 = sshll.u32 %s7461_s4, 4  ;;  %s7490_s22 = int_to_ptr.vmem [resolvable:$true] %s4985_s22 }
 0x2ea   : > { %v3748_v32 = vsel %vm3743_vm12, %v3738_v22, %v3740_v10  ;;  %4542 = vrot.lane.b32.xlu0 %v7251_v12, %s6068_s19  ;;  %s5932_s11 = scalar_lea.vmem %s7490_s22, 1536  ;;  %p5939_p12 = scmp.lt.s32.totalorder %s7490_s22, %s5937_s26 }
 0x2eb   : > { %4214 = vmatprep.subr.bf16.mxu0 %v3748_v32  ;;  %p5933_p4 = scmp.ne.s32.totalorder %s7490_s22, %s5932_s11  ;;  %p5940_p11 = scmp.lt.s32.totalorder %s5938_s7, %s5932_s11 }
 0x2ec   : > { %v3742_v24 = vpop.permute.xlu1 %3741 }
 0x2ed   : > { %v3736_v26 = vpop.permute.xlu0 %3735  ;;  %v3749_v9 = vsel %vm3743_vm12, %v3740_v10, %v3742_v24  ;;  %v4150_v11 = vld [vmem:[#allocation2 + $0x40] sm:$0xff]  ;;  %4548 = vrot.lane.b32.xlu1 %v7257_v19, %s6068_s19  ;;  %p5934_p6 = pnand %p5933_p4, %p6191_p10  ;;  %p5941_p0 = por %p5940_p11, %p5939_p12 }
 0x2ee   : > { %v3747_v28 = vsel %vm3743_vm12, %v3736_v26, %v3738_v22  ;;  %3761 = vst.msk [vmem:[#allocation2 + $0x58] sm:$0xff] %vm289_vm0, %v3749_v9  ;;  %4266 = vmatpush1.bf16.msra.mxu1 %v4150_v11  ;;  %4552 = vrot.lane.b32.xlu0 %v5852_v23, %s6068_s19 }
 0x2ef   : > { %4215 = vmatpush1.bf16.msra.mxu0 %v3747_v28  ;;  %4267 = vmatprep.subr.bf16.mxu1 %v6026_v0  ;;  %p5935_p8 = pneg %p5934_p6 }
 0x2f0   : > { %v3807_v31 = vpop.permute.xlu1 %3806 }
 0x2f1   : > { %v3805_v33 = vpop.permute.xlu0 %3804  ;;  %4609 = vrot.lane.b32.xlu1 %v5853_v29, %s6069_s25  ;;  %p5942_p5 = pnand %p5941_p0, %p5935_p8 }
 0x2f2   : > { %v3820_v34 = vsel %vm3818_vm13, %v3805_v33, %v3807_v31  ;;  %4607 = vrot.lane.b32.xlu0 %v7239_v36, %s6069_s25 }
 0x2f3   : > { %4216 = vmatprep.subr.bf16.mxu0 %v3820_v34 }
 0x2f4   : > { %v3809_v5 = vpop.permute.xlu1 %3808 }
 0x2f5   : > { %v3803_v35 = vpop.permute.xlu0 %3802  ;;  %v3821_v61 = vsel %vm3818_vm13, %v3807_v31, %v3809_v5  ;;  %v4153_v41 = vld [vmem:[#allocation2 + $0x58] sm:$0xff]  ;;  %4613 = vrot.lane.b32.xlu1 %v7244_v27, %s6069_s25 }
 0x2f6   : > { %v3819_v8 = vsel %vm3818_vm13, %v3803_v35, %v3805_v33  ;;  %3833 = vst.msk [vmem:[#allocation2 + $0x70] sm:$0xff] %vm289_vm0, %v3821_v61  ;;  %4268 = vmatpush1.bf16.msra.mxu1 %v4153_v41  ;;  %4605 = vrot.lane.b32.xlu0 %v7251_v12, %s6069_s25 }
 0x2f7   : > { %4217 = vmatpush1.bf16.msra.mxu0 %v3819_v8  ;;  %4269 = vmatprep.subr.bf16.mxu1 %v6026_v0 }
 0x2f8   : > { %v3815_v44 = vpop.permute.xlu1 %3814 }
 0x2f9   : > { %v3813_v25 = vpop.permute.xlu0 %3812  ;;  %4611 = vrot.lane.b32.xlu1 %v7257_v19, %s6069_s25 }
 0x2fa   : > { %v3823_v45 = vsel %vm3818_vm13, %v3813_v25, %v3815_v44  ;;  %4615 = vrot.lane.b32.xlu0 %v5854_v43, %s6069_s25 }
 0x2fb   : > { %4218 = vmatprep.subr.bf16.mxu0 %v3823_v45 }
 0x2fc   : > { %v3817_v46 = vpop.permute.xlu1 %3816 }
 0x2fd   : > { %v3811_v30 = vpop.permute.xlu0 %3810  ;;  %v3824_v62 = vsel %vm3818_vm13, %v3815_v44, %v3817_v46  ;;  %v4156_v48 = vld [vmem:[#allocation2 + $0x70] sm:$0xff]  ;;  %4672 = vrot.lane.b32.xlu1 %v5855_v57, %s6070_s29 }
 0x2fe   : > { %v3822_v47 = vsel %vm3818_vm13, %v3811_v30, %v3813_v25  ;;  %3836 = vst.msk [vmem:[#allocation2 + $0x88] sm:$0xff] %vm289_vm0, %v3824_v62  ;;  %4270 = vmatpush1.bf16.msra.mxu1 %v4156_v48  ;;  %4670 = vrot.lane.b32.xlu0 %v7239_v36, %s6070_s29 }
 0x2ff   : > { %4219 = vmatpush1.bf16.msra.mxu0 %v3822_v47  ;;  %4271 = vmatprep.subr.bf16.mxu1 %v6026_v0 }
 0x300   : > { %v3882_v49 = vpop.permute.xlu1 %3881 }
 0x301   : > { %v3880_v50 = vpop.permute.xlu0 %3879  ;;  %4676 = vrot.lane.b32.xlu1 %v7244_v27, %s6070_s29 }
 0x302   : > { %v3895_v63 = vsel %vm3893_vm14, %v3880_v50, %v3882_v49  ;;  %4668 = vrot.lane.b32.xlu0 %v7251_v12, %s6070_s29 }
 0x303   : > { %4220 = vmatprep.subr.bf16.mxu0 %v3895_v63 }
 0x304   : > { %v3884_v52 = vpop.permute.xlu1 %3883 }
 0x305   : > { %v3878_v6 = vpop.permute.xlu0 %3877  ;;  %v3896_v53 = vsel %vm3893_vm14, %v3882_v49, %v3884_v52  ;;  %v4159_v55 = vld [vmem:[#allocation2 + $0x88] sm:$0xff]  ;;  %4674 = vrot.lane.b32.xlu1 %v7257_v19, %s6070_s29 }
 0x306   : > { %v3894_v54 = vsel %vm3893_vm14, %v3878_v6, %v3880_v50  ;;  %3908 = vst.msk [vmem:[#allocation2 + $0xa0] sm:$0xff] %vm289_vm0, %v3896_v53  ;;  %4272 = vmatpush1.bf16.msra.mxu1 %v4159_v55  ;;  %4678 = vrot.lane.b32.xlu0 %v5856_v51, %s6070_s29  ;;  %v5862_v55 = vld [vmem:[#allocation6 + $0xa0] ss:$8 sps:$4 sm:$0xff]  }
 0x307   : > { %4221 = vmatpush1.bf16.msra.mxu0 %v3894_v54  ;;  %4273 = vmatprep.subr.bf16.mxu1 %v6026_v0 }
 0x308   : > { %v3890_v58 = vpop.permute.xlu1 %3889 }
 0x309   : > { %v3888_v59 = vpop.permute.xlu0 %3887  ;;  %4735 = vrot.lane.b32.xlu1 %v5857_v56, %s6071_s21  ;;  %v5865_v56 = vld [vmem:[#allocation6 + $0xb4] ss:$8 sps:$4 sm:$0xff]  }
 0x30a   : > { %v3898_v60 = vsel %vm3893_vm14, %v3888_v59, %v3890_v58  ;;  %4733 = vrot.lane.b32.xlu0 %v7239_v36, %s6071_s21 }
 0x30b   : > { %4222 = vmatprep.subr.bf16.mxu0 %v3898_v60 }
 0x30c   : > { %v3892_v1 = vpop.permute.xlu1 %3891 }
 0x30d   : > { %v3886_v2 = vpop.permute.xlu0 %3885  ;;  %v3899_v3 = vsel %vm3893_vm14, %v3890_v58, %v3892_v1  ;;  %v4162_v7 = vld [vmem:[#allocation2 + $0xa0] sm:$0xff]  ;;  %4739 = vrot.lane.b32.xlu1 %v7244_v27, %s6071_s21 }
 0x30e   : > { %v3897_v4 = vsel %vm3893_vm14, %v3886_v2, %v3888_v59  ;;  %3911 = vst.msk [vmem:[#allocation2 + $0xb8] sm:$0xff] %vm289_vm0, %v3899_v3  ;;  %4274 = vmatpush1.bf16.msra.mxu1 %v4162_v7  ;;  %4731 = vrot.lane.b32.xlu0 %v7251_v12, %s6071_s21  ;;  %v5867_v7 = vld [vmem:[#allocation6 + $0xb0] ss:$8 sps:$4 sm:$0xff]  }
 0x30f   : > { %4223 = vmatpush1.bf16.msra.mxu0 %v3897_v4  ;;  %4275 = vmatprep.subr.bf16.mxu1 %v6026_v0 }
 0x310   : > { %v3957_v36 = vpop.permute.xlu1 %3956 }
 0x311   : > { %v3955_v14 = vpop.permute.xlu0 %3954  ;;  %4737 = vrot.lane.b32.xlu1 %v7257_v19, %s6071_s21 }
 0x312   : > { %v3970_v15 = vsel %vm3968_vm15, %v3955_v14, %v3957_v36  ;;  %4741 = vrot.lane.b32.xlu0 %v5858_v13, %s6071_s21 }
 0x313   : > { %4224 = vmatprep.subr.bf16.mxu0 %v3970_v15  ;;  %v5870_v15 = vld [vmem:[#allocation6 + $0xc4] ss:$8 sps:$4 sm:$0xff]  }
 0x314   : > { %v3959_v42 = vpop.permute.xlu1 %3958 }
 0x315   : > { %v3953_v27 = vpop.permute.xlu0 %3952  ;;  %v3971_v16 = vsel %vm3968_vm15, %v3957_v36, %v3959_v42  ;;  %v4165_v18 = vld [vmem:[#allocation2 + $0xb8] sm:$0xff] }
 0x316   : > { %v3969_v17 = vsel %vm3968_vm15, %v3953_v27, %v3955_v14  ;;  %3983 = vst.msk [vmem:[#allocation2 + $0xd0] sm:$0xff] %vm289_vm0, %v3971_v16  ;;  %4276 = vmatpush1.bf16.msra.mxu1 %v4165_v18 }
 0x317   : > { %4225 = vmatpush1.bf16.msra.mxu0 %v3969_v17  ;;  %4277 = vmatprep.subr.bf16.mxu1 %v6026_v0 }
 0x318   : > { %v3965_v12 = vpop.permute.xlu1 %3964 }
 0x319   : > { %v3963_v20 = vpop.permute.xlu0 %3962 }
 0x31a   : > { %v3973_v21 = vsel %vm3968_vm15, %v3963_v20, %v3965_v12 }
 0x31b   : > { %4226 = vmatprep.subr.bf16.mxu0 %v3973_v21 }
 0x31c   : > { %v3967_v19 = vpop.permute.xlu1 %3966 }
 0x31d   : > { %v3961_v10 = vpop.permute.xlu0 %3960  ;;  %v3974_v22 = vsel %vm3968_vm15, %v3965_v12, %v3967_v19  ;;  %v4168_v23 = vld [vmem:[#allocation2 + $0xd0] sm:$0xff] }
 0x31e   : > { %v3972_v32 = vsel %vm3968_vm15, %v3961_v10, %v3963_v20  ;;  %3986 = vst.msk [vmem:[#allocation2 + $0xe8] sm:$0xff] %vm289_vm0, %v3974_v22  ;;  %4278 = vmatpush1.bf16.msra.mxu1 %v4168_v23 }
 0x31f   : > { %4227 = vmatpush1.bf16.msra.mxu0 %v3972_v32  ;;  %4279 = vmatprep.subr.bf16.mxu1 %v6026_v0 }
 0x320   : > { %v4032_v24 = vpop.permute.xlu1 %4031 }
 0x321   : > { %v4030_v26 = vpop.permute.xlu0 %4029 }
 0x322   : > { %v4045_v9 = vsel %vm4043_vm1, %v4030_v26, %v4032_v24 }
 0x323   : > { %4228 = vmatprep.subr.bf16.mxu0 %v4045_v9 }
 0x324   : > { %v4034_v28 = vpop.permute.xlu1 %4033 }
 0x325   : > { %v4028_v11 = vpop.permute.xlu0 %4027  ;;  %v4046_v29 = vsel %vm4043_vm1, %v4032_v24, %v4034_v28  ;;  %v4171_v33 = vld [vmem:[#allocation2 + $0xe8] sm:$0xff] }
 0x326   : > { %v4044_v31 = vsel %vm4043_vm1, %v4028_v11, %v4030_v26  ;;  %4058 = vst.msk [vmem:[#allocation2 + $0x100] sm:$0xff] %vm289_vm0, %v4046_v29  ;;  %4280 = vmatpush1.bf16.msra.mxu1 %v4171_v33 }
 0x327   : > { %4229 = vmatpush1.bf16.msra.mxu0 %v4044_v31  ;;  %4281 = vmatprep.subr.bf16.mxu1 %v6026_v0 }
 0x328   : > { %v4040_v34 = vpop.permute.xlu1 %4039 }
 0x329   : > { %v4038_v5 = vpop.permute.xlu0 %4037 }
 0x32a   : > { %v4048_v35 = vsel %vm4043_vm1, %v4038_v5, %v4040_v34 }
 0x32b   : > { %4230 = vmatprep.subr.bf16.mxu0 %v4048_v35 }
 0x32c   : > { %v4042_v61 = vpop.permute.xlu1 %4041 }
 0x32d   : > { %v4036_v8 = vpop.permute.xlu0 %4035  ;;  %v4049_v41 = vsel %vm4043_vm1, %v4040_v34, %v4042_v61  ;;  %v4174_v44 = vld [vmem:[#allocation2 + $0x100] sm:$0xff] }
 0x32e   : > { %v4047_v43 = vsel %vm4043_vm1, %v4036_v8, %v4038_v5  ;;  %4061 = vst.msk [vmem:[#allocation2 + $0x118] sm:$0xff] %vm289_vm0, %v4049_v41  ;;  %4282 = vmatpush1.bf16.msra.mxu1 %v4174_v44 }
 0x32f   : > { %4231 = vmatpush1.bf16.msra.mxu0 %v4047_v43  ;;  %4283 = vmatprep.subr.bf16.mxu1 %v6026_v0 }
 0x330   : > { %v4107_v25 = vpop.permute.xlu1 %4106 }
 0x331   : > { %v4105_v45 = vpop.permute.xlu0 %4104 }
 0x332   : > { %v4120_v57 = vsel %vm4118_vm2, %v4105_v45, %v4107_v25 }
 0x333   : > { %4232 = vmatprep.subr.bf16.mxu0 %v4120_v57 }
 0x334   : > { %v4109_v46 = vpop.permute.xlu1 %4108 }
 0x335   : > { %v4103_v30 = vpop.permute.xlu0 %4102  ;;  %v4121_v62 = vsel %vm4118_vm2, %v4107_v25, %v4109_v46  ;;  %v4177_v48 = vld [vmem:[#allocation2 + $0x118] sm:$0xff] }
 0x336   : > { %v4119_v47 = vsel %vm4118_vm2, %v4103_v30, %v4105_v45  ;;  %4133 = vst.msk [vmem:[#allocation2 + $0x130] sm:$0xff] %vm289_vm0, %v4121_v62  ;;  %4284 = vmatpush1.bf16.msra.mxu1 %v4177_v48 }
 0x337   : > { %4233 = vmatpush1.bf16.msra.mxu0 %v4119_v47  ;;  %4285 = vmatprep.subr.bf16.mxu1 %v6026_v0 }
 0x338   : > { %v4115_v49 = vpop.permute.xlu1 %4114 }
 0x339   : > { %v4113_v50 = vpop.permute.xlu0 %4112 }
 0x33a   : > { %v4123_v63 = vsel %vm4118_vm2, %v4113_v50, %v4115_v49 }
 0x33b   : > { %4234 = vmatprep.subr.bf16.mxu0 %v4123_v63 }
 0x33c   : > { %v4117_v51 = vpop.permute.xlu1 %4116 }
 0x33d   : > { %v4111_v52 = vpop.permute.xlu0 %4110  ;;  %v4124_v6 = vsel %vm4118_vm2, %v4115_v49, %v4117_v51  ;;  %v4180_v54 = vld [vmem:[#allocation2 + $0x130] sm:$0xff] }
 0x33e   : > { %v4122_v53 = vsel %vm4118_vm2, %v4111_v52, %v4113_v50  ;;  %4136 = vst.msk [vmem:[#allocation2 + $0x148] sm:$0xff] %vm289_vm0, %v4124_v6  ;;  %4286 = vmatpush1.bf16.msra.mxu1 %v4180_v54 }
 0x33f   : > { %4235 = vmatpush1.bf16.msra.mxu0 %v4122_v53  ;;  %4287 = vmatprep.subr.bf16.mxu1 %v6026_v0 }
 0x340   : > { %v4361_v58 = vpop.permute.xlu1 %4360 }
 0x341   : > { %v4359_v59 = vpop.permute.xlu0 %4358  ;;  %4380 = vst.msk [vmem:[#allocation2 + $0x10] sm:$0xff] %vm289_vm0, %v4361_v58 }
 0x342   : > { %v4369_v60 = vsel %vm529_vm4, %v4359_v59, %v4361_v58  ;;  %4241 = vmatmul.mubr.bf16.vlgmr.msra.gmra.mrb[0].mxu0 %v5862_v55 }
 0x343   : > { %4831 = vmatprep.subr.bf16.mxu0 %v4369_v60  ;;  %5446 = vmatprep.mubr.msk.bf16.mxu0 %vm289_vm0, %v5865_v56 }
 0x344   : > { %v4365_v1 = vpop.permute.xlu1 %4364 }
 0x345   : > { %v4357_v2 = vpop.permute.xlu0 %4356  ;;  %v4183_v4 = vld [vmem:[#allocation2 + $0x148] sm:$0xff] }
 0x346   : > { %v4368_v3 = vsel %vm529_vm4, %v4357_v2, %v4359_v59  ;;  %4288 = vmatpush1.bf16.msra.mxu1 %v4183_v4 }
 0x347   : > { %4832 = vmatpush1.bf16.msra.mxu0 %v4368_v3  ;;  %4884 = vmatprep.subr.bf16.mxu1 %v6026_v0 }
 0x348   : > { %v4363_v13 = vpop.permute.xlu1 %4362  ;;  %v4767_v14 = vld [vmem:[#allocation2 + $0x10] sm:$0xff] }
 0x349   : > { %v4367_v36 = vpop.permute.xlu0 %4366  ;;  %v4370_v42 = vsel %vm529_vm4, %v4363_v13, %v4365_v1  ;;  %4294 = vmatmul.mubr.bf16.vlgmr.msra.gmra.mrb[0].mxu1 %v5862_v55 }
 0x34a   : > { %v4371_v27 = vsel %vm529_vm4, %v4365_v1, %v4367_v36  ;;  %4383 = vst.msk [vmem:[#allocation2 + $0x28] sm:$0xff] %vm289_vm0, %v4367_v36  ;;  %4251 = vmatmul.mubr.bf16.gmra.mrb[4].mxu0 %v5867_v7  ;;  %4885 = vmatpush1.bf16.msra.mxu1 %v4767_v14  ;;  %vm4554_vm4 = vcmask 990208  }
 0x34b   : > { %4833 = vmatprep.subr.bf16.mxu0 %v4371_v27  ;;  %4886 = vmatprep.subr.bf16.mxu1 %v6026_v0 }
 0x34c   : > { %4834 = vmatpush1.bf16.msra.mxu0 %v4370_v42  ;;  %v4423_v16 = vpop.permute.xlu1 %4422  ;;  %5448 = vmatprep.mubr.msk.bf16.mxu1 %vm289_vm0, %v5865_v56 }
 0x34d   : > { %v4421_v17 = vpop.permute.xlu0 %4420  ;;  %5495 = vmatprep.mubr.msk.bf16.mxu0 %vm289_vm0, %v5870_v15  ;;  %4442 = vst.msk [vmem:[#allocation2 + $0x40] sm:$0xff] %vm289_vm0, %v4423_v16 }
 0x34e   : > { %v4431_v18 = vsel %vm592_vm5, %v4421_v17, %v4423_v16 }
 0x34f   : > { %4835 = vmatprep.subr.bf16.mxu0 %v4431_v18 }
 0x350   : > { %v4427_v12 = vpop.permute.xlu1 %4426 }
 0x351   : > { %v4419_v20 = vpop.permute.xlu0 %4418  ;;  %v4770_v21 = vld [vmem:[#allocation2 + $0x28] sm:$0xff]  ;;  %4302 = vmatmul.mubr.bf16.gmra.mrb[4].mxu1 %v5867_v7 }
 0x352   : > { %v4430_v19 = vsel %vm592_vm5, %v4419_v20, %v4421_v17  ;;  %4887 = vmatpush1.bf16.msra.mxu1 %v4770_v21  ;;  %5497 = vmatprep.mubr.msk.bf16.mxu1 %vm289_vm0, %v5870_v15 }
 0x353   : > { %4888 = vmatprep.subr.bf16.mxu1 %v6026_v0  ;;  %4836 = vmatpush1.bf16.msra.mxu0 %v4430_v19 }
 0x354   : > { %v4425_v10 = vpop.permute.xlu1 %4424  ;;  %v4773_v32 = vld [vmem:[#allocation2 + $0x40] sm:$0xff] }
 0x355   : > { %v4429_v22 = vpop.permute.xlu0 %4428  ;;  %v4432_v23 = vsel %vm592_vm5, %v4425_v10, %v4427_v12 }
 0x356   : > { %v4433_v24 = vsel %vm592_vm5, %v4427_v12, %v4429_v22  ;;  %4445 = vst.msk [vmem:[#allocation2 + $0x58] sm:$0xff] %vm289_vm0, %v4429_v22  ;;  %4889 = vmatpush1.bf16.msra.mxu1 %v4773_v32  ;;  %vm4617_vm5 = vcmask 982016  }
 0x357   : > { %4890 = vmatprep.subr.bf16.mxu1 %v6026_v0  ;;  %4837 = vmatprep.subr.bf16.mxu0 %v4433_v24 }
 0x358   : > { %4838 = vmatpush1.bf16.msra.mxu0 %v4432_v23  ;;  %v4485_v26 = vpop.permute.xlu1 %4484 }
 0x359   : > { %v4483_v9 = vpop.permute.xlu0 %4482  ;;  %4504 = vst.msk [vmem:[#allocation2 + $0x70] sm:$0xff] %vm289_vm0, %v4485_v26 }
 0x35a   : > { %v4493_v28 = vsel %vm655_vm6, %v4483_v9, %v4485_v26 }
 0x35b   : > { %4839 = vmatprep.subr.bf16.mxu0 %v4493_v28  ;;  %v5871_v28 = vld [vmem:[#allocation6 + $0xd4] ss:$8 sps:$4 sm:$0xff]  }
 0x35c   : > { %v4489_v11 = vpop.permute.xlu1 %4488 }
 0x35d   : > { %v4481_v29 = vpop.permute.xlu0 %4480  ;;  %v4776_v31 = vld [vmem:[#allocation2 + $0x58] sm:$0xff] }
 0x35e   : > { %v4492_v33 = vsel %vm655_vm6, %v4481_v29, %v4483_v9  ;;  %4891 = vmatpush1.bf16.msra.mxu1 %v4776_v31  ;;  %v5868_v9 = vld [vmem:[#allocation6 + $0xc0] ss:$8 sps:$4 sm:$0xff]   ;;  %v5873_v29 = vld [vmem:[#allocation6 + $0xd0] ss:$8 sps:$4 sm:$0xff]  }
 0x35f   : > { %4892 = vmatprep.subr.bf16.mxu1 %v6026_v0  ;;  %4840 = vmatpush1.bf16.msra.mxu0 %v4492_v33 }
 0x360   : > { %v4487_v34 = vpop.permute.xlu1 %4486  ;;  %v4779_v35 = vld [vmem:[#allocation2 + $0x70] sm:$0xff] }
 0x361   : > { %v4491_v5 = vpop.permute.xlu0 %4490  ;;  %v4494_v61 = vsel %vm655_vm6, %v4487_v34, %v4489_v11 }
 0x362   : > { %v4495_v8 = vsel %vm655_vm6, %v4489_v11, %v4491_v5  ;;  %4507 = vst.msk [vmem:[#allocation2 + $0x88] sm:$0xff] %vm289_vm0, %v4491_v5  ;;  %4893 = vmatpush1.bf16.msra.mxu1 %v4779_v35  ;;  %vm4680_vm6 = vcmask 973824  }
 0x363   : > { %4894 = vmatprep.subr.bf16.mxu1 %v6026_v0  ;;  %4841 = vmatprep.subr.bf16.mxu0 %v4495_v8 }
 0x364   : > { %4842 = vmatpush1.bf16.msra.mxu0 %v4494_v61  ;;  %v4547_v41 = vpop.permute.xlu1 %4546 }
 0x365   : > { %v4545_v43 = vpop.permute.xlu0 %4544  ;;  %4567 = vst.msk [vmem:[#allocation2 + $0xa0] sm:$0xff] %vm289_vm0, %v4547_v41 }
 0x366   : > { %v4556_v44 = vsel %vm4554_vm4, %v4545_v43, %v4547_v41 }
 0x367   : > { %4843 = vmatprep.subr.bf16.mxu0 %v4556_v44 }
 0x368   : > { %v4551_v25 = vpop.permute.xlu1 %4550 }
 0x369   : > { %v4543_v45 = vpop.permute.xlu0 %4542  ;;  %v4782_v57 = vld [vmem:[#allocation2 + $0x88] sm:$0xff] }
 0x36a   : > { %v4555_v46 = vsel %vm4554_vm4, %v4543_v45, %v4545_v43  ;;  %4895 = vmatpush1.bf16.msra.mxu1 %v4782_v57 }
 0x36b   : > { %4896 = vmatprep.subr.bf16.mxu1 %v6026_v0  ;;  %4844 = vmatpush1.bf16.msra.mxu0 %v4555_v46 }
 0x36c   : > { %v4549_v30 = vpop.permute.xlu1 %4548  ;;  %v4785_v47 = vld [vmem:[#allocation2 + $0xa0] sm:$0xff] }
 0x36d   : > { %v4553_v62 = vpop.permute.xlu0 %4552  ;;  %v4557_v48 = vsel %vm4554_vm4, %v4549_v30, %v4551_v25 }
 0x36e   : > { %v4558_v49 = vsel %vm4554_vm4, %v4551_v25, %v4553_v62  ;;  %4570 = vst.msk [vmem:[#allocation2 + $0xb8] sm:$0xff] %vm289_vm0, %v4553_v62  ;;  %4897 = vmatpush1.bf16.msra.mxu1 %v4785_v47 }
 0x36f   : > { %4898 = vmatprep.subr.bf16.mxu1 %v6026_v0  ;;  %4845 = vmatprep.subr.bf16.mxu0 %v4558_v49 }
 0x370   : > { %4846 = vmatpush1.bf16.msra.mxu0 %v4557_v48  ;;  %v4610_v50 = vpop.permute.xlu1 %4609 }
 0x371   : > { %v4608_v63 = vpop.permute.xlu0 %4607  ;;  %4630 = vst.msk [vmem:[#allocation2 + $0xd0] sm:$0xff] %vm289_vm0, %v4610_v50 }
 0x372   : > { %v4619_v51 = vsel %vm4617_vm5, %v4608_v63, %v4610_v50 }
 0x373   : > { %4847 = vmatprep.subr.bf16.mxu0 %v4619_v51 }
 0x374   : > { %v4614_v52 = vpop.permute.xlu1 %4613 }
 0x375   : > { %v4606_v6 = vpop.permute.xlu0 %4605  ;;  %v4788_v53 = vld [vmem:[#allocation2 + $0xb8] sm:$0xff] }
 0x376   : > { %v4618_v54 = vsel %vm4617_vm5, %v4606_v6, %v4608_v63  ;;  %4899 = vmatpush1.bf16.msra.mxu1 %v4788_v53 }
 0x377   : > { %4900 = vmatprep.subr.bf16.mxu1 %v6026_v0  ;;  %4848 = vmatpush1.bf16.msra.mxu0 %v4618_v54 }
 0x378   : > { %v4612_v55 = vpop.permute.xlu1 %4611  ;;  %v4791_v58 = vld [vmem:[#allocation2 + $0xd0] sm:$0xff] }
 0x379   : > { %v4616_v56 = vpop.permute.xlu0 %4615  ;;  %v4620_v59 = vsel %vm4617_vm5, %v4612_v55, %v4614_v52 }
 0x37a   : > { %v4621_v60 = vsel %vm4617_vm5, %v4614_v52, %v4616_v56  ;;  %4633 = vst.msk [vmem:[#allocation2 + $0xe8] sm:$0xff] %vm289_vm0, %v4616_v56  ;;  %4901 = vmatpush1.bf16.msra.mxu1 %v4791_v58 }
 0x37b   : > { %4902 = vmatprep.subr.bf16.mxu1 %v6026_v0  ;;  %4849 = vmatprep.subr.bf16.mxu0 %v4621_v60 }
 0x37c   : > { %4850 = vmatpush1.bf16.msra.mxu0 %v4620_v59  ;;  %v4673_v1 = vpop.permute.xlu1 %4672 }
 0x37d   : > { %v4671_v2 = vpop.permute.xlu0 %4670  ;;  %4693 = vst.msk [vmem:[#allocation2 + $0x100] sm:$0xff] %vm289_vm0, %v4673_v1 }
 0x37e   : > { %v4682_v3 = vsel %vm4680_vm6, %v4671_v2, %v4673_v1 }
 0x37f   : > { %4851 = vmatprep.subr.bf16.mxu0 %v4682_v3 }
 0x380   : > { %v4677_v4 = vpop.permute.xlu1 %4676 }
 0x381   : > { %v4669_v7 = vpop.permute.xlu0 %4668  ;;  %v4794_v13 = vld [vmem:[#allocation2 + $0xe8] sm:$0xff] }
 0x382   : > { %v4681_v36 = vsel %vm4680_vm6, %v4669_v7, %v4671_v2  ;;  %4903 = vmatpush1.bf16.msra.mxu1 %v4794_v13 }
 0x383   : > { %4904 = vmatprep.subr.bf16.mxu1 %v6026_v0  ;;  %4852 = vmatpush1.bf16.msra.mxu0 %v4681_v36 }
 0x384   : > { %v4675_v14 = vpop.permute.xlu1 %4674  ;;  %v4797_v42 = vld [vmem:[#allocation2 + $0x100] sm:$0xff] }
 0x385   : > { %v4679_v15 = vpop.permute.xlu0 %4678  ;;  %v4683_v27 = vsel %vm4680_vm6, %v4675_v14, %v4677_v4 }
 0x386   : > { %v4684_v16 = vsel %vm4680_vm6, %v4677_v4, %v4679_v15  ;;  %4696 = vst.msk [vmem:[#allocation2 + $0x118] sm:$0xff] %vm289_vm0, %v4679_v15  ;;  %4905 = vmatpush1.bf16.msra.mxu1 %v4797_v42 }
 0x387   : > { %4906 = vmatprep.subr.bf16.mxu1 %v6026_v0  ;;  %4853 = vmatprep.subr.bf16.mxu0 %v4684_v16 }
 0x388   : > { %4854 = vmatpush1.bf16.msra.mxu0 %v4683_v27  ;;  %v4736_v17 = vpop.permute.xlu1 %4735 }
 0x389   : > { %v4734_v18 = vpop.permute.xlu0 %4733  ;;  %4756 = vst.msk [vmem:[#allocation2 + $0x130] sm:$0xff] %vm289_vm0, %v4736_v17 }
 0x38a   : > { %v4745_v12 = vsel %vm4743_vm3, %v4734_v18, %v4736_v17 }
 0x38b   : > { %4855 = vmatprep.subr.bf16.mxu0 %v4745_v12 }
 0x38c   : > { %v4740_v20 = vpop.permute.xlu1 %4739 }
 0x38d   : > { %v4732_v21 = vpop.permute.xlu0 %4731  ;;  %v4800_v19 = vld [vmem:[#allocation2 + $0x118] sm:$0xff] }
 0x38e   : > { %v4744_v10 = vsel %vm4743_vm3, %v4732_v21, %v4734_v18  ;;  %4907 = vmatpush1.bf16.msra.mxu1 %v4800_v19 }
 0x38f   : > { %4908 = vmatprep.subr.bf16.mxu1 %v6026_v0  ;;  %4856 = vmatpush1.bf16.msra.mxu0 %v4744_v10 }
 0x390   : > { %v4738_v22 = vpop.permute.xlu1 %4737  ;;  %v4803_v23 = vld [vmem:[#allocation2 + $0x130] sm:$0xff] }
 0x391   : > { %v4742_v32 = vpop.permute.xlu0 %4741  ;;  %v4746_v24 = vsel %vm4743_vm3, %v4738_v22, %v4740_v20 }
 0x392   : > { %v4747_v26 = vsel %vm4743_vm3, %v4740_v20, %v4742_v32  ;;  %4759 = vst.msk [vmem:[#allocation2 + $0x148] sm:$0xff] %vm289_vm0, %v4742_v32  ;;  %4909 = vmatpush1.bf16.msra.mxu1 %v4803_v23 }
 0x393   : > { %4910 = vmatprep.subr.bf16.mxu1 %v6026_v0  ;;  %4857 = vmatprep.subr.bf16.mxu0 %v4747_v26 }
 0x394   : > { %4858 = vmatpush1.bf16.msra.mxu0 %v4746_v24 }
 0x397   : > { %4864 = vmatmul.mubr.bf16.vlgmr.msra.gmra.mrb[0].mxu0 %v5868_v9 }
 0x398   : > { %5496 = vmatprep.mubr.msk.bf16.mxu0 %vm289_vm0, %v5871_v28 }
 0x399   : > { %v4806_v11 = vld [vmem:[#allocation2 + $0x148] sm:$0xff] }
 0x39a   : > { %4911 = vmatpush1.bf16.msra.mxu1 %v4806_v11 }
 0x39d   : > { %4917 = vmatmul.mubr.bf16.vlgmr.msra.gmra.mrb[0].mxu1 %v5868_v9 }
 0x39e   : > { %5498 = vmatprep.mubr.msk.bf16.mxu1 %vm289_vm0, %v5871_v28 }
 0x39f   : > { %4874 = vmatmul.mubr.bf16.gmra.mrb[4].mxu0 %v5873_v29 }
 0x3a5   : > { %4925 = vmatmul.mubr.bf16.gmra.mrb[4].mxu1 %v5873_v29 }
 0x46a   : > { %v4865_v31 = vpop.f32.mrb[0].mxu0 }
 0x46b   : > { %v5503_v33 = vadd.f32 %v4865_v31, %v6381_v38  ;;  %v4867_v0 = vpop.f32.mrb[1].mxu0 }
 0x46c   : > { %v5504_v34 = vadd.f32 %v4867_v0, %v6381_v38  ;;  %v4869_v5 = vpop.f32.mrb[2].mxu0 }
 0x46d   : > { %v4945_v35 = vmax.f32 %v5503_v33, 0.0  ;;  %v5505_v61 = vadd.f32 %v4869_v5, %v6386_v40  ;;  %v4871_v8 = vpop.f32.mrb[3].mxu0 }
 0x46e   : > { %v4946_v41 = vmax.f32 %v5504_v34, 0.0  ;;  %v5506_v43 = vadd.f32 %v4871_v8, %v6386_v40 }
 0x46f   : > { %4957 = vst [vmem:[%s7461_s4] sm:$0xff] %v4945_v35  ;;  %v4948_v44 = vmax.f32 %v5505_v61, 0.0 }
 0x470   : > { %v4918_v25 = vpop.f32.mrb[0].mxu1  ;;  %4958 = vst [vmem:[%s7461_s4 + $0x8] sm:$0xff] %v4946_v41  ;;  %v4949_v45 = vmax.f32 %v5506_v43, 0.0 }
 0x471   : > { %v5511_v57 = vadd.f32 %v4918_v25, %v6381_v38  ;;  %v4920_v46 = vpop.f32.mrb[1].mxu1  ;;  %4960 = vst [vmem:[%s7461_s4 + $0x18] sm:$0xff] %v4948_v44 }
 0x472   : > { %v4921_v30 = vpop.f32.mrb[2].mxu1  ;;  %4961 = vst [vmem:[%s7461_s4 + $0x20] sm:$0xff] %v4949_v45  ;;  %v4875_v62 = vpop.f32.mrb[4].mxu0 }
 0x473   : > { %v4947_v47 = vmax.f32 %v5511_v57, 0.0  ;;  %v5512_v48 = vadd.f32 %v4921_v30, %v6386_v40  ;;  %v4923_v49 = vpop.f32.mrb[3].mxu1  ;;  %v5507_v50 = vadd.f32 %v4875_v62, %v6379_v37  ;;  %v4877_v63 = vpop.f32.mrb[5].mxu0 }
 0x474   : > { %v5508_v51 = vadd.f32 %v4877_v63, %v6379_v37  ;;  %v4879_v52 = vpop.f32.mrb[6].mxu0 }
 0x475   : > { %4959 = vst.msk [vmem:[%s7461_s4 + $0x10] sm:$0xff] %vm289_vm0, %v4947_v47  ;;  %v4950_v38 = vmax.f32 %v5512_v48, 0.0  ;;  %v4951_v6 = vmax.f32 %v5507_v50, 0.0  ;;  %v5509_v53 = vadd.f32 %v4879_v52, %v6384_v39  ;;  %v4881_v54 = vpop.f32.mrb[7].mxu0 }
 0x476   : > { %v4952_v40 = vmax.f32 %v5508_v51, 0.0  ;;  %v5510_v55 = vadd.f32 %v4881_v54, %v6384_v39 }
 0x477   : > { %4962 = vst.msk [vmem:[%s7461_s4 + $0x28] sm:$0xff] %vm289_vm0, %v4950_v38  ;;  %4963 = vst [vmem:[%s7461_s4 + $0x30] sm:$0xff] %v4951_v6  ;;  %v4954_v56 = vmax.f32 %v5509_v53, 0.0 }
 0x478   : > { %v4926_v58 = vpop.f32.mrb[4].mxu1  ;;  %4964 = vst [vmem:[%s7461_s4 + $0x38] sm:$0xff] %v4952_v40  ;;  %v4955_v59 = vmax.f32 %v5510_v55, 0.0 }
 0x479   : > { %v5513_v60 = vadd.f32 %v4926_v58, %v6379_v37  ;;  %v4928_v1 = vpop.f32.mrb[5].mxu1  ;;  %4966 = vst [vmem:[%s7461_s4 + $0x48] sm:$0xff] %v4954_v56 }
 0x47a   : > { %v4929_v2 = vpop.f32.mrb[6].mxu1  ;;  %4967 = vst [vmem:[%s7461_s4 + $0x50] sm:$0xff] %v4955_v59 }
 0x47b   : > { %v4953_v3 = vmax.f32 %v5513_v60, 0.0  ;;  %v5514_v4 = vadd.f32 %v4929_v2, %v6384_v39  ;;  %v4931_v7 = vpop.f32.mrb[7].mxu1 }
 0x47d   : > { %4965 = vst.msk [vmem:[%s7461_s4 + $0x40] sm:$0xff] %vm289_vm0, %v4953_v3  ;;  %v4956_v37 = vmax.f32 %v5514_v4, 0.0 }
 0x47f   : > { %4968 = vst.msk [vmem:[%s7461_s4 + $0x58] sm:$0xff] %vm289_vm0, %v4956_v37 }
 0x480   : > { %5945 = shalt.err (!%p5942_p5)
}
 0x481   : > { %s5946_s8 = scalar_lea.hbm %s7488_s20, 1536  ;;  %s5950_s29 = scalar_lea.hbm %s7546_s3, 3072 }
 0x482   : > { %p5947_p9 = scmp.ne.s32.totalorder %s7488_s20, %s5946_s8  ;;  %p5951_p3 = scmp.lt.u32.totalorder %s7488_s20, %s7546_s3 }
 0x483   : > { %p5952_p7 = scmp.lt.u32.totalorder %s5950_s29, %s5946_s8  ;;  %p5954_p4 = scmp.lt.u32.totalorder %s5946_s8, %s7488_s20 }
 0x484   : > { %p5948_p1 = pnand %p5947_p9, %p6191_p10 }
 0x485   : > { %p5953_p13 = por %p5952_p7, %p5951_p3 }
 0x486   : > { %p5949_p2 = pneg %p5948_p1 }
 0x487   : > { %p5955_p6 = por %p5954_p4, %p5953_p13 }
 0x489   : > { %p5956_p8 = pnand %p5955_p6, %p5949_p2 }
 0x48b   : > { %5959 = shalt.err (!%p5956_p8)
}
 0x48c   : > { %s6073_s4 = smov 384   ;;  %s6074_s24 = smov 24  }
 0x48d   : > { %5619 = dma.vmem_to_hbm [thread:$0]  (%p6191_p10), %s7490_s22, 1536, %s7488_s20, %s4970_s15, %s6073_s4, %s6073_s4, %s6074_s24  }
 0x48e PF: > { %s5000_s9 = sand.u32 1, %s5998_s12   ;;  %p7564_p12 = scmp.ne.s32.totalorder %s7554_s23, 0 }
 0x48f   : > { %p7565_p11 = scmp.ge.s32.totalorder %s6018_s17, 2  ;;  %s5001_s10 = scalar_lea.sflag [#allocation5], %s5000_s9 }
 0x491   : > { %p5630_p0 = pnand %p7565_p11, %p7564_p12 }
 0x493   : > { %5993 = dma.done.wait (!%p5630_p0), %s5001_s10, 1536  }
 0x494   : > { %5995 = vsyncadd (!%p5630_p0), %s5001_s10, 4294965760  ;;  %s20_s17 = sadd.s32 1, %s6018_s17   ;;  %s7566_s12 = smov %s6002_s13 }
 0x495   : > { %p17_p5 = scmp.ge.s32.totalorder %s20_s17, 4   ;;  %s7567_s13 = smov %s6006_s14 }
 0x496   : > { %s7568_s14 = smov %s6200_s5  ;;  %s7569_s15 = smov %s6014_s16 }
 0x497   : > { %s7570_s16 = smov %s7572_s28  ;;  %19 = sbr.rel (!%p17_p5) target bundleno = 7 (0x7), region = 87 }
 0x49e   :  { %5006 = vsyncpa [#allocation4], 1 }
 0x49f   :  { %5008 = vsyncpa [#allocation4 + $0x1], 1 }
 0x4a0   :  { %5009 = vsyncpa [#allocation7], 1 }
 0x4a1   :  { %5010 = vsyncpa [#allocation5], 1 }
 0x4a2   :  { %5012 = vsyncpa [#allocation5 + $0x1], 1 }

</bundles_post_ra>
